<compile_context>
chip_gen: v7x
topology: tpu7x:2x2x1
jax: 0.10.0
libtpu: 0.0.40
codegen_flags: <defaults>
</compile_context>

<pallas_src>
import functools

import jax
import jax.numpy as jnp
from jax import lax
from jax.experimental import pallas as pl
from jax.experimental.pallas import tpu as pltpu


def _probe_kernel(n,
                  rb_ref, x_ref,
                  w_ins_ref, b_ins_ref,
                  w1_ref, b1_ref, w2_ref, b2_ref,
                  w3_ref, b3_ref, w4_ref, b4_ref,
                  w_out_ref, b_out_ref,
                  g1_ref, be1_ref, g2_ref, be2_ref, g3_ref, be3_ref,
                  out_ref):
    # Static (trace-time) counter handing out one pre-drawn random slab per
    # dropout site.  rb_ref is (num_dropouts, B, 4n) uint32.
    drop_idx = iter(range(rb_ref.shape[0]))

    def next_bits():
        return rb_ref[next(drop_idx)]          # (B, 4n) uint32, static index

    def linear(x, w_ref, b_ref):
        # w_ref is (in, out) — pre-transposed PyTorch weight; b_ref is (1, out).
        return jnp.dot(x, w_ref[...], preferred_element_type=jnp.float32) + b_ref[...]

    def bn_relu_drop(y, g_ref, be_ref, p, eps=1e-7):
        # Fused: BatchNorm (training stats) -> ReLU -> dropout(p), all in one
        # scale/shift + single select.
        f = y.shape[1]
        # One cross-sublane reduction for both moments (lane-concat [y, y*y]).
        stats = jnp.mean(jnp.concatenate([y, y * y], axis=1),
                         axis=0, keepdims=True)             # (1, 2f)
        mean = stats[:, :f]
        var = jnp.maximum(stats[:, f:] - mean * mean, 0.0)  # guard f32 cancellation
        inv_keep = 1.0 / (1.0 - p)
        s = g_ref[...] * lax.rsqrt(var + eps)                # gamma / sqrt(var+eps)
        t = (be_ref[...] - mean * s) * inv_keep              # shift, dropout-folded
        s = s * inv_keep                                     # scale, dropout-folded
        ys = y * s + t
        thr = jnp.uint32(int(p * (1 << 32)))
        keep = (next_bits()[:, :f] >= thr) & (ys > 0.0)      # dropout & relu merged
        return jnp.where(keep, ys, 0.0)

    def relu_drop(y, p):
        f = y.shape[1]
        ys = y * (1.0 / (1.0 - p))
        thr = jnp.uint32(int(p * (1 << 32)))
        keep = (next_bits()[:, :f] >= thr) & (ys > 0.0)
        return jnp.where(keep, ys, 0.0)

    x = x_ref[...].astype(jnp.float32)
    # Loops are static in n -> fully unrolled at trace time (LLO sees it all).
    for _ in range(n // 3):
        # insider: n -> 4n, bnf2, relu, dropout(0.3)
        x = bn_relu_drop(linear(x, w_ins_ref, b_ins_ref), g2_ref, be2_ref, 0.3)
        for _ in range(n // 2):
            # hl1: 4n -> 2n, bnf1, relu, dropout(0.5)
            x = bn_relu_drop(linear(x, w1_ref, b1_ref), g1_ref, be1_ref, 0.5)
            # hl2: 2n -> 4n, bnf2, relu, dropout(0.5)
            x = bn_relu_drop(linear(x, w2_ref, b2_ref), g2_ref, be2_ref, 0.5)
        # hl3: 4n -> 1.5n, bnf3 (reference typo `bf3`), relu, dropout(0.3)
        x = bn_relu_drop(linear(x, w3_ref, b3_ref), g3_ref, be3_ref, 0.3)
        # hl4: 1.5n -> n, relu, dropout(0.3)  (no BN on this layer)
        x = relu_drop(linear(x, w4_ref, b4_ref), 0.3)
    # outsider: n -> 1, relu, dropout(0.2)
    x = relu_drop(linear(x, w_out_ref, b_out_ref), 0.2)
    out_ref[...] = x


def num_dropouts(n):
    # per outer iter: insider + 2*(n//2) inner + hl3 + hl4; plus final outsider.
    return (n // 3) * (3 + 2 * (n // 2)) + 1


def stalin3000_anal_probe(x, params, key, *, n):
    """x: (B, n) float32, params: flat list in kernel order, key: PRNG key."""
    B = x.shape[0]
    # One bulk random draw for every dropout site (sliced per layer in-kernel).
    rbits = jax.random.bits(key, (num_dropouts(n), B, 4 * n), dtype=jnp.uint32)
    flat_inputs = [rbits, x] + list(params)
    vmem = pl.BlockSpec(memory_space=pltpu.MemorySpace.VMEM)
    return pl.pallas_call(
        functools.partial(_probe_kernel, n),
        out_shape=jax.ShapeDtypeStruct((B, 1), jnp.float32),
        in_specs=[vmem] * len(flat_inputs),
        out_specs=vmem,
    )(*flat_inputs)


def init_params(key, n):
    """Deterministic parameter init (PyTorch-style uniform bounds for Linear)."""
    m = int(1.5 * n)
    # (in, out) pairs for: insider, hl1, hl2, hl3, hl4, outsider.
    dims = [(n, 4 * n), (4 * n, 2 * n), (2 * n, 4 * n), (4 * n, m), (m, n), (n, 1)]
    params = []
    for din, dout in dims:
        key, kw, kb = jax.random.split(key, 3)
        bound = 1.0 / (din ** 0.5)
        # Already transposed to (in, out) for the kernel.
        w = jax.random.uniform(kw, (din, dout), jnp.float32, -bound, bound)
        b = jax.random.uniform(kb, (1, dout), jnp.float32, -bound, bound)
        params += [w, b]
    # BatchNorm affine params: bnf1 (2n), bnf2 (4n), bnf3 (1.5n); gamma=1, beta=0.
    for f in (2 * n, 4 * n, m):
        params += [jnp.ones((1, f), jnp.float32), jnp.zeros((1, f), jnp.float32)]
    return params


if __name__ == "__main__":
    n = 8          # -> hidden widths: 4n=32, 2n=16, int(1.5n)=12
    B = 16         # batch size (BatchNorm reduces over this axis)

    key = jax.random.PRNGKey(0)
    kx, kp, kd = jax.random.split(key, 3)
    x = jax.random.normal(kx, (B, n), dtype=jnp.float32)
    params = init_params(kp, n)

    out = stalin3000_anal_probe(x, params, kd, n=n)
    jax.block_until_ready(out)
    assert out.shape == (B, 1) and out.dtype == jnp.float32
    print("KERNEL_OK")
</pallas_src>

<mosaic_0001>
module attributes {stable_mosaic.version = 11 : i64} {
  func.func @_probe_kernel(%arg0: memref<23x16x32xi32, #tpu.memory_space<vmem>>, %arg1: memref<16x8xf32, #tpu.memory_space<vmem>>, %arg2: memref<8x32xf32, #tpu.memory_space<vmem>>, %arg3: memref<1x32xf32, #tpu.memory_space<vmem>>, %arg4: memref<32x16xf32, #tpu.memory_space<vmem>>, %arg5: memref<1x16xf32, #tpu.memory_space<vmem>>, %arg6: memref<16x32xf32, #tpu.memory_space<vmem>>, %arg7: memref<1x32xf32, #tpu.memory_space<vmem>>, %arg8: memref<32x12xf32, #tpu.memory_space<vmem>>, %arg9: memref<1x12xf32, #tpu.memory_space<vmem>>, %arg10: memref<12x8xf32, #tpu.memory_space<vmem>>, %arg11: memref<1x8xf32, #tpu.memory_space<vmem>>, %arg12: memref<8x1xf32, #tpu.memory_space<vmem>>, %arg13: memref<1x1xf32, #tpu.memory_space<vmem>>, %arg14: memref<1x16xf32, #tpu.memory_space<vmem>>, %arg15: memref<1x16xf32, #tpu.memory_space<vmem>>, %arg16: memref<1x32xf32, #tpu.memory_space<vmem>>, %arg17: memref<1x32xf32, #tpu.memory_space<vmem>>, %arg18: memref<1x12xf32, #tpu.memory_space<vmem>>, %arg19: memref<1x12xf32, #tpu.memory_space<vmem>>, %arg20: memref<16x1xf32, #tpu.memory_space<vmem>>) attributes {dimension_semantics = [], scalar_prefetch = 0 : i64, scratch_operands = 0 : i64, tpu.core_type = #tpu.core_type<tc>} {
    %c0 = arith.constant 0 : index
    %c0_0 = arith.constant 0 : index
    %0 = vector.load %arg1[%c0, %c0_0] : memref<16x8xf32, #tpu.memory_space<vmem>>, vector<16x8xf32>
    %c0_1 = arith.constant 0 : index
    %c0_2 = arith.constant 0 : index
    %1 = vector.load %arg2[%c0_1, %c0_2] : memref<8x32xf32, #tpu.memory_space<vmem>>, vector<8x32xf32>
    %cst = arith.constant dense<0.000000e+00> : vector<16x32xf32>
    %2 = tpu.matmul %0, %1, %cst {dimension_numbers = #tpu.dot_dimension_numbers<[1], [0], [0], [1], [0, 0, 1, 1], [], []>} : vector<16x8xf32>, vector<8x32xf32>, vector<16x32xf32> -> vector<16x32xf32>
    %c0_3 = arith.constant 0 : index
    %c0_4 = arith.constant 0 : index
    %3 = vector.load %arg3[%c0_3, %c0_4] : memref<1x32xf32, #tpu.memory_space<vmem>>, vector<1x32xf32>
    %4 = vector.broadcast %3 : vector<1x32xf32> to vector<16x32xf32>
    %5 = arith.addf %2, %4 : vector<16x32xf32>
    %6 = arith.mulf %5, %5 : vector<16x32xf32>
    %7 = tpu.concatenate %5, %6 in 1 : vector<16x32xf32>, vector<16x32xf32> -> vector<16x64xf32>
    %cst_5 = arith.constant dense<0.000000e+00> : vector<64xf32>
    %8 = vector.multi_reduction <add>, %7, %cst_5 [0] : vector<16x64xf32> to vector<64xf32>
    %9 = vector.shape_cast %8 : vector<64xf32> to vector<1x64xf32>
    %cst_6 = arith.constant 1.600000e+01 : f32
    %10 = vector.broadcast %cst_6 : f32 to vector<1x64xf32>
    %11 = arith.divf %9, %10 : vector<1x64xf32>
    %12 = vector.extract_strided_slice %11 {offsets = [0, 0], sizes = [1, 32], strides = [1, 1]} : vector<1x64xf32> to vector<1x32xf32>
    %13 = vector.extract_strided_slice %11 {offsets = [0, 32], sizes = [1, 32], strides = [1, 1]} : vector<1x64xf32> to vector<1x32xf32>
    %14 = arith.mulf %12, %12 : vector<1x32xf32>
    %15 = arith.subf %13, %14 : vector<1x32xf32>
    %cst_7 = arith.constant 0.000000e+00 : f32
    %16 = vector.broadcast %cst_7 : f32 to vector<1x32xf32>
    %17 = arith.maximumf %15, %16 : vector<1x32xf32>
    %c0_8 = arith.constant 0 : index
    %c0_9 = arith.constant 0 : index
    %18 = vector.load %arg16[%c0_8, %c0_9] : memref<1x32xf32, #tpu.memory_space<vmem>>, vector<1x32xf32>
    %cst_10 = arith.constant 1.000000e-07 : f32
    %19 = vector.broadcast %cst_10 : f32 to vector<1x32xf32>
    %20 = arith.addf %17, %19 : vector<1x32xf32>
    %21 = math.rsqrt %20 : vector<1x32xf32>
    %22 = arith.mulf %18, %21 : vector<1x32xf32>
    %c0_11 = arith.constant 0 : index
    %c0_12 = arith.constant 0 : index
    %23 = vector.load %arg17[%c0_11, %c0_12] : memref<1x32xf32, #tpu.memory_space<vmem>>, vector<1x32xf32>
    %24 = arith.mulf %12, %22 : vector<1x32xf32>
    %25 = arith.subf %23, %24 : vector<1x32xf32>
    %cst_13 = arith.constant 1.42857146 : f32
    %26 = vector.broadcast %cst_13 : f32 to vector<1x32xf32>
    %27 = arith.mulf %25, %26 : vector<1x32xf32>
    %cst_14 = arith.constant 1.42857146 : f32
    %28 = vector.broadcast %cst_14 : f32 to vector<1x32xf32>
    %29 = arith.mulf %22, %28 : vector<1x32xf32>
    %30 = vector.broadcast %29 : vector<1x32xf32> to vector<16x32xf32>
    %31 = arith.mulf %5, %30 : vector<16x32xf32>
    %32 = vector.broadcast %27 : vector<1x32xf32> to vector<16x32xf32>
    %33 = arith.addf %31, %32 : vector<16x32xf32>
    %c0_15 = arith.constant 0 : index
    %c0_16 = arith.constant 0 : index
    %c0_17 = arith.constant 0 : index
    %34 = vector.load %arg0[%c0_15, %c0_16, %c0_17] : memref<23x16x32xi32, #tpu.memory_space<vmem>>, vector<1x16x32xi32>
    %35 = vector.shape_cast %34 : vector<1x16x32xi32> to vector<16x32xi32>
    %c1288490188_i32 = arith.constant 1288490188 : i32
    %36 = vector.broadcast %c1288490188_i32 : i32 to vector<16x32xi32>
    %37 = arith.cmpi uge, %35, %36 : vector<16x32xi32>
    %cst_18 = arith.constant 0.000000e+00 : f32
    %38 = vector.broadcast %cst_18 : f32 to vector<16x32xf32>
    %39 = arith.cmpf ogt, %33, %38 : vector<16x32xf32>
    %40 = arith.andi %37, %39 : vector<16x32xi1>
    %cst_19 = arith.constant 0.000000e+00 : f32
    %41 = vector.broadcast %cst_19 : f32 to vector<16x32xf32>
    %42 = arith.select %40, %33, %41 : vector<16x32xi1>, vector<16x32xf32>
    %c0_20 = arith.constant 0 : index
    %c0_21 = arith.constant 0 : index
    %43 = vector.load %arg4[%c0_20, %c0_21] : memref<32x16xf32, #tpu.memory_space<vmem>>, vector<32x16xf32>
    %cst_22 = arith.constant dense<0.000000e+00> : vector<16x16xf32>
    %44 = tpu.matmul %42, %43, %cst_22 {dimension_numbers = #tpu.dot_dimension_numbers<[1], [0], [0], [1], [0, 0, 1, 1], [], []>} : vector<16x32xf32>, vector<32x16xf32>, vector<16x16xf32> -> vector<16x16xf32>
    %c0_23 = arith.constant 0 : index
    %c0_24 = arith.constant 0 : index
    %45 = vector.load %arg5[%c0_23, %c0_24] : memref<1x16xf32, #tpu.memory_space<vmem>>, vector<1x16xf32>
    %46 = vector.broadcast %45 : vector<1x16xf32> to vector<16x16xf32>
    %47 = arith.addf %44, %46 : vector<16x16xf32>
    %48 = arith.mulf %47, %47 : vector<16x16xf32>
    %49 = tpu.concatenate %47, %48 in 1 : vector<16x16xf32>, vector<16x16xf32> -> vector<16x32xf32>
    %cst_25 = arith.constant dense<0.000000e+00> : vector<32xf32>
    %50 = vector.multi_reduction <add>, %49, %cst_25 [0] : vector<16x32xf32> to vector<32xf32>
    %51 = vector.shape_cast %50 : vector<32xf32> to vector<1x32xf32>
    %cst_26 = arith.constant 1.600000e+01 : f32
    %52 = vector.broadcast %cst_26 : f32 to vector<1x32xf32>
    %53 = arith.divf %51, %52 : vector<1x32xf32>
    %54 = vector.extract_strided_slice %53 {offsets = [0, 0], sizes = [1, 16], strides = [1, 1]} : vector<1x32xf32> to vector<1x16xf32>
    %55 = vector.extract_strided_slice %53 {offsets = [0, 16], sizes = [1, 16], strides = [1, 1]} : vector<1x32xf32> to vector<1x16xf32>
    %56 = arith.mulf %54, %54 : vector<1x16xf32>
    %57 = arith.subf %55, %56 : vector<1x16xf32>
    %cst_27 = arith.constant 0.000000e+00 : f32
    %58 = vector.broadcast %cst_27 : f32 to vector<1x16xf32>
    %59 = arith.maximumf %57, %58 : vector<1x16xf32>
    %c0_28 = arith.constant 0 : index
    %c0_29 = arith.constant 0 : index
    %60 = vector.load %arg14[%c0_28, %c0_29] : memref<1x16xf32, #tpu.memory_space<vmem>>, vector<1x16xf32>
    %cst_30 = arith.constant 1.000000e-07 : f32
    %61 = vector.broadcast %cst_30 : f32 to vector<1x16xf32>
    %62 = arith.addf %59, %61 : vector<1x16xf32>
    %63 = math.rsqrt %62 : vector<1x16xf32>
    %64 = arith.mulf %60, %63 : vector<1x16xf32>
    %c0_31 = arith.constant 0 : index
    %c0_32 = arith.constant 0 : index
    %65 = vector.load %arg15[%c0_31, %c0_32] : memref<1x16xf32, #tpu.memory_space<vmem>>, vector<1x16xf32>
    %66 = arith.mulf %54, %64 : vector<1x16xf32>
    %67 = arith.subf %65, %66 : vector<1x16xf32>
    %cst_33 = arith.constant 2.000000e+00 : f32
    %68 = vector.broadcast %cst_33 : f32 to vector<1x16xf32>
    %69 = arith.mulf %67, %68 : vector<1x16xf32>
    %cst_34 = arith.constant 2.000000e+00 : f32
    %70 = vector.broadcast %cst_34 : f32 to vector<1x16xf32>
    %71 = arith.mulf %64, %70 : vector<1x16xf32>
    %72 = vector.broadcast %71 : vector<1x16xf32> to vector<16x16xf32>
    %73 = arith.mulf %47, %72 : vector<16x16xf32>
    %74 = vector.broadcast %69 : vector<1x16xf32> to vector<16x16xf32>
    %75 = arith.addf %73, %74 : vector<16x16xf32>
    %c1 = arith.constant 1 : index
    %c0_35 = arith.constant 0 : index
    %c0_36 = arith.constant 0 : index
    %76 = vector.load %arg0[%c1, %c0_35, %c0_36] : memref<23x16x32xi32, #tpu.memory_space<vmem>>, vector<1x16x32xi32>
    %77 = vector.shape_cast %76 : vector<1x16x32xi32> to vector<16x32xi32>
    %78 = vector.extract_strided_slice %77 {offsets = [0, 0], sizes = [16, 16], strides = [1, 1]} : vector<16x32xi32> to vector<16x16xi32>
    %c-2147483648_i32 = arith.constant -2147483648 : i32
    %79 = vector.broadcast %c-2147483648_i32 : i32 to vector<16x16xi32>
    %80 = arith.cmpi uge, %78, %79 : vector<16x16xi32>
    %cst_37 = arith.constant 0.000000e+00 : f32
    %81 = vector.broadcast %cst_37 : f32 to vector<16x16xf32>
    %82 = arith.cmpf ogt, %75, %81 : vector<16x16xf32>
    %83 = arith.andi %80, %82 : vector<16x16xi1>
    %cst_38 = arith.constant 0.000000e+00 : f32
    %84 = vector.broadcast %cst_38 : f32 to vector<16x16xf32>
    %85 = arith.select %83, %75, %84 : vector<16x16xi1>, vector<16x16xf32>
    %c0_39 = arith.constant 0 : index
    %c0_40 = arith.constant 0 : index
    %86 = vector.load %arg6[%c0_39, %c0_40] : memref<16x32xf32, #tpu.memory_space<vmem>>, vector<16x32xf32>
    %cst_41 = arith.constant dense<0.000000e+00> : vector<16x32xf32>
    %87 = tpu.matmul %85, %86, %cst_41 {dimension_numbers = #tpu.dot_dimension_numbers<[1], [0], [0], [1], [0, 0, 1, 1], [], []>} : vector<16x16xf32>, vector<16x32xf32>, vector<16x32xf32> -> vector<16x32xf32>
    %c0_42 = arith.constant 0 : index
    %c0_43 = arith.constant 0 : index
    %88 = vector.load %arg7[%c0_42, %c0_43] : memref<1x32xf32, #tpu.memory_space<vmem>>, vector<1x32xf32>
    %89 = vector.broadcast %88 : vector<1x32xf32> to vector<16x32xf32>
    %90 = arith.addf %87, %89 : vector<16x32xf32>
    %91 = arith.mulf %90, %90 : vector<16x32xf32>
    %92 = tpu.concatenate %90, %91 in 1 : vector<16x32xf32>, vector<16x32xf32> -> vector<16x64xf32>
    %cst_44 = arith.constant dense<0.000000e+00> : vector<64xf32>
    %93 = vector.multi_reduction <add>, %92, %cst_44 [0] : vector<16x64xf32> to vector<64xf32>
    %94 = vector.shape_cast %93 : vector<64xf32> to vector<1x64xf32>
    %cst_45 = arith.constant 1.600000e+01 : f32
    %95 = vector.broadcast %cst_45 : f32 to vector<1x64xf32>
    %96 = arith.divf %94, %95 : vector<1x64xf32>
    %97 = vector.extract_strided_slice %96 {offsets = [0, 0], sizes = [1, 32], strides = [1, 1]} : vector<1x64xf32> to vector<1x32xf32>
    %98 = vector.extract_strided_slice %96 {offsets = [0, 32], sizes = [1, 32], strides = [1, 1]} : vector<1x64xf32> to vector<1x32xf32>
    %99 = arith.mulf %97, %97 : vector<1x32xf32>
    %100 = arith.subf %98, %99 : vector<1x32xf32>
    %cst_46 = arith.constant 0.000000e+00 : f32
    %101 = vector.broadcast %cst_46 : f32 to vector<1x32xf32>
    %102 = arith.maximumf %100, %101 : vector<1x32xf32>
    %c0_47 = arith.constant 0 : index
    %c0_48 = arith.constant 0 : index
    %103 = vector.load %arg16[%c0_47, %c0_48] : memref<1x32xf32, #tpu.memory_space<vmem>>, vector<1x32xf32>
    %cst_49 = arith.constant 1.000000e-07 : f32
    %104 = vector.broadcast %cst_49 : f32 to vector<1x32xf32>
    %105 = arith.addf %102, %104 : vector<1x32xf32>
    %106 = math.rsqrt %105 : vector<1x32xf32>
    %107 = arith.mulf %103, %106 : vector<1x32xf32>
    %c0_50 = arith.constant 0 : index
    %c0_51 = arith.constant 0 : index
    %108 = vector.load %arg17[%c0_50, %c0_51] : memref<1x32xf32, #tpu.memory_space<vmem>>, vector<1x32xf32>
    %109 = arith.mulf %97, %107 : vector<1x32xf32>
    %110 = arith.subf %108, %109 : vector<1x32xf32>
    %cst_52 = arith.constant 2.000000e+00 : f32
    %111 = vector.broadcast %cst_52 : f32 to vector<1x32xf32>
    %112 = arith.mulf %110, %111 : vector<1x32xf32>
    %cst_53 = arith.constant 2.000000e+00 : f32
    %113 = vector.broadcast %cst_53 : f32 to vector<1x32xf32>
    %114 = arith.mulf %107, %113 : vector<1x32xf32>
    %115 = vector.broadcast %114 : vector<1x32xf32> to vector<16x32xf32>
    %116 = arith.mulf %90, %115 : vector<16x32xf32>
    %117 = vector.broadcast %112 : vector<1x32xf32> to vector<16x32xf32>
    %118 = arith.addf %116, %117 : vector<16x32xf32>
    %c2 = arith.constant 2 : index
    %c0_54 = arith.constant 0 : index
    %c0_55 = arith.constant 0 : index
    %119 = vector.load %arg0[%c2, %c0_54, %c0_55] : memref<23x16x32xi32, #tpu.memory_space<vmem>>, vector<1x16x32xi32>
    %120 = vector.shape_cast %119 : vector<1x16x32xi32> to vector<16x32xi32>
    %c-2147483648_i32_56 = arith.constant -2147483648 : i32
    %121 = vector.broadcast %c-2147483648_i32_56 : i32 to vector<16x32xi32>
    %122 = arith.cmpi uge, %120, %121 : vector<16x32xi32>
    %cst_57 = arith.constant 0.000000e+00 : f32
    %123 = vector.broadcast %cst_57 : f32 to vector<16x32xf32>
    %124 = arith.cmpf ogt, %118, %123 : vector<16x32xf32>
    %125 = arith.andi %122, %124 : vector<16x32xi1>
    %cst_58 = arith.constant 0.000000e+00 : f32
    %126 = vector.broadcast %cst_58 : f32 to vector<16x32xf32>
    %127 = arith.select %125, %118, %126 : vector<16x32xi1>, vector<16x32xf32>
    %c0_59 = arith.constant 0 : index
    %c0_60 = arith.constant 0 : index
    %128 = vector.load %arg4[%c0_59, %c0_60] : memref<32x16xf32, #tpu.memory_space<vmem>>, vector<32x16xf32>
    %cst_61 = arith.constant dense<0.000000e+00> : vector<16x16xf32>
    %129 = tpu.matmul %127, %128, %cst_61 {dimension_numbers = #tpu.dot_dimension_numbers<[1], [0], [0], [1], [0, 0, 1, 1], [], []>} : vector<16x32xf32>, vector<32x16xf32>, vector<16x16xf32> -> vector<16x16xf32>
    %c0_62 = arith.constant 0 : index
    %c0_63 = arith.constant 0 : index
    %130 = vector.load %arg5[%c0_62, %c0_63] : memref<1x16xf32, #tpu.memory_space<vmem>>, vector<1x16xf32>
    %131 = vector.broadcast %130 : vector<1x16xf32> to vector<16x16xf32>
    %132 = arith.addf %129, %131 : vector<16x16xf32>
    %133 = arith.mulf %132, %132 : vector<16x16xf32>
    %134 = tpu.concatenate %132, %133 in 1 : vector<16x16xf32>, vector<16x16xf32> -> vector<16x32xf32>
    %cst_64 = arith.constant dense<0.000000e+00> : vector<32xf32>
    %135 = vector.multi_reduction <add>, %134, %cst_64 [0] : vector<16x32xf32> to vector<32xf32>
    %136 = vector.shape_cast %135 : vector<32xf32> to vector<1x32xf32>
    %cst_65 = arith.constant 1.600000e+01 : f32
    %137 = vector.broadcast %cst_65 : f32 to vector<1x32xf32>
    %138 = arith.divf %136, %137 : vector<1x32xf32>
    %139 = vector.extract_strided_slice %138 {offsets = [0, 0], sizes = [1, 16], strides = [1, 1]} : vector<1x32xf32> to vector<1x16xf32>
    %140 = vector.extract_strided_slice %138 {offsets = [0, 16], sizes = [1, 16], strides = [1, 1]} : vector<1x32xf32> to vector<1x16xf32>
    %141 = arith.mulf %139, %139 : vector<1x16xf32>
    %142 = arith.subf %140, %141 : vector<1x16xf32>
    %cst_66 = arith.constant 0.000000e+00 : f32
    %143 = vector.broadcast %cst_66 : f32 to vector<1x16xf32>
    %144 = arith.maximumf %142, %143 : vector<1x16xf32>
    %c0_67 = arith.constant 0 : index
    %c0_68 = arith.constant 0 : index
    %145 = vector.load %arg14[%c0_67, %c0_68] : memref<1x16xf32, #tpu.memory_space<vmem>>, vector<1x16xf32>
    %cst_69 = arith.constant 1.000000e-07 : f32
    %146 = vector.broadcast %cst_69 : f32 to vector<1x16xf32>
    %147 = arith.addf %144, %146 : vector<1x16xf32>
    %148 = math.rsqrt %147 : vector<1x16xf32>
    %149 = arith.mulf %145, %148 : vector<1x16xf32>
    %c0_70 = arith.constant 0 : index
    %c0_71 = arith.constant 0 : index
    %150 = vector.load %arg15[%c0_70, %c0_71] : memref<1x16xf32, #tpu.memory_space<vmem>>, vector<1x16xf32>
    %151 = arith.mulf %139, %149 : vector<1x16xf32>
    %152 = arith.subf %150, %151 : vector<1x16xf32>
    %cst_72 = arith.constant 2.000000e+00 : f32
    %153 = vector.broadcast %cst_72 : f32 to vector<1x16xf32>
    %154 = arith.mulf %152, %153 : vector<1x16xf32>
    %cst_73 = arith.constant 2.000000e+00 : f32
    %155 = vector.broadcast %cst_73 : f32 to vector<1x16xf32>
    %156 = arith.mulf %149, %155 : vector<1x16xf32>
    %157 = vector.broadcast %156 : vector<1x16xf32> to vector<16x16xf32>
    %158 = arith.mulf %132, %157 : vector<16x16xf32>
    %159 = vector.broadcast %154 : vector<1x16xf32> to vector<16x16xf32>
    %160 = arith.addf %158, %159 : vector<16x16xf32>
    %c3 = arith.constant 3 : index
    %c0_74 = arith.constant 0 : index
    %c0_75 = arith.constant 0 : index
    %161 = vector.load %arg0[%c3, %c0_74, %c0_75] : memref<23x16x32xi32, #tpu.memory_space<vmem>>, vector<1x16x32xi32>
    %162 = vector.shape_cast %161 : vector<1x16x32xi32> to vector<16x32xi32>
    %163 = vector.extract_strided_slice %162 {offsets = [0, 0], sizes = [16, 16], strides = [1, 1]} : vector<16x32xi32> to vector<16x16xi32>
    %c-2147483648_i32_76 = arith.constant -2147483648 : i32
    %164 = vector.broadcast %c-2147483648_i32_76 : i32 to vector<16x16xi32>
    %165 = arith.cmpi uge, %163, %164 : vector<16x16xi32>
    %cst_77 = arith.constant 0.000000e+00 : f32
    %166 = vector.broadcast %cst_77 : f32 to vector<16x16xf32>
    %167 = arith.cmpf ogt, %160, %166 : vector<16x16xf32>
    %168 = arith.andi %165, %167 : vector<16x16xi1>
    %cst_78 = arith.constant 0.000000e+00 : f32
    %169 = vector.broadcast %cst_78 : f32 to vector<16x16xf32>
    %170 = arith.select %168, %160, %169 : vector<16x16xi1>, vector<16x16xf32>
    %c0_79 = arith.constant 0 : index
    %c0_80 = arith.constant 0 : index
    %171 = vector.load %arg6[%c0_79, %c0_80] : memref<16x32xf32, #tpu.memory_space<vmem>>, vector<16x32xf32>
    %cst_81 = arith.constant dense<0.000000e+00> : vector<16x32xf32>
    %172 = tpu.matmul %170, %171, %cst_81 {dimension_numbers = #tpu.dot_dimension_numbers<[1], [0], [0], [1], [0, 0, 1, 1], [], []>} : vector<16x16xf32>, vector<16x32xf32>, vector<16x32xf32> -> vector<16x32xf32>
    %c0_82 = arith.constant 0 : index
    %c0_83 = arith.constant 0 : index
    %173 = vector.load %arg7[%c0_82, %c0_83] : memref<1x32xf32, #tpu.memory_space<vmem>>, vector<1x32xf32>
    %174 = vector.broadcast %173 : vector<1x32xf32> to vector<16x32xf32>
    %175 = arith.addf %172, %174 : vector<16x32xf32>
    %176 = arith.mulf %175, %175 : vector<16x32xf32>
    %177 = tpu.concatenate %175, %176 in 1 : vector<16x32xf32>, vector<16x32xf32> -> vector<16x64xf32>
    %cst_84 = arith.constant dense<0.000000e+00> : vector<64xf32>
    %178 = vector.multi_reduction <add>, %177, %cst_84 [0] : vector<16x64xf32> to vector<64xf32>
    %179 = vector.shape_cast %178 : vector<64xf32> to vector<1x64xf32>
    %cst_85 = arith.constant 1.600000e+01 : f32
    %180 = vector.broadcast %cst_85 : f32 to vector<1x64xf32>
    %181 = arith.divf %179, %180 : vector<1x64xf32>
    %182 = vector.extract_strided_slice %181 {offsets = [0, 0], sizes = [1, 32], strides = [1, 1]} : vector<1x64xf32> to vector<1x32xf32>
    %183 = vector.extract_strided_slice %181 {offsets = [0, 32], sizes = [1, 32], strides = [1, 1]} : vector<1x64xf32> to vector<1x32xf32>
    %184 = arith.mulf %182, %182 : vector<1x32xf32>
    %185 = arith.subf %183, %184 : vector<1x32xf32>
    %cst_86 = arith.constant 0.000000e+00 : f32
    %186 = vector.broadcast %cst_86 : f32 to vector<1x32xf32>
    %187 = arith.maximumf %185, %186 : vector<1x32xf32>
    %c0_87 = arith.constant 0 : index
    %c0_88 = arith.constant 0 : index
    %188 = vector.load %arg16[%c0_87, %c0_88] : memref<1x32xf32, #tpu.memory_space<vmem>>, vector<1x32xf32>
    %cst_89 = arith.constant 1.000000e-07 : f32
    %189 = vector.broadcast %cst_89 : f32 to vector<1x32xf32>
    %190 = arith.addf %187, %189 : vector<1x32xf32>
    %191 = math.rsqrt %190 : vector<1x32xf32>
    %192 = arith.mulf %188, %191 : vector<1x32xf32>
    %c0_90 = arith.constant 0 : index
    %c0_91 = arith.constant 0 : index
    %193 = vector.load %arg17[%c0_90, %c0_91] : memref<1x32xf32, #tpu.memory_space<vmem>>, vector<1x32xf32>
    %194 = arith.mulf %182, %192 : vector<1x32xf32>
    %195 = arith.subf %193, %194 : vector<1x32xf32>
    %cst_92 = arith.constant 2.000000e+00 : f32
    %196 = vector.broadcast %cst_92 : f32 to vector<1x32xf32>
    %197 = arith.mulf %195, %196 : vector<1x32xf32>
    %cst_93 = arith.constant 2.000000e+00 : f32
    %198 = vector.broadcast %cst_93 : f32 to vector<1x32xf32>
    %199 = arith.mulf %192, %198 : vector<1x32xf32>
    %200 = vector.broadcast %199 : vector<1x32xf32> to vector<16x32xf32>
    %201 = arith.mulf %175, %200 : vector<16x32xf32>
    %202 = vector.broadcast %197 : vector<1x32xf32> to vector<16x32xf32>
    %203 = arith.addf %201, %202 : vector<16x32xf32>
    %c4 = arith.constant 4 : index
    %c0_94 = arith.constant 0 : index
    %c0_95 = arith.constant 0 : index
    %204 = vector.load %arg0[%c4, %c0_94, %c0_95] : memref<23x16x32xi32, #tpu.memory_space<vmem>>, vector<1x16x32xi32>
    %205 = vector.shape_cast %204 : vector<1x16x32xi32> to vector<16x32xi32>
    %c-2147483648_i32_96 = arith.constant -2147483648 : i32
    %206 = vector.broadcast %c-2147483648_i32_96 : i32 to vector<16x32xi32>
    %207 = arith.cmpi uge, %205, %206 : vector<16x32xi32>
    %cst_97 = arith.constant 0.000000e+00 : f32
    %208 = vector.broadcast %cst_97 : f32 to vector<16x32xf32>
    %209 = arith.cmpf ogt, %203, %208 : vector<16x32xf32>
    %210 = arith.andi %207, %209 : vector<16x32xi1>
    %cst_98 = arith.constant 0.000000e+00 : f32
    %211 = vector.broadcast %cst_98 : f32 to vector<16x32xf32>
    %212 = arith.select %210, %203, %211 : vector<16x32xi1>, vector<16x32xf32>
    %c0_99 = arith.constant 0 : index
    %c0_100 = arith.constant 0 : index
    %213 = vector.load %arg4[%c0_99, %c0_100] : memref<32x16xf32, #tpu.memory_space<vmem>>, vector<32x16xf32>
    %cst_101 = arith.constant dense<0.000000e+00> : vector<16x16xf32>
    %214 = tpu.matmul %212, %213, %cst_101 {dimension_numbers = #tpu.dot_dimension_numbers<[1], [0], [0], [1], [0, 0, 1, 1], [], []>} : vector<16x32xf32>, vector<32x16xf32>, vector<16x16xf32> -> vector<16x16xf32>
    %c0_102 = arith.constant 0 : index
    %c0_103 = arith.constant 0 : index
    %215 = vector.load %arg5[%c0_102, %c0_103] : memref<1x16xf32, #tpu.memory_space<vmem>>, vector<1x16xf32>
    %216 = vector.broadcast %215 : vector<1x16xf32> to vector<16x16xf32>
    %217 = arith.addf %214, %216 : vector<16x16xf32>
    %218 = arith.mulf %217, %217 : vector<16x16xf32>
    %219 = tpu.concatenate %217, %218 in 1 : vector<16x16xf32>, vector<16x16xf32> -> vector<16x32xf32>
    %cst_104 = arith.constant dense<0.000000e+00> : vector<32xf32>
    %220 = vector.multi_reduction <add>, %219, %cst_104 [0] : vector<16x32xf32> to vector<32xf32>
    %221 = vector.shape_cast %220 : vector<32xf32> to vector<1x32xf32>
    %cst_105 = arith.constant 1.600000e+01 : f32
    %222 = vector.broadcast %cst_105 : f32 to vector<1x32xf32>
    %223 = arith.divf %221, %222 : vector<1x32xf32>
    %224 = vector.extract_strided_slice %223 {offsets = [0, 0], sizes = [1, 16], strides = [1, 1]} : vector<1x32xf32> to vector<1x16xf32>
    %225 = vector.extract_strided_slice %223 {offsets = [0, 16], sizes = [1, 16], strides = [1, 1]} : vector<1x32xf32> to vector<1x16xf32>
    %226 = arith.mulf %224, %224 : vector<1x16xf32>
    %227 = arith.subf %225, %226 : vector<1x16xf32>
    %cst_106 = arith.constant 0.000000e+00 : f32
    %228 = vector.broadcast %cst_106 : f32 to vector<1x16xf32>
    %229 = arith.maximumf %227, %228 : vector<1x16xf32>
    %c0_107 = arith.constant 0 : index
    %c0_108 = arith.constant 0 : index
    %230 = vector.load %arg14[%c0_107, %c0_108] : memref<1x16xf32, #tpu.memory_space<vmem>>, vector<1x16xf32>
    %cst_109 = arith.constant 1.000000e-07 : f32
    %231 = vector.broadcast %cst_109 : f32 to vector<1x16xf32>
    %232 = arith.addf %229, %231 : vector<1x16xf32>
    %233 = math.rsqrt %232 : vector<1x16xf32>
    %234 = arith.mulf %230, %233 : vector<1x16xf32>
    %c0_110 = arith.constant 0 : index
    %c0_111 = arith.constant 0 : index
    %235 = vector.load %arg15[%c0_110, %c0_111] : memref<1x16xf32, #tpu.memory_space<vmem>>, vector<1x16xf32>
    %236 = arith.mulf %224, %234 : vector<1x16xf32>
    %237 = arith.subf %235, %236 : vector<1x16xf32>
    %cst_112 = arith.constant 2.000000e+00 : f32
    %238 = vector.broadcast %cst_112 : f32 to vector<1x16xf32>
    %239 = arith.mulf %237, %238 : vector<1x16xf32>
    %cst_113 = arith.constant 2.000000e+00 : f32
    %240 = vector.broadcast %cst_113 : f32 to vector<1x16xf32>
    %241 = arith.mulf %234, %240 : vector<1x16xf32>
    %242 = vector.broadcast %241 : vector<1x16xf32> to vector<16x16xf32>
    %243 = arith.mulf %217, %242 : vector<16x16xf32>
    %244 = vector.broadcast %239 : vector<1x16xf32> to vector<16x16xf32>
    %245 = arith.addf %243, %244 : vector<16x16xf32>
    %c5 = arith.constant 5 : index
    %c0_114 = arith.constant 0 : index
    %c0_115 = arith.constant 0 : index
    %246 = vector.load %arg0[%c5, %c0_114, %c0_115] : memref<23x16x32xi32, #tpu.memory_space<vmem>>, vector<1x16x32xi32>
    %247 = vector.shape_cast %246 : vector<1x16x32xi32> to vector<16x32xi32>
    %248 = vector.extract_strided_slice %247 {offsets = [0, 0], sizes = [16, 16], strides = [1, 1]} : vector<16x32xi32> to vector<16x16xi32>
    %c-2147483648_i32_116 = arith.constant -2147483648 : i32
    %249 = vector.broadcast %c-2147483648_i32_116 : i32 to vector<16x16xi32>
    %250 = arith.cmpi uge, %248, %249 : vector<16x16xi32>
    %cst_117 = arith.constant 0.000000e+00 : f32
    %251 = vector.broadcast %cst_117 : f32 to vector<16x16xf32>
    %252 = arith.cmpf ogt, %245, %251 : vector<16x16xf32>
    %253 = arith.andi %250, %252 : vector<16x16xi1>
    %cst_118 = arith.constant 0.000000e+00 : f32
    %254 = vector.broadcast %cst_118 : f32 to vector<16x16xf32>
    %255 = arith.select %253, %245, %254 : vector<16x16xi1>, vector<16x16xf32>
    %c0_119 = arith.constant 0 : index
    %c0_120 = arith.constant 0 : index
    %256 = vector.load %arg6[%c0_119, %c0_120] : memref<16x32xf32, #tpu.memory_space<vmem>>, vector<16x32xf32>
    %cst_121 = arith.constant dense<0.000000e+00> : vector<16x32xf32>
    %257 = tpu.matmul %255, %256, %cst_121 {dimension_numbers = #tpu.dot_dimension_numbers<[1], [0], [0], [1], [0, 0, 1, 1], [], []>} : vector<16x16xf32>, vector<16x32xf32>, vector<16x32xf32> -> vector<16x32xf32>
    %c0_122 = arith.constant 0 : index
    %c0_123 = arith.constant 0 : index
    %258 = vector.load %arg7[%c0_122, %c0_123] : memref<1x32xf32, #tpu.memory_space<vmem>>, vector<1x32xf32>
    %259 = vector.broadcast %258 : vector<1x32xf32> to vector<16x32xf32>
    %260 = arith.addf %257, %259 : vector<16x32xf32>
    %261 = arith.mulf %260, %260 : vector<16x32xf32>
    %262 = tpu.concatenate %260, %261 in 1 : vector<16x32xf32>, vector<16x32xf32> -> vector<16x64xf32>
    %cst_124 = arith.constant dense<0.000000e+00> : vector<64xf32>
    %263 = vector.multi_reduction <add>, %262, %cst_124 [0] : vector<16x64xf32> to vector<64xf32>
    %264 = vector.shape_cast %263 : vector<64xf32> to vector<1x64xf32>
    %cst_125 = arith.constant 1.600000e+01 : f32
    %265 = vector.broadcast %cst_125 : f32 to vector<1x64xf32>
    %266 = arith.divf %264, %265 : vector<1x64xf32>
    %267 = vector.extract_strided_slice %266 {offsets = [0, 0], sizes = [1, 32], strides = [1, 1]} : vector<1x64xf32> to vector<1x32xf32>
    %268 = vector.extract_strided_slice %266 {offsets = [0, 32], sizes = [1, 32], strides = [1, 1]} : vector<1x64xf32> to vector<1x32xf32>
    %269 = arith.mulf %267, %267 : vector<1x32xf32>
    %270 = arith.subf %268, %269 : vector<1x32xf32>
    %cst_126 = arith.constant 0.000000e+00 : f32
    %271 = vector.broadcast %cst_126 : f32 to vector<1x32xf32>
    %272 = arith.maximumf %270, %271 : vector<1x32xf32>
    %c0_127 = arith.constant 0 : index
    %c0_128 = arith.constant 0 : index
    %273 = vector.load %arg16[%c0_127, %c0_128] : memref<1x32xf32, #tpu.memory_space<vmem>>, vector<1x32xf32>
    %cst_129 = arith.constant 1.000000e-07 : f32
    %274 = vector.broadcast %cst_129 : f32 to vector<1x32xf32>
    %275 = arith.addf %272, %274 : vector<1x32xf32>
    %276 = math.rsqrt %275 : vector<1x32xf32>
    %277 = arith.mulf %273, %276 : vector<1x32xf32>
    %c0_130 = arith.constant 0 : index
    %c0_131 = arith.constant 0 : index
    %278 = vector.load %arg17[%c0_130, %c0_131] : memref<1x32xf32, #tpu.memory_space<vmem>>, vector<1x32xf32>
    %279 = arith.mulf %267, %277 : vector<1x32xf32>
    %280 = arith.subf %278, %279 : vector<1x32xf32>
    %cst_132 = arith.constant 2.000000e+00 : f32
    %281 = vector.broadcast %cst_132 : f32 to vector<1x32xf32>
    %282 = arith.mulf %280, %281 : vector<1x32xf32>
    %cst_133 = arith.constant 2.000000e+00 : f32
    %283 = vector.broadcast %cst_133 : f32 to vector<1x32xf32>
    %284 = arith.mulf %277, %283 : vector<1x32xf32>
    %285 = vector.broadcast %284 : vector<1x32xf32> to vector<16x32xf32>
    %286 = arith.mulf %260, %285 : vector<16x32xf32>
    %287 = vector.broadcast %282 : vector<1x32xf32> to vector<16x32xf32>
    %288 = arith.addf %286, %287 : vector<16x32xf32>
    %c6 = arith.constant 6 : index
    %c0_134 = arith.constant 0 : index
    %c0_135 = arith.constant 0 : index
    %289 = vector.load %arg0[%c6, %c0_134, %c0_135] : memref<23x16x32xi32, #tpu.memory_space<vmem>>, vector<1x16x32xi32>
    %290 = vector.shape_cast %289 : vector<1x16x32xi32> to vector<16x32xi32>
    %c-2147483648_i32_136 = arith.constant -2147483648 : i32
    %291 = vector.broadcast %c-2147483648_i32_136 : i32 to vector<16x32xi32>
    %292 = arith.cmpi uge, %290, %291 : vector<16x32xi32>
    %cst_137 = arith.constant 0.000000e+00 : f32
    %293 = vector.broadcast %cst_137 : f32 to vector<16x32xf32>
    %294 = arith.cmpf ogt, %288, %293 : vector<16x32xf32>
    %295 = arith.andi %292, %294 : vector<16x32xi1>
    %cst_138 = arith.constant 0.000000e+00 : f32
    %296 = vector.broadcast %cst_138 : f32 to vector<16x32xf32>
    %297 = arith.select %295, %288, %296 : vector<16x32xi1>, vector<16x32xf32>
    %c0_139 = arith.constant 0 : index
    %c0_140 = arith.constant 0 : index
    %298 = vector.load %arg4[%c0_139, %c0_140] : memref<32x16xf32, #tpu.memory_space<vmem>>, vector<32x16xf32>
    %cst_141 = arith.constant dense<0.000000e+00> : vector<16x16xf32>
    %299 = tpu.matmul %297, %298, %cst_141 {dimension_numbers = #tpu.dot_dimension_numbers<[1], [0], [0], [1], [0, 0, 1, 1], [], []>} : vector<16x32xf32>, vector<32x16xf32>, vector<16x16xf32> -> vector<16x16xf32>
    %c0_142 = arith.constant 0 : index
    %c0_143 = arith.constant 0 : index
    %300 = vector.load %arg5[%c0_142, %c0_143] : memref<1x16xf32, #tpu.memory_space<vmem>>, vector<1x16xf32>
    %301 = vector.broadcast %300 : vector<1x16xf32> to vector<16x16xf32>
    %302 = arith.addf %299, %301 : vector<16x16xf32>
    %303 = arith.mulf %302, %302 : vector<16x16xf32>
    %304 = tpu.concatenate %302, %303 in 1 : vector<16x16xf32>, vector<16x16xf32> -> vector<16x32xf32>
    %cst_144 = arith.constant dense<0.000000e+00> : vector<32xf32>
    %305 = vector.multi_reduction <add>, %304, %cst_144 [0] : vector<16x32xf32> to vector<32xf32>
    %306 = vector.shape_cast %305 : vector<32xf32> to vector<1x32xf32>
    %cst_145 = arith.constant 1.600000e+01 : f32
    %307 = vector.broadcast %cst_145 : f32 to vector<1x32xf32>
    %308 = arith.divf %306, %307 : vector<1x32xf32>
    %309 = vector.extract_strided_slice %308 {offsets = [0, 0], sizes = [1, 16], strides = [1, 1]} : vector<1x32xf32> to vector<1x16xf32>
    %310 = vector.extract_strided_slice %308 {offsets = [0, 16], sizes = [1, 16], strides = [1, 1]} : vector<1x32xf32> to vector<1x16xf32>
    %311 = arith.mulf %309, %309 : vector<1x16xf32>
    %312 = arith.subf %310, %311 : vector<1x16xf32>
    %cst_146 = arith.constant 0.000000e+00 : f32
    %313 = vector.broadcast %cst_146 : f32 to vector<1x16xf32>
    %314 = arith.maximumf %312, %313 : vector<1x16xf32>
    %c0_147 = arith.constant 0 : index
    %c0_148 = arith.constant 0 : index
    %315 = vector.load %arg14[%c0_147, %c0_148] : memref<1x16xf32, #tpu.memory_space<vmem>>, vector<1x16xf32>
    %cst_149 = arith.constant 1.000000e-07 : f32
    %316 = vector.broadcast %cst_149 : f32 to vector<1x16xf32>
    %317 = arith.addf %314, %316 : vector<1x16xf32>
    %318 = math.rsqrt %317 : vector<1x16xf32>
    %319 = arith.mulf %315, %318 : vector<1x16xf32>
    %c0_150 = arith.constant 0 : index
    %c0_151 = arith.constant 0 : index
    %320 = vector.load %arg15[%c0_150, %c0_151] : memref<1x16xf32, #tpu.memory_space<vmem>>, vector<1x16xf32>
    %321 = arith.mulf %309, %319 : vector<1x16xf32>
    %322 = arith.subf %320, %321 : vector<1x16xf32>
    %cst_152 = arith.constant 2.000000e+00 : f32
    %323 = vector.broadcast %cst_152 : f32 to vector<1x16xf32>
    %324 = arith.mulf %322, %323 : vector<1x16xf32>
    %cst_153 = arith.constant 2.000000e+00 : f32
    %325 = vector.broadcast %cst_153 : f32 to vector<1x16xf32>
    %326 = arith.mulf %319, %325 : vector<1x16xf32>
    %327 = vector.broadcast %326 : vector<1x16xf32> to vector<16x16xf32>
    %328 = arith.mulf %302, %327 : vector<16x16xf32>
    %329 = vector.broadcast %324 : vector<1x16xf32> to vector<16x16xf32>
    %330 = arith.addf %328, %329 : vector<16x16xf32>
    %c7 = arith.constant 7 : index
    %c0_154 = arith.constant 0 : index
    %c0_155 = arith.constant 0 : index
    %331 = vector.load %arg0[%c7, %c0_154, %c0_155] : memref<23x16x32xi32, #tpu.memory_space<vmem>>, vector<1x16x32xi32>
    %332 = vector.shape_cast %331 : vector<1x16x32xi32> to vector<16x32xi32>
    %333 = vector.extract_strided_slice %332 {offsets = [0, 0], sizes = [16, 16], strides = [1, 1]} : vector<16x32xi32> to vector<16x16xi32>
    %c-2147483648_i32_156 = arith.constant -2147483648 : i32
    %334 = vector.broadcast %c-2147483648_i32_156 : i32 to vector<16x16xi32>
    %335 = arith.cmpi uge, %333, %334 : vector<16x16xi32>
    %cst_157 = arith.constant 0.000000e+00 : f32
    %336 = vector.broadcast %cst_157 : f32 to vector<16x16xf32>
    %337 = arith.cmpf ogt, %330, %336 : vector<16x16xf32>
    %338 = arith.andi %335, %337 : vector<16x16xi1>
    %cst_158 = arith.constant 0.000000e+00 : f32
    %339 = vector.broadcast %cst_158 : f32 to vector<16x16xf32>
    %340 = arith.select %338, %330, %339 : vector<16x16xi1>, vector<16x16xf32>
    %c0_159 = arith.constant 0 : index
    %c0_160 = arith.constant 0 : index
    %341 = vector.load %arg6[%c0_159, %c0_160] : memref<16x32xf32, #tpu.memory_space<vmem>>, vector<16x32xf32>
    %cst_161 = arith.constant dense<0.000000e+00> : vector<16x32xf32>
    %342 = tpu.matmul %340, %341, %cst_161 {dimension_numbers = #tpu.dot_dimension_numbers<[1], [0], [0], [1], [0, 0, 1, 1], [], []>} : vector<16x16xf32>, vector<16x32xf32>, vector<16x32xf32> -> vector<16x32xf32>
    %c0_162 = arith.constant 0 : index
    %c0_163 = arith.constant 0 : index
    %343 = vector.load %arg7[%c0_162, %c0_163] : memref<1x32xf32, #tpu.memory_space<vmem>>, vector<1x32xf32>
    %344 = vector.broadcast %343 : vector<1x32xf32> to vector<16x32xf32>
    %345 = arith.addf %342, %344 : vector<16x32xf32>
    %346 = arith.mulf %345, %345 : vector<16x32xf32>
    %347 = tpu.concatenate %345, %346 in 1 : vector<16x32xf32>, vector<16x32xf32> -> vector<16x64xf32>
    %cst_164 = arith.constant dense<0.000000e+00> : vector<64xf32>
    %348 = vector.multi_reduction <add>, %347, %cst_164 [0] : vector<16x64xf32> to vector<64xf32>
    %349 = vector.shape_cast %348 : vector<64xf32> to vector<1x64xf32>
    %cst_165 = arith.constant 1.600000e+01 : f32
    %350 = vector.broadcast %cst_165 : f32 to vector<1x64xf32>
    %351 = arith.divf %349, %350 : vector<1x64xf32>
    %352 = vector.extract_strided_slice %351 {offsets = [0, 0], sizes = [1, 32], strides = [1, 1]} : vector<1x64xf32> to vector<1x32xf32>
    %353 = vector.extract_strided_slice %351 {offsets = [0, 32], sizes = [1, 32], strides = [1, 1]} : vector<1x64xf32> to vector<1x32xf32>
    %354 = arith.mulf %352, %352 : vector<1x32xf32>
    %355 = arith.subf %353, %354 : vector<1x32xf32>
    %cst_166 = arith.constant 0.000000e+00 : f32
    %356 = vector.broadcast %cst_166 : f32 to vector<1x32xf32>
    %357 = arith.maximumf %355, %356 : vector<1x32xf32>
    %c0_167 = arith.constant 0 : index
    %c0_168 = arith.constant 0 : index
    %358 = vector.load %arg16[%c0_167, %c0_168] : memref<1x32xf32, #tpu.memory_space<vmem>>, vector<1x32xf32>
    %cst_169 = arith.constant 1.000000e-07 : f32
    %359 = vector.broadcast %cst_169 : f32 to vector<1x32xf32>
    %360 = arith.addf %357, %359 : vector<1x32xf32>
    %361 = math.rsqrt %360 : vector<1x32xf32>
    %362 = arith.mulf %358, %361 : vector<1x32xf32>
    %c0_170 = arith.constant 0 : index
    %c0_171 = arith.constant 0 : index
    %363 = vector.load %arg17[%c0_170, %c0_171] : memref<1x32xf32, #tpu.memory_space<vmem>>, vector<1x32xf32>
    %364 = arith.mulf %352, %362 : vector<1x32xf32>
    %365 = arith.subf %363, %364 : vector<1x32xf32>
    %cst_172 = arith.constant 2.000000e+00 : f32
    %366 = vector.broadcast %cst_172 : f32 to vector<1x32xf32>
    %367 = arith.mulf %365, %366 : vector<1x32xf32>
    %cst_173 = arith.constant 2.000000e+00 : f32
    %368 = vector.broadcast %cst_173 : f32 to vector<1x32xf32>
    %369 = arith.mulf %362, %368 : vector<1x32xf32>
    %370 = vector.broadcast %369 : vector<1x32xf32> to vector<16x32xf32>
    %371 = arith.mulf %345, %370 : vector<16x32xf32>
    %372 = vector.broadcast %367 : vector<1x32xf32> to vector<16x32xf32>
    %373 = arith.addf %371, %372 : vector<16x32xf32>
    %c8 = arith.constant 8 : index
    %c0_174 = arith.constant 0 : index
    %c0_175 = arith.constant 0 : index
    %374 = vector.load %arg0[%c8, %c0_174, %c0_175] : memref<23x16x32xi32, #tpu.memory_space<vmem>>, vector<1x16x32xi32>
    %375 = vector.shape_cast %374 : vector<1x16x32xi32> to vector<16x32xi32>
    %c-2147483648_i32_176 = arith.constant -2147483648 : i32
    %376 = vector.broadcast %c-2147483648_i32_176 : i32 to vector<16x32xi32>
    %377 = arith.cmpi uge, %375, %376 : vector<16x32xi32>
    %cst_177 = arith.constant 0.000000e+00 : f32
    %378 = vector.broadcast %cst_177 : f32 to vector<16x32xf32>
    %379 = arith.cmpf ogt, %373, %378 : vector<16x32xf32>
    %380 = arith.andi %377, %379 : vector<16x32xi1>
    %cst_178 = arith.constant 0.000000e+00 : f32
    %381 = vector.broadcast %cst_178 : f32 to vector<16x32xf32>
    %382 = arith.select %380, %373, %381 : vector<16x32xi1>, vector<16x32xf32>
    %c0_179 = arith.constant 0 : index
    %c0_180 = arith.constant 0 : index
    %383 = vector.load %arg8[%c0_179, %c0_180] : memref<32x12xf32, #tpu.memory_space<vmem>>, vector<32x12xf32>
    %cst_181 = arith.constant dense<0.000000e+00> : vector<16x12xf32>
    %384 = tpu.matmul %382, %383, %cst_181 {dimension_numbers = #tpu.dot_dimension_numbers<[1], [0], [0], [1], [0, 0, 1, 1], [], []>} : vector<16x32xf32>, vector<32x12xf32>, vector<16x12xf32> -> vector<16x12xf32>
    %c0_182 = arith.constant 0 : index
    %c0_183 = arith.constant 0 : index
    %385 = vector.load %arg9[%c0_182, %c0_183] : memref<1x12xf32, #tpu.memory_space<vmem>>, vector<1x12xf32>
    %386 = vector.broadcast %385 : vector<1x12xf32> to vector<16x12xf32>
    %387 = arith.addf %384, %386 : vector<16x12xf32>
    %388 = arith.mulf %387, %387 : vector<16x12xf32>
    %389 = tpu.concatenate %387, %388 in 1 : vector<16x12xf32>, vector<16x12xf32> -> vector<16x24xf32>
    %cst_184 = arith.constant dense<0.000000e+00> : vector<24xf32>
    %390 = vector.multi_reduction <add>, %389, %cst_184 [0] : vector<16x24xf32> to vector<24xf32>
    %391 = vector.shape_cast %390 : vector<24xf32> to vector<1x24xf32>
    %cst_185 = arith.constant 1.600000e+01 : f32
    %392 = vector.broadcast %cst_185 : f32 to vector<1x24xf32>
    %393 = arith.divf %391, %392 : vector<1x24xf32>
    %394 = vector.extract_strided_slice %393 {offsets = [0, 0], sizes = [1, 12], strides = [1, 1]} : vector<1x24xf32> to vector<1x12xf32>
    %395 = vector.extract_strided_slice %393 {offsets = [0, 12], sizes = [1, 12], strides = [1, 1]} : vector<1x24xf32> to vector<1x12xf32>
    %396 = arith.mulf %394, %394 : vector<1x12xf32>
    %397 = arith.subf %395, %396 : vector<1x12xf32>
    %cst_186 = arith.constant 0.000000e+00 : f32
    %398 = vector.broadcast %cst_186 : f32 to vector<1x12xf32>
    %399 = arith.maximumf %397, %398 : vector<1x12xf32>
    %c0_187 = arith.constant 0 : index
    %c0_188 = arith.constant 0 : index
    %400 = vector.load %arg18[%c0_187, %c0_188] : memref<1x12xf32, #tpu.memory_space<vmem>>, vector<1x12xf32>
    %cst_189 = arith.constant 1.000000e-07 : f32
    %401 = vector.broadcast %cst_189 : f32 to vector<1x12xf32>
    %402 = arith.addf %399, %401 : vector<1x12xf32>
    %403 = math.rsqrt %402 : vector<1x12xf32>
    %404 = arith.mulf %400, %403 : vector<1x12xf32>
    %c0_190 = arith.constant 0 : index
    %c0_191 = arith.constant 0 : index
    %405 = vector.load %arg19[%c0_190, %c0_191] : memref<1x12xf32, #tpu.memory_space<vmem>>, vector<1x12xf32>
    %406 = arith.mulf %394, %404 : vector<1x12xf32>
    %407 = arith.subf %405, %406 : vector<1x12xf32>
    %cst_192 = arith.constant 1.42857146 : f32
    %408 = vector.broadcast %cst_192 : f32 to vector<1x12xf32>
    %409 = arith.mulf %407, %408 : vector<1x12xf32>
    %cst_193 = arith.constant 1.42857146 : f32
    %410 = vector.broadcast %cst_193 : f32 to vector<1x12xf32>
    %411 = arith.mulf %404, %410 : vector<1x12xf32>
    %412 = vector.broadcast %411 : vector<1x12xf32> to vector<16x12xf32>
    %413 = arith.mulf %387, %412 : vector<16x12xf32>
    %414 = vector.broadcast %409 : vector<1x12xf32> to vector<16x12xf32>
    %415 = arith.addf %413, %414 : vector<16x12xf32>
    %c9 = arith.constant 9 : index
    %c0_194 = arith.constant 0 : index
    %c0_195 = arith.constant 0 : index
    %416 = vector.load %arg0[%c9, %c0_194, %c0_195] : memref<23x16x32xi32, #tpu.memory_space<vmem>>, vector<1x16x32xi32>
    %417 = vector.shape_cast %416 : vector<1x16x32xi32> to vector<16x32xi32>
    %418 = vector.extract_strided_slice %417 {offsets = [0, 0], sizes = [16, 12], strides = [1, 1]} : vector<16x32xi32> to vector<16x12xi32>
    %c1288490188_i32_196 = arith.constant 1288490188 : i32
    %419 = vector.broadcast %c1288490188_i32_196 : i32 to vector<16x12xi32>
    %420 = arith.cmpi uge, %418, %419 : vector<16x12xi32>
    %cst_197 = arith.constant 0.000000e+00 : f32
    %421 = vector.broadcast %cst_197 : f32 to vector<16x12xf32>
    %422 = arith.cmpf ogt, %415, %421 : vector<16x12xf32>
    %423 = arith.andi %420, %422 : vector<16x12xi1>
    %cst_198 = arith.constant 0.000000e+00 : f32
    %424 = vector.broadcast %cst_198 : f32 to vector<16x12xf32>
    %425 = arith.select %423, %415, %424 : vector<16x12xi1>, vector<16x12xf32>
    %c0_199 = arith.constant 0 : index
    %c0_200 = arith.constant 0 : index
    %426 = vector.load %arg10[%c0_199, %c0_200] : memref<12x8xf32, #tpu.memory_space<vmem>>, vector<12x8xf32>
    %cst_201 = arith.constant dense<0.000000e+00> : vector<16x8xf32>
    %427 = tpu.matmul %425, %426, %cst_201 {dimension_numbers = #tpu.dot_dimension_numbers<[1], [0], [0], [1], [0, 0, 1, 1], [], []>} : vector<16x12xf32>, vector<12x8xf32>, vector<16x8xf32> -> vector<16x8xf32>
    %c0_202 = arith.constant 0 : index
    %c0_203 = arith.constant 0 : index
    %428 = vector.load %arg11[%c0_202, %c0_203] : memref<1x8xf32, #tpu.memory_space<vmem>>, vector<1x8xf32>
    %429 = vector.broadcast %428 : vector<1x8xf32> to vector<16x8xf32>
    %430 = arith.addf %427, %429 : vector<16x8xf32>
    %cst_204 = arith.constant 1.42857146 : f32
    %431 = vector.broadcast %cst_204 : f32 to vector<16x8xf32>
    %432 = arith.mulf %430, %431 : vector<16x8xf32>
    %c10 = arith.constant 10 : index
    %c0_205 = arith.constant 0 : index
    %c0_206 = arith.constant 0 : index
    %433 = vector.load %arg0[%c10, %c0_205, %c0_206] : memref<23x16x32xi32, #tpu.memory_space<vmem>>, vector<1x16x32xi32>
    %434 = vector.shape_cast %433 : vector<1x16x32xi32> to vector<16x32xi32>
    %435 = vector.extract_strided_slice %434 {offsets = [0, 0], sizes = [16, 8], strides = [1, 1]} : vector<16x32xi32> to vector<16x8xi32>
    %c1288490188_i32_207 = arith.constant 1288490188 : i32
    %436 = vector.broadcast %c1288490188_i32_207 : i32 to vector<16x8xi32>
    %437 = arith.cmpi uge, %435, %436 : vector<16x8xi32>
    %cst_208 = arith.constant 0.000000e+00 : f32
    %438 = vector.broadcast %cst_208 : f32 to vector<16x8xf32>
    %439 = arith.cmpf ogt, %432, %438 : vector<16x8xf32>
    %440 = arith.andi %437, %439 : vector<16x8xi1>
    %cst_209 = arith.constant 0.000000e+00 : f32
    %441 = vector.broadcast %cst_209 : f32 to vector<16x8xf32>
    %442 = arith.select %440, %432, %441 : vector<16x8xi1>, vector<16x8xf32>
    %c0_210 = arith.constant 0 : index
    %c0_211 = arith.constant 0 : index
    %443 = vector.load %arg2[%c0_210, %c0_211] : memref<8x32xf32, #tpu.memory_space<vmem>>, vector<8x32xf32>
    %cst_212 = arith.constant dense<0.000000e+00> : vector<16x32xf32>
    %444 = tpu.matmul %442, %443, %cst_212 {dimension_numbers = #tpu.dot_dimension_numbers<[1], [0], [0], [1], [0, 0, 1, 1], [], []>} : vector<16x8xf32>, vector<8x32xf32>, vector<16x32xf32> -> vector<16x32xf32>
    %c0_213 = arith.constant 0 : index
    %c0_214 = arith.constant 0 : index
    %445 = vector.load %arg3[%c0_213, %c0_214] : memref<1x32xf32, #tpu.memory_space<vmem>>, vector<1x32xf32>
    %446 = vector.broadcast %445 : vector<1x32xf32> to vector<16x32xf32>
    %447 = arith.addf %444, %446 : vector<16x32xf32>
    %448 = arith.mulf %447, %447 : vector<16x32xf32>
    %449 = tpu.concatenate %447, %448 in 1 : vector<16x32xf32>, vector<16x32xf32> -> vector<16x64xf32>
    %cst_215 = arith.constant dense<0.000000e+00> : vector<64xf32>
    %450 = vector.multi_reduction <add>, %449, %cst_215 [0] : vector<16x64xf32> to vector<64xf32>
    %451 = vector.shape_cast %450 : vector<64xf32> to vector<1x64xf32>
    %cst_216 = arith.constant 1.600000e+01 : f32
    %452 = vector.broadcast %cst_216 : f32 to vector<1x64xf32>
    %453 = arith.divf %451, %452 : vector<1x64xf32>
    %454 = vector.extract_strided_slice %453 {offsets = [0, 0], sizes = [1, 32], strides = [1, 1]} : vector<1x64xf32> to vector<1x32xf32>
    %455 = vector.extract_strided_slice %453 {offsets = [0, 32], sizes = [1, 32], strides = [1, 1]} : vector<1x64xf32> to vector<1x32xf32>
    %456 = arith.mulf %454, %454 : vector<1x32xf32>
    %457 = arith.subf %455, %456 : vector<1x32xf32>
    %cst_217 = arith.constant 0.000000e+00 : f32
    %458 = vector.broadcast %cst_217 : f32 to vector<1x32xf32>
    %459 = arith.maximumf %457, %458 : vector<1x32xf32>
    %c0_218 = arith.constant 0 : index
    %c0_219 = arith.constant 0 : index
    %460 = vector.load %arg16[%c0_218, %c0_219] : memref<1x32xf32, #tpu.memory_space<vmem>>, vector<1x32xf32>
    %cst_220 = arith.constant 1.000000e-07 : f32
    %461 = vector.broadcast %cst_220 : f32 to vector<1x32xf32>
    %462 = arith.addf %459, %461 : vector<1x32xf32>
    %463 = math.rsqrt %462 : vector<1x32xf32>
    %464 = arith.mulf %460, %463 : vector<1x32xf32>
    %c0_221 = arith.constant 0 : index
    %c0_222 = arith.constant 0 : index
    %465 = vector.load %arg17[%c0_221, %c0_222] : memref<1x32xf32, #tpu.memory_space<vmem>>, vector<1x32xf32>
    %466 = arith.mulf %454, %464 : vector<1x32xf32>
    %467 = arith.subf %465, %466 : vector<1x32xf32>
    %cst_223 = arith.constant 1.42857146 : f32
    %468 = vector.broadcast %cst_223 : f32 to vector<1x32xf32>
    %469 = arith.mulf %467, %468 : vector<1x32xf32>
    %cst_224 = arith.constant 1.42857146 : f32
    %470 = vector.broadcast %cst_224 : f32 to vector<1x32xf32>
    %471 = arith.mulf %464, %470 : vector<1x32xf32>
    %472 = vector.broadcast %471 : vector<1x32xf32> to vector<16x32xf32>
    %473 = arith.mulf %447, %472 : vector<16x32xf32>
    %474 = vector.broadcast %469 : vector<1x32xf32> to vector<16x32xf32>
    %475 = arith.addf %473, %474 : vector<16x32xf32>
    %c11 = arith.constant 11 : index
    %c0_225 = arith.constant 0 : index
    %c0_226 = arith.constant 0 : index
    %476 = vector.load %arg0[%c11, %c0_225, %c0_226] : memref<23x16x32xi32, #tpu.memory_space<vmem>>, vector<1x16x32xi32>
    %477 = vector.shape_cast %476 : vector<1x16x32xi32> to vector<16x32xi32>
    %c1288490188_i32_227 = arith.constant 1288490188 : i32
    %478 = vector.broadcast %c1288490188_i32_227 : i32 to vector<16x32xi32>
    %479 = arith.cmpi uge, %477, %478 : vector<16x32xi32>
    %cst_228 = arith.constant 0.000000e+00 : f32
    %480 = vector.broadcast %cst_228 : f32 to vector<16x32xf32>
    %481 = arith.cmpf ogt, %475, %480 : vector<16x32xf32>
    %482 = arith.andi %479, %481 : vector<16x32xi1>
    %cst_229 = arith.constant 0.000000e+00 : f32
    %483 = vector.broadcast %cst_229 : f32 to vector<16x32xf32>
    %484 = arith.select %482, %475, %483 : vector<16x32xi1>, vector<16x32xf32>
    %c0_230 = arith.constant 0 : index
    %c0_231 = arith.constant 0 : index
    %485 = vector.load %arg4[%c0_230, %c0_231] : memref<32x16xf32, #tpu.memory_space<vmem>>, vector<32x16xf32>
    %cst_232 = arith.constant dense<0.000000e+00> : vector<16x16xf32>
    %486 = tpu.matmul %484, %485, %cst_232 {dimension_numbers = #tpu.dot_dimension_numbers<[1], [0], [0], [1], [0, 0, 1, 1], [], []>} : vector<16x32xf32>, vector<32x16xf32>, vector<16x16xf32> -> vector<16x16xf32>
    %c0_233 = arith.constant 0 : index
    %c0_234 = arith.constant 0 : index
    %487 = vector.load %arg5[%c0_233, %c0_234] : memref<1x16xf32, #tpu.memory_space<vmem>>, vector<1x16xf32>
    %488 = vector.broadcast %487 : vector<1x16xf32> to vector<16x16xf32>
    %489 = arith.addf %486, %488 : vector<16x16xf32>
    %490 = arith.mulf %489, %489 : vector<16x16xf32>
    %491 = tpu.concatenate %489, %490 in 1 : vector<16x16xf32>, vector<16x16xf32> -> vector<16x32xf32>
    %cst_235 = arith.constant dense<0.000000e+00> : vector<32xf32>
    %492 = vector.multi_reduction <add>, %491, %cst_235 [0] : vector<16x32xf32> to vector<32xf32>
    %493 = vector.shape_cast %492 : vector<32xf32> to vector<1x32xf32>
    %cst_236 = arith.constant 1.600000e+01 : f32
    %494 = vector.broadcast %cst_236 : f32 to vector<1x32xf32>
    %495 = arith.divf %493, %494 : vector<1x32xf32>
    %496 = vector.extract_strided_slice %495 {offsets = [0, 0], sizes = [1, 16], strides = [1, 1]} : vector<1x32xf32> to vector<1x16xf32>
    %497 = vector.extract_strided_slice %495 {offsets = [0, 16], sizes = [1, 16], strides = [1, 1]} : vector<1x32xf32> to vector<1x16xf32>
    %498 = arith.mulf %496, %496 : vector<1x16xf32>
    %499 = arith.subf %497, %498 : vector<1x16xf32>
    %cst_237 = arith.constant 0.000000e+00 : f32
    %500 = vector.broadcast %cst_237 : f32 to vector<1x16xf32>
    %501 = arith.maximumf %499, %500 : vector<1x16xf32>
    %c0_238 = arith.constant 0 : index
    %c0_239 = arith.constant 0 : index
    %502 = vector.load %arg14[%c0_238, %c0_239] : memref<1x16xf32, #tpu.memory_space<vmem>>, vector<1x16xf32>
    %cst_240 = arith.constant 1.000000e-07 : f32
    %503 = vector.broadcast %cst_240 : f32 to vector<1x16xf32>
    %504 = arith.addf %501, %503 : vector<1x16xf32>
    %505 = math.rsqrt %504 : vector<1x16xf32>
    %506 = arith.mulf %502, %505 : vector<1x16xf32>
    %c0_241 = arith.constant 0 : index
    %c0_242 = arith.constant 0 : index
    %507 = vector.load %arg15[%c0_241, %c0_242] : memref<1x16xf32, #tpu.memory_space<vmem>>, vector<1x16xf32>
    %508 = arith.mulf %496, %506 : vector<1x16xf32>
    %509 = arith.subf %507, %508 : vector<1x16xf32>
    %cst_243 = arith.constant 2.000000e+00 : f32
    %510 = vector.broadcast %cst_243 : f32 to vector<1x16xf32>
    %511 = arith.mulf %509, %510 : vector<1x16xf32>
    %cst_244 = arith.constant 2.000000e+00 : f32
    %512 = vector.broadcast %cst_244 : f32 to vector<1x16xf32>
    %513 = arith.mulf %506, %512 : vector<1x16xf32>
    %514 = vector.broadcast %513 : vector<1x16xf32> to vector<16x16xf32>
    %515 = arith.mulf %489, %514 : vector<16x16xf32>
    %516 = vector.broadcast %511 : vector<1x16xf32> to vector<16x16xf32>
    %517 = arith.addf %515, %516 : vector<16x16xf32>
    %c12 = arith.constant 12 : index
    %c0_245 = arith.constant 0 : index
    %c0_246 = arith.constant 0 : index
    %518 = vector.load %arg0[%c12, %c0_245, %c0_246] : memref<23x16x32xi32, #tpu.memory_space<vmem>>, vector<1x16x32xi32>
    %519 = vector.shape_cast %518 : vector<1x16x32xi32> to vector<16x32xi32>
    %520 = vector.extract_strided_slice %519 {offsets = [0, 0], sizes = [16, 16], strides = [1, 1]} : vector<16x32xi32> to vector<16x16xi32>
    %c-2147483648_i32_247 = arith.constant -2147483648 : i32
    %521 = vector.broadcast %c-2147483648_i32_247 : i32 to vector<16x16xi32>
    %522 = arith.cmpi uge, %520, %521 : vector<16x16xi32>
    %cst_248 = arith.constant 0.000000e+00 : f32
    %523 = vector.broadcast %cst_248 : f32 to vector<16x16xf32>
    %524 = arith.cmpf ogt, %517, %523 : vector<16x16xf32>
    %525 = arith.andi %522, %524 : vector<16x16xi1>
    %cst_249 = arith.constant 0.000000e+00 : f32
    %526 = vector.broadcast %cst_249 : f32 to vector<16x16xf32>
    %527 = arith.select %525, %517, %526 : vector<16x16xi1>, vector<16x16xf32>
    %c0_250 = arith.constant 0 : index
    %c0_251 = arith.constant 0 : index
    %528 = vector.load %arg6[%c0_250, %c0_251] : memref<16x32xf32, #tpu.memory_space<vmem>>, vector<16x32xf32>
    %cst_252 = arith.constant dense<0.000000e+00> : vector<16x32xf32>
    %529 = tpu.matmul %527, %528, %cst_252 {dimension_numbers = #tpu.dot_dimension_numbers<[1], [0], [0], [1], [0, 0, 1, 1], [], []>} : vector<16x16xf32>, vector<16x32xf32>, vector<16x32xf32> -> vector<16x32xf32>
    %c0_253 = arith.constant 0 : index
    %c0_254 = arith.constant 0 : index
    %530 = vector.load %arg7[%c0_253, %c0_254] : memref<1x32xf32, #tpu.memory_space<vmem>>, vector<1x32xf32>
    %531 = vector.broadcast %530 : vector<1x32xf32> to vector<16x32xf32>
    %532 = arith.addf %529, %531 : vector<16x32xf32>
    %533 = arith.mulf %532, %532 : vector<16x32xf32>
    %534 = tpu.concatenate %532, %533 in 1 : vector<16x32xf32>, vector<16x32xf32> -> vector<16x64xf32>
    %cst_255 = arith.constant dense<0.000000e+00> : vector<64xf32>
    %535 = vector.multi_reduction <add>, %534, %cst_255 [0] : vector<16x64xf32> to vector<64xf32>
    %536 = vector.shape_cast %535 : vector<64xf32> to vector<1x64xf32>
    %cst_256 = arith.constant 1.600000e+01 : f32
    %537 = vector.broadcast %cst_256 : f32 to vector<1x64xf32>
    %538 = arith.divf %536, %537 : vector<1x64xf32>
    %539 = vector.extract_strided_slice %538 {offsets = [0, 0], sizes = [1, 32], strides = [1, 1]} : vector<1x64xf32> to vector<1x32xf32>
    %540 = vector.extract_strided_slice %538 {offsets = [0, 32], sizes = [1, 32], strides = [1, 1]} : vector<1x64xf32> to vector<1x32xf32>
    %541 = arith.mulf %539, %539 : vector<1x32xf32>
    %542 = arith.subf %540, %541 : vector<1x32xf32>
    %cst_257 = arith.constant 0.000000e+00 : f32
    %543 = vector.broadcast %cst_257 : f32 to vector<1x32xf32>
    %544 = arith.maximumf %542, %543 : vector<1x32xf32>
    %c0_258 = arith.constant 0 : index
    %c0_259 = arith.constant 0 : index
    %545 = vector.load %arg16[%c0_258, %c0_259] : memref<1x32xf32, #tpu.memory_space<vmem>>, vector<1x32xf32>
    %cst_260 = arith.constant 1.000000e-07 : f32
    %546 = vector.broadcast %cst_260 : f32 to vector<1x32xf32>
    %547 = arith.addf %544, %546 : vector<1x32xf32>
    %548 = math.rsqrt %547 : vector<1x32xf32>
    %549 = arith.mulf %545, %548 : vector<1x32xf32>
    %c0_261 = arith.constant 0 : index
    %c0_262 = arith.constant 0 : index
    %550 = vector.load %arg17[%c0_261, %c0_262] : memref<1x32xf32, #tpu.memory_space<vmem>>, vector<1x32xf32>
    %551 = arith.mulf %539, %549 : vector<1x32xf32>
    %552 = arith.subf %550, %551 : vector<1x32xf32>
    %cst_263 = arith.constant 2.000000e+00 : f32
    %553 = vector.broadcast %cst_263 : f32 to vector<1x32xf32>
    %554 = arith.mulf %552, %553 : vector<1x32xf32>
    %cst_264 = arith.constant 2.000000e+00 : f32
    %555 = vector.broadcast %cst_264 : f32 to vector<1x32xf32>
    %556 = arith.mulf %549, %555 : vector<1x32xf32>
    %557 = vector.broadcast %556 : vector<1x32xf32> to vector<16x32xf32>
    %558 = arith.mulf %532, %557 : vector<16x32xf32>
    %559 = vector.broadcast %554 : vector<1x32xf32> to vector<16x32xf32>
    %560 = arith.addf %558, %559 : vector<16x32xf32>
    %c13 = arith.constant 13 : index
    %c0_265 = arith.constant 0 : index
    %c0_266 = arith.constant 0 : index
    %561 = vector.load %arg0[%c13, %c0_265, %c0_266] : memref<23x16x32xi32, #tpu.memory_space<vmem>>, vector<1x16x32xi32>
    %562 = vector.shape_cast %561 : vector<1x16x32xi32> to vector<16x32xi32>
    %c-2147483648_i32_267 = arith.constant -2147483648 : i32
    %563 = vector.broadcast %c-2147483648_i32_267 : i32 to vector<16x32xi32>
    %564 = arith.cmpi uge, %562, %563 : vector<16x32xi32>
    %cst_268 = arith.constant 0.000000e+00 : f32
    %565 = vector.broadcast %cst_268 : f32 to vector<16x32xf32>
    %566 = arith.cmpf ogt, %560, %565 : vector<16x32xf32>
    %567 = arith.andi %564, %566 : vector<16x32xi1>
    %cst_269 = arith.constant 0.000000e+00 : f32
    %568 = vector.broadcast %cst_269 : f32 to vector<16x32xf32>
    %569 = arith.select %567, %560, %568 : vector<16x32xi1>, vector<16x32xf32>
    %c0_270 = arith.constant 0 : index
    %c0_271 = arith.constant 0 : index
    %570 = vector.load %arg4[%c0_270, %c0_271] : memref<32x16xf32, #tpu.memory_space<vmem>>, vector<32x16xf32>
    %cst_272 = arith.constant dense<0.000000e+00> : vector<16x16xf32>
    %571 = tpu.matmul %569, %570, %cst_272 {dimension_numbers = #tpu.dot_dimension_numbers<[1], [0], [0], [1], [0, 0, 1, 1], [], []>} : vector<16x32xf32>, vector<32x16xf32>, vector<16x16xf32> -> vector<16x16xf32>
    %c0_273 = arith.constant 0 : index
    %c0_274 = arith.constant 0 : index
    %572 = vector.load %arg5[%c0_273, %c0_274] : memref<1x16xf32, #tpu.memory_space<vmem>>, vector<1x16xf32>
    %573 = vector.broadcast %572 : vector<1x16xf32> to vector<16x16xf32>
    %574 = arith.addf %571, %573 : vector<16x16xf32>
    %575 = arith.mulf %574, %574 : vector<16x16xf32>
    %576 = tpu.concatenate %574, %575 in 1 : vector<16x16xf32>, vector<16x16xf32> -> vector<16x32xf32>
    %cst_275 = arith.constant dense<0.000000e+00> : vector<32xf32>
    %577 = vector.multi_reduction <add>, %576, %cst_275 [0] : vector<16x32xf32> to vector<32xf32>
    %578 = vector.shape_cast %577 : vector<32xf32> to vector<1x32xf32>
    %cst_276 = arith.constant 1.600000e+01 : f32
    %579 = vector.broadcast %cst_276 : f32 to vector<1x32xf32>
    %580 = arith.divf %578, %579 : vector<1x32xf32>
    %581 = vector.extract_strided_slice %580 {offsets = [0, 0], sizes = [1, 16], strides = [1, 1]} : vector<1x32xf32> to vector<1x16xf32>
    %582 = vector.extract_strided_slice %580 {offsets = [0, 16], sizes = [1, 16], strides = [1, 1]} : vector<1x32xf32> to vector<1x16xf32>
    %583 = arith.mulf %581, %581 : vector<1x16xf32>
    %584 = arith.subf %582, %583 : vector<1x16xf32>
    %cst_277 = arith.constant 0.000000e+00 : f32
    %585 = vector.broadcast %cst_277 : f32 to vector<1x16xf32>
    %586 = arith.maximumf %584, %585 : vector<1x16xf32>
    %c0_278 = arith.constant 0 : index
    %c0_279 = arith.constant 0 : index
    %587 = vector.load %arg14[%c0_278, %c0_279] : memref<1x16xf32, #tpu.memory_space<vmem>>, vector<1x16xf32>
    %cst_280 = arith.constant 1.000000e-07 : f32
    %588 = vector.broadcast %cst_280 : f32 to vector<1x16xf32>
    %589 = arith.addf %586, %588 : vector<1x16xf32>
    %590 = math.rsqrt %589 : vector<1x16xf32>
    %591 = arith.mulf %587, %590 : vector<1x16xf32>
    %c0_281 = arith.constant 0 : index
    %c0_282 = arith.constant 0 : index
    %592 = vector.load %arg15[%c0_281, %c0_282] : memref<1x16xf32, #tpu.memory_space<vmem>>, vector<1x16xf32>
    %593 = arith.mulf %581, %591 : vector<1x16xf32>
    %594 = arith.subf %592, %593 : vector<1x16xf32>
    %cst_283 = arith.constant 2.000000e+00 : f32
    %595 = vector.broadcast %cst_283 : f32 to vector<1x16xf32>
    %596 = arith.mulf %594, %595 : vector<1x16xf32>
    %cst_284 = arith.constant 2.000000e+00 : f32
    %597 = vector.broadcast %cst_284 : f32 to vector<1x16xf32>
    %598 = arith.mulf %591, %597 : vector<1x16xf32>
    %599 = vector.broadcast %598 : vector<1x16xf32> to vector<16x16xf32>
    %600 = arith.mulf %574, %599 : vector<16x16xf32>
    %601 = vector.broadcast %596 : vector<1x16xf32> to vector<16x16xf32>
    %602 = arith.addf %600, %601 : vector<16x16xf32>
    %c14 = arith.constant 14 : index
    %c0_285 = arith.constant 0 : index
    %c0_286 = arith.constant 0 : index
    %603 = vector.load %arg0[%c14, %c0_285, %c0_286] : memref<23x16x32xi32, #tpu.memory_space<vmem>>, vector<1x16x32xi32>
    %604 = vector.shape_cast %603 : vector<1x16x32xi32> to vector<16x32xi32>
    %605 = vector.extract_strided_slice %604 {offsets = [0, 0], sizes = [16, 16], strides = [1, 1]} : vector<16x32xi32> to vector<16x16xi32>
    %c-2147483648_i32_287 = arith.constant -2147483648 : i32
    %606 = vector.broadcast %c-2147483648_i32_287 : i32 to vector<16x16xi32>
    %607 = arith.cmpi uge, %605, %606 : vector<16x16xi32>
    %cst_288 = arith.constant 0.000000e+00 : f32
    %608 = vector.broadcast %cst_288 : f32 to vector<16x16xf32>
    %609 = arith.cmpf ogt, %602, %608 : vector<16x16xf32>
    %610 = arith.andi %607, %609 : vector<16x16xi1>
    %cst_289 = arith.constant 0.000000e+00 : f32
    %611 = vector.broadcast %cst_289 : f32 to vector<16x16xf32>
    %612 = arith.select %610, %602, %611 : vector<16x16xi1>, vector<16x16xf32>
    %c0_290 = arith.constant 0 : index
    %c0_291 = arith.constant 0 : index
    %613 = vector.load %arg6[%c0_290, %c0_291] : memref<16x32xf32, #tpu.memory_space<vmem>>, vector<16x32xf32>
    %cst_292 = arith.constant dense<0.000000e+00> : vector<16x32xf32>
    %614 = tpu.matmul %612, %613, %cst_292 {dimension_numbers = #tpu.dot_dimension_numbers<[1], [0], [0], [1], [0, 0, 1, 1], [], []>} : vector<16x16xf32>, vector<16x32xf32>, vector<16x32xf32> -> vector<16x32xf32>
    %c0_293 = arith.constant 0 : index
    %c0_294 = arith.constant 0 : index
    %615 = vector.load %arg7[%c0_293, %c0_294] : memref<1x32xf32, #tpu.memory_space<vmem>>, vector<1x32xf32>
    %616 = vector.broadcast %615 : vector<1x32xf32> to vector<16x32xf32>
    %617 = arith.addf %614, %616 : vector<16x32xf32>
    %618 = arith.mulf %617, %617 : vector<16x32xf32>
    %619 = tpu.concatenate %617, %618 in 1 : vector<16x32xf32>, vector<16x32xf32> -> vector<16x64xf32>
    %cst_295 = arith.constant dense<0.000000e+00> : vector<64xf32>
    %620 = vector.multi_reduction <add>, %619, %cst_295 [0] : vector<16x64xf32> to vector<64xf32>
    %621 = vector.shape_cast %620 : vector<64xf32> to vector<1x64xf32>
    %cst_296 = arith.constant 1.600000e+01 : f32
    %622 = vector.broadcast %cst_296 : f32 to vector<1x64xf32>
    %623 = arith.divf %621, %622 : vector<1x64xf32>
    %624 = vector.extract_strided_slice %623 {offsets = [0, 0], sizes = [1, 32], strides = [1, 1]} : vector<1x64xf32> to vector<1x32xf32>
    %625 = vector.extract_strided_slice %623 {offsets = [0, 32], sizes = [1, 32], strides = [1, 1]} : vector<1x64xf32> to vector<1x32xf32>
    %626 = arith.mulf %624, %624 : vector<1x32xf32>
    %627 = arith.subf %625, %626 : vector<1x32xf32>
    %cst_297 = arith.constant 0.000000e+00 : f32
    %628 = vector.broadcast %cst_297 : f32 to vector<1x32xf32>
    %629 = arith.maximumf %627, %628 : vector<1x32xf32>
    %c0_298 = arith.constant 0 : index
    %c0_299 = arith.constant 0 : index
    %630 = vector.load %arg16[%c0_298, %c0_299] : memref<1x32xf32, #tpu.memory_space<vmem>>, vector<1x32xf32>
    %cst_300 = arith.constant 1.000000e-07 : f32
    %631 = vector.broadcast %cst_300 : f32 to vector<1x32xf32>
    %632 = arith.addf %629, %631 : vector<1x32xf32>
    %633 = math.rsqrt %632 : vector<1x32xf32>
    %634 = arith.mulf %630, %633 : vector<1x32xf32>
    %c0_301 = arith.constant 0 : index
    %c0_302 = arith.constant 0 : index
    %635 = vector.load %arg17[%c0_301, %c0_302] : memref<1x32xf32, #tpu.memory_space<vmem>>, vector<1x32xf32>
    %636 = arith.mulf %624, %634 : vector<1x32xf32>
    %637 = arith.subf %635, %636 : vector<1x32xf32>
    %cst_303 = arith.constant 2.000000e+00 : f32
    %638 = vector.broadcast %cst_303 : f32 to vector<1x32xf32>
    %639 = arith.mulf %637, %638 : vector<1x32xf32>
    %cst_304 = arith.constant 2.000000e+00 : f32
    %640 = vector.broadcast %cst_304 : f32 to vector<1x32xf32>
    %641 = arith.mulf %634, %640 : vector<1x32xf32>
    %642 = vector.broadcast %641 : vector<1x32xf32> to vector<16x32xf32>
    %643 = arith.mulf %617, %642 : vector<16x32xf32>
    %644 = vector.broadcast %639 : vector<1x32xf32> to vector<16x32xf32>
    %645 = arith.addf %643, %644 : vector<16x32xf32>
    %c15 = arith.constant 15 : index
    %c0_305 = arith.constant 0 : index
    %c0_306 = arith.constant 0 : index
    %646 = vector.load %arg0[%c15, %c0_305, %c0_306] : memref<23x16x32xi32, #tpu.memory_space<vmem>>, vector<1x16x32xi32>
    %647 = vector.shape_cast %646 : vector<1x16x32xi32> to vector<16x32xi32>
    %c-2147483648_i32_307 = arith.constant -2147483648 : i32
    %648 = vector.broadcast %c-2147483648_i32_307 : i32 to vector<16x32xi32>
    %649 = arith.cmpi uge, %647, %648 : vector<16x32xi32>
    %cst_308 = arith.constant 0.000000e+00 : f32
    %650 = vector.broadcast %cst_308 : f32 to vector<16x32xf32>
    %651 = arith.cmpf ogt, %645, %650 : vector<16x32xf32>
    %652 = arith.andi %649, %651 : vector<16x32xi1>
    %cst_309 = arith.constant 0.000000e+00 : f32
    %653 = vector.broadcast %cst_309 : f32 to vector<16x32xf32>
    %654 = arith.select %652, %645, %653 : vector<16x32xi1>, vector<16x32xf32>
    %c0_310 = arith.constant 0 : index
    %c0_311 = arith.constant 0 : index
    %655 = vector.load %arg4[%c0_310, %c0_311] : memref<32x16xf32, #tpu.memory_space<vmem>>, vector<32x16xf32>
    %cst_312 = arith.constant dense<0.000000e+00> : vector<16x16xf32>
    %656 = tpu.matmul %654, %655, %cst_312 {dimension_numbers = #tpu.dot_dimension_numbers<[1], [0], [0], [1], [0, 0, 1, 1], [], []>} : vector<16x32xf32>, vector<32x16xf32>, vector<16x16xf32> -> vector<16x16xf32>
    %c0_313 = arith.constant 0 : index
    %c0_314 = arith.constant 0 : index
    %657 = vector.load %arg5[%c0_313, %c0_314] : memref<1x16xf32, #tpu.memory_space<vmem>>, vector<1x16xf32>
    %658 = vector.broadcast %657 : vector<1x16xf32> to vector<16x16xf32>
    %659 = arith.addf %656, %658 : vector<16x16xf32>
    %660 = arith.mulf %659, %659 : vector<16x16xf32>
    %661 = tpu.concatenate %659, %660 in 1 : vector<16x16xf32>, vector<16x16xf32> -> vector<16x32xf32>
    %cst_315 = arith.constant dense<0.000000e+00> : vector<32xf32>
    %662 = vector.multi_reduction <add>, %661, %cst_315 [0] : vector<16x32xf32> to vector<32xf32>
    %663 = vector.shape_cast %662 : vector<32xf32> to vector<1x32xf32>
    %cst_316 = arith.constant 1.600000e+01 : f32
    %664 = vector.broadcast %cst_316 : f32 to vector<1x32xf32>
    %665 = arith.divf %663, %664 : vector<1x32xf32>
    %666 = vector.extract_strided_slice %665 {offsets = [0, 0], sizes = [1, 16], strides = [1, 1]} : vector<1x32xf32> to vector<1x16xf32>
    %667 = vector.extract_strided_slice %665 {offsets = [0, 16], sizes = [1, 16], strides = [1, 1]} : vector<1x32xf32> to vector<1x16xf32>
    %668 = arith.mulf %666, %666 : vector<1x16xf32>
    %669 = arith.subf %667, %668 : vector<1x16xf32>
    %cst_317 = arith.constant 0.000000e+00 : f32
    %670 = vector.broadcast %cst_317 : f32 to vector<1x16xf32>
    %671 = arith.maximumf %669, %670 : vector<1x16xf32>
    %c0_318 = arith.constant 0 : index
    %c0_319 = arith.constant 0 : index
    %672 = vector.load %arg14[%c0_318, %c0_319] : memref<1x16xf32, #tpu.memory_space<vmem>>, vector<1x16xf32>
    %cst_320 = arith.constant 1.000000e-07 : f32
    %673 = vector.broadcast %cst_320 : f32 to vector<1x16xf32>
    %674 = arith.addf %671, %673 : vector<1x16xf32>
    %675 = math.rsqrt %674 : vector<1x16xf32>
    %676 = arith.mulf %672, %675 : vector<1x16xf32>
    %c0_321 = arith.constant 0 : index
    %c0_322 = arith.constant 0 : index
    %677 = vector.load %arg15[%c0_321, %c0_322] : memref<1x16xf32, #tpu.memory_space<vmem>>, vector<1x16xf32>
    %678 = arith.mulf %666, %676 : vector<1x16xf32>
    %679 = arith.subf %677, %678 : vector<1x16xf32>
    %cst_323 = arith.constant 2.000000e+00 : f32
    %680 = vector.broadcast %cst_323 : f32 to vector<1x16xf32>
    %681 = arith.mulf %679, %680 : vector<1x16xf32>
    %cst_324 = arith.constant 2.000000e+00 : f32
    %682 = vector.broadcast %cst_324 : f32 to vector<1x16xf32>
    %683 = arith.mulf %676, %682 : vector<1x16xf32>
    %684 = vector.broadcast %683 : vector<1x16xf32> to vector<16x16xf32>
    %685 = arith.mulf %659, %684 : vector<16x16xf32>
    %686 = vector.broadcast %681 : vector<1x16xf32> to vector<16x16xf32>
    %687 = arith.addf %685, %686 : vector<16x16xf32>
    %c16 = arith.constant 16 : index
    %c0_325 = arith.constant 0 : index
    %c0_326 = arith.constant 0 : index
    %688 = vector.load %arg0[%c16, %c0_325, %c0_326] : memref<23x16x32xi32, #tpu.memory_space<vmem>>, vector<1x16x32xi32>
    %689 = vector.shape_cast %688 : vector<1x16x32xi32> to vector<16x32xi32>
    %690 = vector.extract_strided_slice %689 {offsets = [0, 0], sizes = [16, 16], strides = [1, 1]} : vector<16x32xi32> to vector<16x16xi32>
    %c-2147483648_i32_327 = arith.constant -2147483648 : i32
    %691 = vector.broadcast %c-2147483648_i32_327 : i32 to vector<16x16xi32>
    %692 = arith.cmpi uge, %690, %691 : vector<16x16xi32>
    %cst_328 = arith.constant 0.000000e+00 : f32
    %693 = vector.broadcast %cst_328 : f32 to vector<16x16xf32>
    %694 = arith.cmpf ogt, %687, %693 : vector<16x16xf32>
    %695 = arith.andi %692, %694 : vector<16x16xi1>
    %cst_329 = arith.constant 0.000000e+00 : f32
    %696 = vector.broadcast %cst_329 : f32 to vector<16x16xf32>
    %697 = arith.select %695, %687, %696 : vector<16x16xi1>, vector<16x16xf32>
    %c0_330 = arith.constant 0 : index
    %c0_331 = arith.constant 0 : index
    %698 = vector.load %arg6[%c0_330, %c0_331] : memref<16x32xf32, #tpu.memory_space<vmem>>, vector<16x32xf32>
    %cst_332 = arith.constant dense<0.000000e+00> : vector<16x32xf32>
    %699 = tpu.matmul %697, %698, %cst_332 {dimension_numbers = #tpu.dot_dimension_numbers<[1], [0], [0], [1], [0, 0, 1, 1], [], []>} : vector<16x16xf32>, vector<16x32xf32>, vector<16x32xf32> -> vector<16x32xf32>
    %c0_333 = arith.constant 0 : index
    %c0_334 = arith.constant 0 : index
    %700 = vector.load %arg7[%c0_333, %c0_334] : memref<1x32xf32, #tpu.memory_space<vmem>>, vector<1x32xf32>
    %701 = vector.broadcast %700 : vector<1x32xf32> to vector<16x32xf32>
    %702 = arith.addf %699, %701 : vector<16x32xf32>
    %703 = arith.mulf %702, %702 : vector<16x32xf32>
    %704 = tpu.concatenate %702, %703 in 1 : vector<16x32xf32>, vector<16x32xf32> -> vector<16x64xf32>
    %cst_335 = arith.constant dense<0.000000e+00> : vector<64xf32>
    %705 = vector.multi_reduction <add>, %704, %cst_335 [0] : vector<16x64xf32> to vector<64xf32>
    %706 = vector.shape_cast %705 : vector<64xf32> to vector<1x64xf32>
    %cst_336 = arith.constant 1.600000e+01 : f32
    %707 = vector.broadcast %cst_336 : f32 to vector<1x64xf32>
    %708 = arith.divf %706, %707 : vector<1x64xf32>
    %709 = vector.extract_strided_slice %708 {offsets = [0, 0], sizes = [1, 32], strides = [1, 1]} : vector<1x64xf32> to vector<1x32xf32>
    %710 = vector.extract_strided_slice %708 {offsets = [0, 32], sizes = [1, 32], strides = [1, 1]} : vector<1x64xf32> to vector<1x32xf32>
    %711 = arith.mulf %709, %709 : vector<1x32xf32>
    %712 = arith.subf %710, %711 : vector<1x32xf32>
    %cst_337 = arith.constant 0.000000e+00 : f32
    %713 = vector.broadcast %cst_337 : f32 to vector<1x32xf32>
    %714 = arith.maximumf %712, %713 : vector<1x32xf32>
    %c0_338 = arith.constant 0 : index
    %c0_339 = arith.constant 0 : index
    %715 = vector.load %arg16[%c0_338, %c0_339] : memref<1x32xf32, #tpu.memory_space<vmem>>, vector<1x32xf32>
    %cst_340 = arith.constant 1.000000e-07 : f32
    %716 = vector.broadcast %cst_340 : f32 to vector<1x32xf32>
    %717 = arith.addf %714, %716 : vector<1x32xf32>
    %718 = math.rsqrt %717 : vector<1x32xf32>
    %719 = arith.mulf %715, %718 : vector<1x32xf32>
    %c0_341 = arith.constant 0 : index
    %c0_342 = arith.constant 0 : index
    %720 = vector.load %arg17[%c0_341, %c0_342] : memref<1x32xf32, #tpu.memory_space<vmem>>, vector<1x32xf32>
    %721 = arith.mulf %709, %719 : vector<1x32xf32>
    %722 = arith.subf %720, %721 : vector<1x32xf32>
    %cst_343 = arith.constant 2.000000e+00 : f32
    %723 = vector.broadcast %cst_343 : f32 to vector<1x32xf32>
    %724 = arith.mulf %722, %723 : vector<1x32xf32>
    %cst_344 = arith.constant 2.000000e+00 : f32
    %725 = vector.broadcast %cst_344 : f32 to vector<1x32xf32>
    %726 = arith.mulf %719, %725 : vector<1x32xf32>
    %727 = vector.broadcast %726 : vector<1x32xf32> to vector<16x32xf32>
    %728 = arith.mulf %702, %727 : vector<16x32xf32>
    %729 = vector.broadcast %724 : vector<1x32xf32> to vector<16x32xf32>
    %730 = arith.addf %728, %729 : vector<16x32xf32>
    %c17 = arith.constant 17 : index
    %c0_345 = arith.constant 0 : index
    %c0_346 = arith.constant 0 : index
    %731 = vector.load %arg0[%c17, %c0_345, %c0_346] : memref<23x16x32xi32, #tpu.memory_space<vmem>>, vector<1x16x32xi32>
    %732 = vector.shape_cast %731 : vector<1x16x32xi32> to vector<16x32xi32>
    %c-2147483648_i32_347 = arith.constant -2147483648 : i32
    %733 = vector.broadcast %c-2147483648_i32_347 : i32 to vector<16x32xi32>
    %734 = arith.cmpi uge, %732, %733 : vector<16x32xi32>
    %cst_348 = arith.constant 0.000000e+00 : f32
    %735 = vector.broadcast %cst_348 : f32 to vector<16x32xf32>
    %736 = arith.cmpf ogt, %730, %735 : vector<16x32xf32>
    %737 = arith.andi %734, %736 : vector<16x32xi1>
    %cst_349 = arith.constant 0.000000e+00 : f32
    %738 = vector.broadcast %cst_349 : f32 to vector<16x32xf32>
    %739 = arith.select %737, %730, %738 : vector<16x32xi1>, vector<16x32xf32>
    %c0_350 = arith.constant 0 : index
    %c0_351 = arith.constant 0 : index
    %740 = vector.load %arg4[%c0_350, %c0_351] : memref<32x16xf32, #tpu.memory_space<vmem>>, vector<32x16xf32>
    %cst_352 = arith.constant dense<0.000000e+00> : vector<16x16xf32>
    %741 = tpu.matmul %739, %740, %cst_352 {dimension_numbers = #tpu.dot_dimension_numbers<[1], [0], [0], [1], [0, 0, 1, 1], [], []>} : vector<16x32xf32>, vector<32x16xf32>, vector<16x16xf32> -> vector<16x16xf32>
    %c0_353 = arith.constant 0 : index
    %c0_354 = arith.constant 0 : index
    %742 = vector.load %arg5[%c0_353, %c0_354] : memref<1x16xf32, #tpu.memory_space<vmem>>, vector<1x16xf32>
    %743 = vector.broadcast %742 : vector<1x16xf32> to vector<16x16xf32>
    %744 = arith.addf %741, %743 : vector<16x16xf32>
    %745 = arith.mulf %744, %744 : vector<16x16xf32>
    %746 = tpu.concatenate %744, %745 in 1 : vector<16x16xf32>, vector<16x16xf32> -> vector<16x32xf32>
    %cst_355 = arith.constant dense<0.000000e+00> : vector<32xf32>
    %747 = vector.multi_reduction <add>, %746, %cst_355 [0] : vector<16x32xf32> to vector<32xf32>
    %748 = vector.shape_cast %747 : vector<32xf32> to vector<1x32xf32>
    %cst_356 = arith.constant 1.600000e+01 : f32
    %749 = vector.broadcast %cst_356 : f32 to vector<1x32xf32>
    %750 = arith.divf %748, %749 : vector<1x32xf32>
    %751 = vector.extract_strided_slice %750 {offsets = [0, 0], sizes = [1, 16], strides = [1, 1]} : vector<1x32xf32> to vector<1x16xf32>
    %752 = vector.extract_strided_slice %750 {offsets = [0, 16], sizes = [1, 16], strides = [1, 1]} : vector<1x32xf32> to vector<1x16xf32>
    %753 = arith.mulf %751, %751 : vector<1x16xf32>
    %754 = arith.subf %752, %753 : vector<1x16xf32>
    %cst_357 = arith.constant 0.000000e+00 : f32
    %755 = vector.broadcast %cst_357 : f32 to vector<1x16xf32>
    %756 = arith.maximumf %754, %755 : vector<1x16xf32>
    %c0_358 = arith.constant 0 : index
    %c0_359 = arith.constant 0 : index
    %757 = vector.load %arg14[%c0_358, %c0_359] : memref<1x16xf32, #tpu.memory_space<vmem>>, vector<1x16xf32>
    %cst_360 = arith.constant 1.000000e-07 : f32
    %758 = vector.broadcast %cst_360 : f32 to vector<1x16xf32>
    %759 = arith.addf %756, %758 : vector<1x16xf32>
    %760 = math.rsqrt %759 : vector<1x16xf32>
    %761 = arith.mulf %757, %760 : vector<1x16xf32>
    %c0_361 = arith.constant 0 : index
    %c0_362 = arith.constant 0 : index
    %762 = vector.load %arg15[%c0_361, %c0_362] : memref<1x16xf32, #tpu.memory_space<vmem>>, vector<1x16xf32>
    %763 = arith.mulf %751, %761 : vector<1x16xf32>
    %764 = arith.subf %762, %763 : vector<1x16xf32>
    %cst_363 = arith.constant 2.000000e+00 : f32
    %765 = vector.broadcast %cst_363 : f32 to vector<1x16xf32>
    %766 = arith.mulf %764, %765 : vector<1x16xf32>
    %cst_364 = arith.constant 2.000000e+00 : f32
    %767 = vector.broadcast %cst_364 : f32 to vector<1x16xf32>
    %768 = arith.mulf %761, %767 : vector<1x16xf32>
    %769 = vector.broadcast %768 : vector<1x16xf32> to vector<16x16xf32>
    %770 = arith.mulf %744, %769 : vector<16x16xf32>
    %771 = vector.broadcast %766 : vector<1x16xf32> to vector<16x16xf32>
    %772 = arith.addf %770, %771 : vector<16x16xf32>
    %c18 = arith.constant 18 : index
    %c0_365 = arith.constant 0 : index
    %c0_366 = arith.constant 0 : index
    %773 = vector.load %arg0[%c18, %c0_365, %c0_366] : memref<23x16x32xi32, #tpu.memory_space<vmem>>, vector<1x16x32xi32>
    %774 = vector.shape_cast %773 : vector<1x16x32xi32> to vector<16x32xi32>
    %775 = vector.extract_strided_slice %774 {offsets = [0, 0], sizes = [16, 16], strides = [1, 1]} : vector<16x32xi32> to vector<16x16xi32>
    %c-2147483648_i32_367 = arith.constant -2147483648 : i32
    %776 = vector.broadcast %c-2147483648_i32_367 : i32 to vector<16x16xi32>
    %777 = arith.cmpi uge, %775, %776 : vector<16x16xi32>
    %cst_368 = arith.constant 0.000000e+00 : f32
    %778 = vector.broadcast %cst_368 : f32 to vector<16x16xf32>
    %779 = arith.cmpf ogt, %772, %778 : vector<16x16xf32>
    %780 = arith.andi %777, %779 : vector<16x16xi1>
    %cst_369 = arith.constant 0.000000e+00 : f32
    %781 = vector.broadcast %cst_369 : f32 to vector<16x16xf32>
    %782 = arith.select %780, %772, %781 : vector<16x16xi1>, vector<16x16xf32>
    %c0_370 = arith.constant 0 : index
    %c0_371 = arith.constant 0 : index
    %783 = vector.load %arg6[%c0_370, %c0_371] : memref<16x32xf32, #tpu.memory_space<vmem>>, vector<16x32xf32>
    %cst_372 = arith.constant dense<0.000000e+00> : vector<16x32xf32>
    %784 = tpu.matmul %782, %783, %cst_372 {dimension_numbers = #tpu.dot_dimension_numbers<[1], [0], [0], [1], [0, 0, 1, 1], [], []>} : vector<16x16xf32>, vector<16x32xf32>, vector<16x32xf32> -> vector<16x32xf32>
    %c0_373 = arith.constant 0 : index
    %c0_374 = arith.constant 0 : index
    %785 = vector.load %arg7[%c0_373, %c0_374] : memref<1x32xf32, #tpu.memory_space<vmem>>, vector<1x32xf32>
    %786 = vector.broadcast %785 : vector<1x32xf32> to vector<16x32xf32>
    %787 = arith.addf %784, %786 : vector<16x32xf32>
    %788 = arith.mulf %787, %787 : vector<16x32xf32>
    %789 = tpu.concatenate %787, %788 in 1 : vector<16x32xf32>, vector<16x32xf32> -> vector<16x64xf32>
    %cst_375 = arith.constant dense<0.000000e+00> : vector<64xf32>
    %790 = vector.multi_reduction <add>, %789, %cst_375 [0] : vector<16x64xf32> to vector<64xf32>
    %791 = vector.shape_cast %790 : vector<64xf32> to vector<1x64xf32>
    %cst_376 = arith.constant 1.600000e+01 : f32
    %792 = vector.broadcast %cst_376 : f32 to vector<1x64xf32>
    %793 = arith.divf %791, %792 : vector<1x64xf32>
    %794 = vector.extract_strided_slice %793 {offsets = [0, 0], sizes = [1, 32], strides = [1, 1]} : vector<1x64xf32> to vector<1x32xf32>
    %795 = vector.extract_strided_slice %793 {offsets = [0, 32], sizes = [1, 32], strides = [1, 1]} : vector<1x64xf32> to vector<1x32xf32>
    %796 = arith.mulf %794, %794 : vector<1x32xf32>
    %797 = arith.subf %795, %796 : vector<1x32xf32>
    %cst_377 = arith.constant 0.000000e+00 : f32
    %798 = vector.broadcast %cst_377 : f32 to vector<1x32xf32>
    %799 = arith.maximumf %797, %798 : vector<1x32xf32>
    %c0_378 = arith.constant 0 : index
    %c0_379 = arith.constant 0 : index
    %800 = vector.load %arg16[%c0_378, %c0_379] : memref<1x32xf32, #tpu.memory_space<vmem>>, vector<1x32xf32>
    %cst_380 = arith.constant 1.000000e-07 : f32
    %801 = vector.broadcast %cst_380 : f32 to vector<1x32xf32>
    %802 = arith.addf %799, %801 : vector<1x32xf32>
    %803 = math.rsqrt %802 : vector<1x32xf32>
    %804 = arith.mulf %800, %803 : vector<1x32xf32>
    %c0_381 = arith.constant 0 : index
    %c0_382 = arith.constant 0 : index
    %805 = vector.load %arg17[%c0_381, %c0_382] : memref<1x32xf32, #tpu.memory_space<vmem>>, vector<1x32xf32>
    %806 = arith.mulf %794, %804 : vector<1x32xf32>
    %807 = arith.subf %805, %806 : vector<1x32xf32>
    %cst_383 = arith.constant 2.000000e+00 : f32
    %808 = vector.broadcast %cst_383 : f32 to vector<1x32xf32>
    %809 = arith.mulf %807, %808 : vector<1x32xf32>
    %cst_384 = arith.constant 2.000000e+00 : f32
    %810 = vector.broadcast %cst_384 : f32 to vector<1x32xf32>
    %811 = arith.mulf %804, %810 : vector<1x32xf32>
    %812 = vector.broadcast %811 : vector<1x32xf32> to vector<16x32xf32>
    %813 = arith.mulf %787, %812 : vector<16x32xf32>
    %814 = vector.broadcast %809 : vector<1x32xf32> to vector<16x32xf32>
    %815 = arith.addf %813, %814 : vector<16x32xf32>
    %c19 = arith.constant 19 : index
    %c0_385 = arith.constant 0 : index
    %c0_386 = arith.constant 0 : index
    %816 = vector.load %arg0[%c19, %c0_385, %c0_386] : memref<23x16x32xi32, #tpu.memory_space<vmem>>, vector<1x16x32xi32>
    %817 = vector.shape_cast %816 : vector<1x16x32xi32> to vector<16x32xi32>
    %c-2147483648_i32_387 = arith.constant -2147483648 : i32
    %818 = vector.broadcast %c-2147483648_i32_387 : i32 to vector<16x32xi32>
    %819 = arith.cmpi uge, %817, %818 : vector<16x32xi32>
    %cst_388 = arith.constant 0.000000e+00 : f32
    %820 = vector.broadcast %cst_388 : f32 to vector<16x32xf32>
    %821 = arith.cmpf ogt, %815, %820 : vector<16x32xf32>
    %822 = arith.andi %819, %821 : vector<16x32xi1>
    %cst_389 = arith.constant 0.000000e+00 : f32
    %823 = vector.broadcast %cst_389 : f32 to vector<16x32xf32>
    %824 = arith.select %822, %815, %823 : vector<16x32xi1>, vector<16x32xf32>
    %c0_390 = arith.constant 0 : index
    %c0_391 = arith.constant 0 : index
    %825 = vector.load %arg8[%c0_390, %c0_391] : memref<32x12xf32, #tpu.memory_space<vmem>>, vector<32x12xf32>
    %cst_392 = arith.constant dense<0.000000e+00> : vector<16x12xf32>
    %826 = tpu.matmul %824, %825, %cst_392 {dimension_numbers = #tpu.dot_dimension_numbers<[1], [0], [0], [1], [0, 0, 1, 1], [], []>} : vector<16x32xf32>, vector<32x12xf32>, vector<16x12xf32> -> vector<16x12xf32>
    %c0_393 = arith.constant 0 : index
    %c0_394 = arith.constant 0 : index
    %827 = vector.load %arg9[%c0_393, %c0_394] : memref<1x12xf32, #tpu.memory_space<vmem>>, vector<1x12xf32>
    %828 = vector.broadcast %827 : vector<1x12xf32> to vector<16x12xf32>
    %829 = arith.addf %826, %828 : vector<16x12xf32>
    %830 = arith.mulf %829, %829 : vector<16x12xf32>
    %831 = tpu.concatenate %829, %830 in 1 : vector<16x12xf32>, vector<16x12xf32> -> vector<16x24xf32>
    %cst_395 = arith.constant dense<0.000000e+00> : vector<24xf32>
    %832 = vector.multi_reduction <add>, %831, %cst_395 [0] : vector<16x24xf32> to vector<24xf32>
    %833 = vector.shape_cast %832 : vector<24xf32> to vector<1x24xf32>
    %cst_396 = arith.constant 1.600000e+01 : f32
    %834 = vector.broadcast %cst_396 : f32 to vector<1x24xf32>
    %835 = arith.divf %833, %834 : vector<1x24xf32>
    %836 = vector.extract_strided_slice %835 {offsets = [0, 0], sizes = [1, 12], strides = [1, 1]} : vector<1x24xf32> to vector<1x12xf32>
    %837 = vector.extract_strided_slice %835 {offsets = [0, 12], sizes = [1, 12], strides = [1, 1]} : vector<1x24xf32> to vector<1x12xf32>
    %838 = arith.mulf %836, %836 : vector<1x12xf32>
    %839 = arith.subf %837, %838 : vector<1x12xf32>
    %cst_397 = arith.constant 0.000000e+00 : f32
    %840 = vector.broadcast %cst_397 : f32 to vector<1x12xf32>
    %841 = arith.maximumf %839, %840 : vector<1x12xf32>
    %c0_398 = arith.constant 0 : index
    %c0_399 = arith.constant 0 : index
    %842 = vector.load %arg18[%c0_398, %c0_399] : memref<1x12xf32, #tpu.memory_space<vmem>>, vector<1x12xf32>
    %cst_400 = arith.constant 1.000000e-07 : f32
    %843 = vector.broadcast %cst_400 : f32 to vector<1x12xf32>
    %844 = arith.addf %841, %843 : vector<1x12xf32>
    %845 = math.rsqrt %844 : vector<1x12xf32>
    %846 = arith.mulf %842, %845 : vector<1x12xf32>
    %c0_401 = arith.constant 0 : index
    %c0_402 = arith.constant 0 : index
    %847 = vector.load %arg19[%c0_401, %c0_402] : memref<1x12xf32, #tpu.memory_space<vmem>>, vector<1x12xf32>
    %848 = arith.mulf %836, %846 : vector<1x12xf32>
    %849 = arith.subf %847, %848 : vector<1x12xf32>
    %cst_403 = arith.constant 1.42857146 : f32
    %850 = vector.broadcast %cst_403 : f32 to vector<1x12xf32>
    %851 = arith.mulf %849, %850 : vector<1x12xf32>
    %cst_404 = arith.constant 1.42857146 : f32
    %852 = vector.broadcast %cst_404 : f32 to vector<1x12xf32>
    %853 = arith.mulf %846, %852 : vector<1x12xf32>
    %854 = vector.broadcast %853 : vector<1x12xf32> to vector<16x12xf32>
    %855 = arith.mulf %829, %854 : vector<16x12xf32>
    %856 = vector.broadcast %851 : vector<1x12xf32> to vector<16x12xf32>
    %857 = arith.addf %855, %856 : vector<16x12xf32>
    %c20 = arith.constant 20 : index
    %c0_405 = arith.constant 0 : index
    %c0_406 = arith.constant 0 : index
    %858 = vector.load %arg0[%c20, %c0_405, %c0_406] : memref<23x16x32xi32, #tpu.memory_space<vmem>>, vector<1x16x32xi32>
    %859 = vector.shape_cast %858 : vector<1x16x32xi32> to vector<16x32xi32>
    %860 = vector.extract_strided_slice %859 {offsets = [0, 0], sizes = [16, 12], strides = [1, 1]} : vector<16x32xi32> to vector<16x12xi32>
    %c1288490188_i32_407 = arith.constant 1288490188 : i32
    %861 = vector.broadcast %c1288490188_i32_407 : i32 to vector<16x12xi32>
    %862 = arith.cmpi uge, %860, %861 : vector<16x12xi32>
    %cst_408 = arith.constant 0.000000e+00 : f32
    %863 = vector.broadcast %cst_408 : f32 to vector<16x12xf32>
    %864 = arith.cmpf ogt, %857, %863 : vector<16x12xf32>
    %865 = arith.andi %862, %864 : vector<16x12xi1>
    %cst_409 = arith.constant 0.000000e+00 : f32
    %866 = vector.broadcast %cst_409 : f32 to vector<16x12xf32>
    %867 = arith.select %865, %857, %866 : vector<16x12xi1>, vector<16x12xf32>
    %c0_410 = arith.constant 0 : index
    %c0_411 = arith.constant 0 : index
    %868 = vector.load %arg10[%c0_410, %c0_411] : memref<12x8xf32, #tpu.memory_space<vmem>>, vector<12x8xf32>
    %cst_412 = arith.constant dense<0.000000e+00> : vector<16x8xf32>
    %869 = tpu.matmul %867, %868, %cst_412 {dimension_numbers = #tpu.dot_dimension_numbers<[1], [0], [0], [1], [0, 0, 1, 1], [], []>} : vector<16x12xf32>, vector<12x8xf32>, vector<16x8xf32> -> vector<16x8xf32>
    %c0_413 = arith.constant 0 : index
    %c0_414 = arith.constant 0 : index
    %870 = vector.load %arg11[%c0_413, %c0_414] : memref<1x8xf32, #tpu.memory_space<vmem>>, vector<1x8xf32>
    %871 = vector.broadcast %870 : vector<1x8xf32> to vector<16x8xf32>
    %872 = arith.addf %869, %871 : vector<16x8xf32>
    %cst_415 = arith.constant 1.42857146 : f32
    %873 = vector.broadcast %cst_415 : f32 to vector<16x8xf32>
    %874 = arith.mulf %872, %873 : vector<16x8xf32>
    %c21 = arith.constant 21 : index
    %c0_416 = arith.constant 0 : index
    %c0_417 = arith.constant 0 : index
    %875 = vector.load %arg0[%c21, %c0_416, %c0_417] : memref<23x16x32xi32, #tpu.memory_space<vmem>>, vector<1x16x32xi32>
    %876 = vector.shape_cast %875 : vector<1x16x32xi32> to vector<16x32xi32>
    %877 = vector.extract_strided_slice %876 {offsets = [0, 0], sizes = [16, 8], strides = [1, 1]} : vector<16x32xi32> to vector<16x8xi32>
    %c1288490188_i32_418 = arith.constant 1288490188 : i32
    %878 = vector.broadcast %c1288490188_i32_418 : i32 to vector<16x8xi32>
    %879 = arith.cmpi uge, %877, %878 : vector<16x8xi32>
    %cst_419 = arith.constant 0.000000e+00 : f32
    %880 = vector.broadcast %cst_419 : f32 to vector<16x8xf32>
    %881 = arith.cmpf ogt, %874, %880 : vector<16x8xf32>
    %882 = arith.andi %879, %881 : vector<16x8xi1>
    %cst_420 = arith.constant 0.000000e+00 : f32
    %883 = vector.broadcast %cst_420 : f32 to vector<16x8xf32>
    %884 = arith.select %882, %874, %883 : vector<16x8xi1>, vector<16x8xf32>
    %c0_421 = arith.constant 0 : index
    %c0_422 = arith.constant 0 : index
    %885 = vector.load %arg12[%c0_421, %c0_422] : memref<8x1xf32, #tpu.memory_space<vmem>>, vector<8x1xf32>
    %cst_423 = arith.constant dense<0.000000e+00> : vector<16x1xf32>
    %886 = tpu.matmul %884, %885, %cst_423 {dimension_numbers = #tpu.dot_dimension_numbers<[1], [0], [0], [1], [0, 0, 1, 1], [], []>} : vector<16x8xf32>, vector<8x1xf32>, vector<16x1xf32> -> vector<16x1xf32>
    %c0_424 = arith.constant 0 : index
    %c0_425 = arith.constant 0 : index
    %887 = vector.load %arg13[%c0_424, %c0_425] : memref<1x1xf32, #tpu.memory_space<vmem>>, vector<1x1xf32>
    %888 = vector.broadcast %887 : vector<1x1xf32> to vector<16x1xf32>
    %889 = arith.addf %886, %888 : vector<16x1xf32>
    %cst_426 = arith.constant 1.250000e+00 : f32
    %890 = vector.broadcast %cst_426 : f32 to vector<16x1xf32>
    %891 = arith.mulf %889, %890 : vector<16x1xf32>
    %c22 = arith.constant 22 : index
    %c0_427 = arith.constant 0 : index
    %c0_428 = arith.constant 0 : index
    %892 = vector.load %arg0[%c22, %c0_427, %c0_428] : memref<23x16x32xi32, #tpu.memory_space<vmem>>, vector<1x16x32xi32>
    %893 = vector.shape_cast %892 : vector<1x16x32xi32> to vector<16x32xi32>
    %894 = vector.extract_strided_slice %893 {offsets = [0, 0], sizes = [16, 1], strides = [1, 1]} : vector<16x32xi32> to vector<16x1xi32>
    %c858993459_i32 = arith.constant 858993459 : i32
    %895 = vector.broadcast %c858993459_i32 : i32 to vector<16x1xi32>
    %896 = arith.cmpi uge, %894, %895 : vector<16x1xi32>
    %cst_429 = arith.constant 0.000000e+00 : f32
    %897 = vector.broadcast %cst_429 : f32 to vector<16x1xf32>
    %898 = arith.cmpf ogt, %891, %897 : vector<16x1xf32>
    %899 = arith.andi %896, %898 : vector<16x1xi1>
    %cst_430 = arith.constant 0.000000e+00 : f32
    %900 = vector.broadcast %cst_430 : f32 to vector<16x1xf32>
    %901 = arith.select %899, %891, %900 : vector<16x1xi1>, vector<16x1xf32>
    %c0_431 = arith.constant 0 : index
    %c0_432 = arith.constant 0 : index
    %902 = vector.load %arg20[%c0_431, %c0_432] : memref<16x1xf32, #tpu.memory_space<vmem>>, vector<16x1xf32>
    tpu.vector_store %arg20[%c0_431, %c0_432], %901 {strides = array<i32>} : memref<16x1xf32, #tpu.memory_space<vmem>>, vector<16x1xf32>,
    return
  }
}

</mosaic_0001>

<bundles_post_ra>
// kernel: tpu_custom_call.1
= control target key start
LH: loop header
LB: loop body
LE: loop exit
PB: predicated region body
PF: predicated region fallthrough
CT: control target
= control target key end

     0   :  { %s4980_s0 = inlined_call_operand.hbm [shape: u32[23,16,32], index: 0, kind: input, shape index: {}]   ;;  %s4981_s1 = inlined_call_operand.vmem [shape: f32[16,8], index: 1, kind: input, shape index: {}]   ;;  %s4982_s2 = inlined_call_operand.vmem [shape: f32[8,32], index: 2, kind: input, shape index: {}]   ;;  %s4983_s3 = inlined_call_operand.vmem [shape: f32[1,32], index: 3, kind: input, shape index: {}]   ;;  %s4984_s4 = inlined_call_operand.vmem [shape: f32[32,16], index: 4, kind: input, shape index: {}]   ;;  %s4985_s5 = inlined_call_operand.vmem [shape: f32[1,16], index: 5, kind: input, shape index: {}]   ;;  %s4986_s6 = inlined_call_operand.vmem [shape: f32[16,32], index: 6, kind: input, shape index: {}]   ;;  %s4987_s7 = inlined_call_operand.vmem [shape: f32[1,32], index: 7, kind: input, shape index: {}]   ;;  %s4988_s8 = inlined_call_operand.vmem [shape: f32[32,12], index: 8, kind: input, shape index: {}]   ;;  %s4989_s9 = inlined_call_operand.vmem [shape: f32[1,12], index: 9, kind: input, shape index: {}]   ;;  %s4990_s10 = inlined_call_operand.vmem [shape: f32[12,8], index: 10, kind: input, shape index: {}]   ;;  %s4991_s11 = inlined_call_operand.vmem [shape: f32[1,8], index: 11, kind: input, shape index: {}]   ;;  %s4992_s12 = inlined_call_operand.vmem [shape: f32[8,1], index: 12, kind: input, shape index: {}]   ;;  %s4993_s13 = inlined_call_operand.<no memory space> [shape: f32[1,1], index: 13, kind: input, shape index: {}]   ;;  %s4994_s14 = inlined_call_operand.vmem [shape: f32[1,16], index: 14, kind: input, shape index: {}]   ;;  %s4995_s15 = inlined_call_operand.vmem [shape: f32[1,16], index: 15, kind: input, shape index: {}]   ;;  %s4996_s16 = inlined_call_operand.vmem [shape: f32[1,32], index: 16, kind: input, shape index: {}]   ;;  %s4997_s17 = inlined_call_operand.vmem [shape: f32[1,32], index: 17, kind: input, shape index: {}]   ;;  %s4998_s18 = inlined_call_operand.vmem [shape: f32[1,12], index: 18, kind: input, shape index: {}]   ;;  %s4999_s19 = inlined_call_operand.vmem [shape: f32[1,12], index: 19, kind: input, shape index: {}]   ;;  %s5000_s20 = inlined_call_operand.vmem [shape: f32[16,1], index: 20, kind: output, shape index: {}]  }
   0x1   :  { %5006 = sst [smem:[#allocation6_spill]] %s4980_s0  ;;  %v25_v0 = vstv %s4993_s13 }
   0x2   :  { %5007 = sst [smem:[#allocation7_spill]] %s4981_s1  ;;  %26 = vst [vmem:[#allocation2] sm:$0x1] %v25_v0 }
   0x3   :  { %5008 = sst [smem:[#allocation8_spill]] %s4982_s2 }
   0x4   :  { %5009 = sst [smem:[#allocation9_spill]] %s4983_s3 }
   0x5   :  { %5010 = sst [smem:[#allocation10_spill]] %s4984_s4 }
   0x6   :  { %27 = vsyncpa [#allocation4], 0  ;;  %s4254_s23 = smov [#allocation3]   ;;  %s5011_s3 = sld [smem:[#allocation6_spill]] }
   0x7   :  { %s33_s24 = sshll.u32 %s4254_s23, 4  ;;  %s34_s24 = int_to_ptr.vmem [resolvable:$true] %s33_s24 }
   0xc   :  { %s4230_s26 = scalar_lea.hbm %s5011_s3, 5888 }
   0xd   :  { %p4231_p0 = scmp.ne.s32.totalorder %s5011_s3, %s4230_s26  ;;  %p4234_p1 = scmp.lt.u32.totalorder %s4230_s26, %s5011_s3 }
   0xf   :  { %p4236_p2 = pnand %p4234_p1, %p4231_p0 }
  0x11   :  { %4239 = shalt.err (!%p4236_p2)
}
  0x12   :  { %s4240_s13 = scalar_lea.vmem %s34_s24, 5888  ;;  %p4245_p4 = scmp.lt.s32.totalorder %s34_s24, %s34_s24 }
  0x13   :  { %p4241_p3 = scmp.ne.s32.totalorder %s34_s24, %s4240_s13  ;;  %p4246_p5 = scmp.lt.s32.totalorder %s4240_s13, %s4240_s13 }
  0x15   :  { %p4247_p6 = por %p4246_p5, %p4245_p4 }
  0x17   :  { %p4248_p7 = pnand %p4247_p6, %p4241_p3 }
  0x19   :  { %4251 = shalt.err (!%p4248_p7)
}
  0x1a   :  { %s4255_s30 = smov 128   ;;  %s4256_s0 = smov 8  }
  0x1b   :  { %39 = dma.hbm_to_vmem [thread:$0]  %s5011_s3, 5888, %s34_s24, [#allocation4], %s4255_s30, %s4255_s30, %s4256_s0  }
  0x1c   :  { %4252 = dma.done.wait [#allocation4], 5888  }
  0x1d   :  { %4253 = vsyncadd [#allocation4], 4294961408  ;;  %vm91_vm0 = vcmask 64512   ;;  %s5012_s2 = sld [smem:[#allocation8_spill]]  ;;  %s5013_s27 = sld [smem:[#allocation7_spill]]  ;;  %vm183_vm1 = vcmask 261120   ;;  %v212_v32 = vlaneseq }
  0x1e   :  { %s5014_s29 = sld [smem:[#allocation9_spill]]  ;;  %s4257_s13 = smov 32   ;;  %vm186_vm2 = vcmask 523264   ;;  %v4258_v30 = vmov 1966171168   ;;  %v248_v55 = vld [vmem:[#allocation3] sm:$0xff] }
  0x1f   :  { %v210_v31 = vunpack.c.l.s4 %v4258_v30  ;;  %v213_v34 = vshrl.u32 %v212_v32, 7  ;;  %s5015_s21 = sld [smem:[#allocation10_spill]]  ;;  %s4259_s28 = smov 96   ;;  %v4439_v45 = vld [vmem:[%s4996_s16] sm:$0x1]  ;;  %v249_v59 = vld [vmem:[#allocation3 + $0x8] sm:$0xff] }
  0x20   :  { %v4447_v49 = vld [vmem:[%s4997_s17] sm:$0x1]  ;;  %vm250_vm3 = vcmp.ge.u32.totalorder %v248_v55, 1288490188  ;;  %vm251_vm4 = vcmp.ge.u32.totalorder %v249_v59, 1288490188 }
  0x21   :  { %v211_v33 = vunpack.c.0.s8 %v210_v31  ;;  %v4441_v47 = vsub.s32 0, %v213_v34  ;;  %v4458_v0 = vld [vmem:[%s4985_s5] ss:$0 sm:$0xff]  ;;  %s4260_s1 = smov 16   ;;  %vm360_vm9 = vcmask 130048   ;;  %s4262_s30 = smov 12  }
  0x22   :  { %v4489_v32 = vld [vmem:[%s4994_s14] sm:$0x1] }
  0x23   :  { %v83_v1 = vld [vmem:[%s5012_s2] sm:$0xff]  ;;  %v82_v3 = vld [vmem:[%s5013_s27 + $0x8] sm:$0xff]  ;;  %v4411_v35 = vsub.s32 %v211_v33, %v213_v34 }
  0x24   :  { %v81_v2 = vld [vmem:[%s5013_s27] sm:$0xff]  ;;  %3848 = vmatprep.subr.mxu0 %v83_v1  ;;  %s4261_s27 = smov 112  }
  0x25   :  { %3850 = vmatprep.mubr.msk.f32.mxu0 %vm91_vm0, %v81_v2  ;;  %3849 = vmatpush3.msra.mxu0 %v83_v1  ;;  %v3685_v4 = vld [vmem:[%s5014_s29] ss:$0 sm:$0xff]  ;;  %v259_v37 = vld [vmem:[%s5015_s21 + $0x8] sm:$0xff]  ;;  %v260_v39 = vld [vmem:[%s5015_s21 + $0x10] sm:$0xff] }
  0x26   :  { %3851 = vmatmul.mubr.msk.f32.vlgmr.msra.gmra.mrb[0].mxu0 %vm91_vm0, %v82_v3  ;;  %v258_v36 = vld [vmem:[%s5015_s21] sm:$0xff]  ;;  %v261_v40 = vld [vmem:[%s5015_s21 + $0x18] sm:$0xff] }
  0x27   :  { %v4419_v38 = vpack.c.bf16 %v259_v37, %v258_v36  ;;  %v4427_v41 = vpack.c.bf16 %v261_v40, %v260_v39  ;;  %v4495_v36 = vld [vmem:[%s4995_s15] sm:$0x1] }
  0x29   :  { %4044 = vmatprep.subr.bf16.mxu1 %v4419_v38 }
  0x2a   :  { %4046 = vmatpush3.bf16.msra.mxu1 %v4419_v38 }
  0x2b   :  { %4048 = vmatprep.subr.bf16.mxu1 %v4427_v41 }
  0x2e   :  { %4050 = vmatpush3.bf16.msra.mxu1 %v4427_v41 }
  0xf9   :  { %v3852_v5 = vpop.f32.mrb[0].mxu0 }
  0xfa   :  { %v164_v6 = vpop.f32.mrb[1].mxu0  ;;  %v170_v8 = vadd.f32 %v3852_v5, %v3685_v4 }
  0xfb   :  { %v4399_v7 = vadd.f32 %v3685_v4, %v164_v6 }
  0xfc   :  { %v174_v10 = vmul.f32 %v170_v8, %v170_v8 }
  0xfd   :  { %v173_v9 = vmul.f32 %v4399_v7, %v4399_v7 }
  0xff   :  { %177 = vrot.lane.b32.xlu0 %v173_v9, %s4257_s13 }
 0x103   :  { %179 = vrot.lane.b32.xlu0 %v174_v10, %s4257_s13 }
 0x171   :  { %v178_v11 = vpop.permute.xlu0 %177 }
 0x172   :  { %v184_v12 = vsel %vm183_vm1, %v4399_v7, %v178_v11 }
 0x173   :  { %v187_v15 = vsel %vm186_vm2, %v184_v12, 0.0 }
 0x175   :  { %v180_v13 = vpop.permute.xlu0 %179 }
 0x176   :  { %v185_v14 = vsel %vm183_vm1, %v170_v8, %v180_v13 }
 0x177   :  { %v188_v16 = vsel %vm186_vm2, %v185_v14, 0.0 }
 0x178   :  { %v189_v17 = vadd.f32 %v188_v16, %v187_v15 }
 0x17a   :  { %v190_v18 = vrot.slane %v189_v17, 4 }
 0x17c   :  { %v191_v19 = vadd.f32 %v190_v18, %v189_v17 }
 0x17e   :  { %v192_v20 = vrot.slane %v191_v19, 2 }
 0x180   :  { %v193_v21 = vadd.f32 %v192_v20, %v191_v19 }
 0x182   :  { %v194_v22 = vrot.slane %v193_v21, 1 }
 0x184   :  { %v195_v23 = vadd.f32 %v194_v22, %v193_v21 }
 0x186   :  { %v197_v24 = vmul.f32 0.0625, %v195_v23 }
 0x188   :  { %v198_v25 = vmul.f32 %v197_v24, %v197_v24 }
 0x18a   :  { %200 = vrot.lane.b32.xlu1 %v198_v25, %s4257_s13 }
 0x1fc   :  { %v201_v26 = vpop.permute.xlu1 %200 }
 0x1fd   :  { %v203_v27 = vsub.f32 %v197_v24, %v201_v26 }
 0x1ff   :  { %v204_v28 = vmax.f32 %v203_v27, 0.0  ;;  %v434_v27 = vld [vmem:[%s4986_s6] sm:$0xff] }
 0x201   :  { %v206_v29 = vadd.f32 1e-07, %v204_v28  ;;  %v435_v28 = vld [vmem:[%s4986_s6 + $0x8] sm:$0xff] }
 0x202   :  { %v4476_v30 = vpack.c.bf16 %v435_v28, %v434_v27 }
 0x203   :  { %4178 = vrsqrt.f32 %v206_v29 }
 0x204   :  { %4052 = vmatprep.subr.bf16.mxu0 %v4476_v30  ;;  %4064 = vmatprep.subr.bf16.mxu1 %v4476_v30 }
 0x205   :  { %4054 = vmatpush3.bf16.msra.mxu0 %v4476_v30 }
 0x206   :  { %4056 = vmatprep.subr.bf16.mxu0 %v4419_v38 }
 0x20d   :  { %v4179_v42 = vpop.eup %4178 }
 0x20e   :  { %v215_v43 = vrot.slane %v4179_v42, %v4411_v35 }
 0x210   :  { %v222_v44 = vrot.slane %v215_v43, %v4411_v35 }
 0x212   :  { %223 = vrot.lane.b32.xlu1 %v222_v44, %s4259_s28  ;;  %v424_v44 = vld [vmem:[#allocation3 + $0x10] sm:$0xff] }
 0x213   :  { %vm426_vm10 = vcmp.ge.u32.totalorder %v424_v44, 2147483648 }
 0x284   :  { %v224_v46 = vpop.permute.xlu1 %223 }
 0x285   :  { %v226_v48 = vmul.f32 %v224_v46, %v4439_v45 }
 0x287   :  { %v228_v50 = vmul.f32 %v226_v48, %v197_v24  ;;  %v231_v51 = vmul.f32 1.4285715, %v226_v48 }
 0x289   :  { %v229_v52 = vsub.f32 %v4447_v49, %v228_v50  ;;  %v236_v53 = vrot.slane %v231_v51, %v4441_v47  ;;  %v425_v51 = vld [vmem:[#allocation3 + $0x18] sm:$0xff] }
 0x28a   :  { %vm427_vm11 = vcmp.ge.u32.totalorder %v425_v51, 2147483648 }
 0x28b   :  { %v230_v54 = vmul.f32 1.4285715, %v229_v52  ;;  %v239_v56 = vmul.f32 %v236_v53, %v170_v8  ;;  %v238_v57 = vmul.f32 %v236_v53, %v4399_v7 }
 0x28d   :  { %v244_v58 = vrot.slane %v230_v54, %v4441_v47 }
 0x28f   :  { %v246_v60 = vadd.f32 %v244_v58, %v238_v57  ;;  %v247_v61 = vadd.f32 %v244_v58, %v239_v56  ;;  %v4509_v56 = vld [vmem:[%s4987_s7] ss:$0 sm:$0xff] }
 0x291   :  { %vm252_vm5 = vcmp.gt.f32.partialorder %v246_v60, 0.0  ;;  %vm253_vm6 = vcmp.gt.f32.partialorder %v247_v61, 0.0 }
 0x292   :  { %vm254_vm7 = vmand %vm250_vm3, %vm252_vm5 }
 0x293   :  { %v256_v62 = vsel %vm254_vm7, %v246_v60, 0.0  ;;  %vm255_vm8 = vmand %vm251_vm4, %vm253_vm6 }
 0x294   :  { %3861 = vmatprep.mubr.msk.f32.mxu1 %vm183_vm1, %v256_v62  ;;  %v257_v63 = vsel %vm255_vm8, %v247_v61, 0.0 }
 0x295   :  { %3862 = vmatmul.mubr.msk.f32.vlgmr.msra.gmra.mrb[0].mxu1 %vm183_vm1, %v257_v63 }
 0x296   :  { %4066 = vmatpush3.bf16.msra.mxu1 %v4476_v30 }
 0x297   :  { %4068 = vmatprep.subr.bf16.mxu1 %v4419_v38 }
 0x368   :  { %v3863_v1 = vpop.f32.mrb[0].mxu1 }
 0x369   :  { %v347_v2 = vadd.f32 %v3863_v1, %v4458_v0  ;;  %v341_v3 = vpop.f32.mrb[1].mxu1 }
 0x36a   :  { %v342_v4 = vadd.f32 %v4458_v0, %v341_v3 }
 0x36b   :  { %v351_v5 = vmul.f32 %v347_v2, %v347_v2 }
 0x36c   :  { %v350_v6 = vmul.f32 %v342_v4, %v342_v4 }
 0x36d   :  { %356 = vrot.lane.b32.xlu1 %v351_v5, %s4260_s1 }
 0x36e   :  { %354 = vrot.lane.b32.xlu0 %v350_v6, %s4260_s1 }
 0x3df   :  { %v357_v7 = vpop.permute.xlu1 %356 }
 0x3e0   :  { %v362_v8 = vsel %vm360_vm9, %v347_v2, %v357_v7  ;;  %v355_v9 = vpop.permute.xlu0 %354 }
 0x3e1   :  { %v364_v10 = vsel %vm183_vm1, %v362_v8, 0.0  ;;  %v361_v11 = vsel %vm360_vm9, %v342_v4, %v355_v9 }
 0x3e2   :  { %v363_v12 = vsel %vm183_vm1, %v361_v11, 0.0 }
 0x3e3   :  { %v365_v13 = vadd.f32 %v364_v10, %v363_v12 }
 0x3e5   :  { %v366_v14 = vrot.slane %v365_v13, 4 }
 0x3e7   :  { %v367_v15 = vadd.f32 %v366_v14, %v365_v13 }
 0x3e9   :  { %v368_v16 = vrot.slane %v367_v15, 2 }
 0x3eb   :  { %v369_v17 = vadd.f32 %v368_v16, %v367_v15 }
 0x3ed   :  { %v370_v18 = vrot.slane %v369_v17, 1 }
 0x3ef   :  { %v371_v19 = vadd.f32 %v370_v18, %v369_v17 }
 0x3f1   :  { %v372_v20 = vmul.f32 0.0625, %v371_v19 }
 0x3f3   :  { %v373_v21 = vmul.f32 %v372_v20, %v372_v20 }
 0x3f5   :  { %375 = vrot.lane.b32.xlu0 %v373_v21, %s4260_s1 }
 0x467   :  { %v376_v22 = vpop.permute.xlu0 %375 }
 0x468   :  { %v378_v23 = vsub.f32 %v372_v20, %v376_v22 }
 0x46a   :  { %v379_v24 = vmax.f32 %v378_v23, 0.0 }
 0x46c   :  { %v381_v25 = vadd.f32 1e-07, %v379_v24 }
 0x46e   :  { %4180 = vrsqrt.f32 %v381_v25 }
 0x478   :  { %v4181_v26 = vpop.eup %4180 }
 0x479   :  { %v390_v29 = vrot.slane %v4181_v26, %v4411_v35 }
 0x47b   :  { %v397_v31 = vrot.slane %v390_v29, %v4411_v35  ;;  %v595_v29 = vld [vmem:[#allocation3 + $0x20] sm:$0xff] }
 0x47c   :  { %vm597_vm3 = vcmp.ge.u32.totalorder %v595_v29, 2147483648 }
 0x47d   :  { %398 = vrot.lane.b32.xlu1 %v397_v31, %s4261_s27 }
 0x4ef   :  { %v399_v33 = vpop.permute.xlu1 %398 }
 0x4f0   :  { %v401_v34 = vmul.f32 %v399_v33, %v4489_v32 }
 0x4f2   :  { %v403_v37 = vmul.f32 %v401_v34, %v372_v20  ;;  %v406_v39 = vmul.f32 2.0, %v401_v34 }
 0x4f4   :  { %v404_v40 = vsub.f32 %v4495_v36, %v403_v37  ;;  %v411_v42 = vrot.slane %v406_v39, %v4441_v47  ;;  %v596_v37 = vld [vmem:[#allocation3 + $0x28] sm:$0xff] }
 0x4f5   :  { %vm598_vm4 = vcmp.ge.u32.totalorder %v596_v37, 2147483648 }
 0x4f6   :  { %v405_v43 = vmul.f32 2.0, %v404_v40  ;;  %v413_v46 = vmul.f32 %v411_v42, %v342_v4  ;;  %v414_v48 = vmul.f32 %v411_v42, %v347_v2 }
 0x4f8   :  { %v419_v50 = vrot.slane %v405_v43, %v4441_v47 }
 0x4fa   :  { %v421_v52 = vadd.f32 %v419_v50, %v413_v46  ;;  %v422_v53 = vadd.f32 %v419_v50, %v414_v48 }
 0x4fc   :  { %vm428_vm12 = vcmp.gt.f32.partialorder %v421_v52, 0.0  ;;  %vm429_vm13 = vcmp.gt.f32.partialorder %v422_v53, 0.0 }
 0x4fd   :  { %vm430_vm14 = vmand %vm426_vm10, %vm428_vm12 }
 0x4fe   :  { %v432_v54 = vsel %vm430_vm14, %v421_v52, 0.0  ;;  %vm431_vm15 = vmand %vm427_vm11, %vm429_vm13 }
 0x4ff   :  { %3868 = vmatprep.mubr.msk.f32.mxu0 %vm360_vm9, %v432_v54  ;;  %v433_v55 = vsel %vm431_vm15, %v422_v53, 0.0 }
 0x500   :  { %3869 = vmatmul.mubr.msk.f32.vlgmr.msra.gmra.mrb[2].mxu0 %vm360_vm9, %v433_v55 }
 0x501   :  { %4058 = vmatpush3.bf16.msra.mxu0 %v4419_v38 }
 0x502   :  { %4060 = vmatprep.subr.bf16.mxu0 %v4427_v41 }
 0x505   :  { %4062 = vmatpush3.bf16.msra.mxu0 %v4427_v41 }
 0x506   :  { %4076 = vmatprep.subr.bf16.mxu0 %v4476_v30 }
 0x5d3   :  { %v3870_v57 = vpop.f32.mrb[2].mxu0 }
 0x5d4   :  { %v521_v58 = vadd.f32 %v3870_v57, %v4509_v56  ;;  %v515_v59 = vpop.f32.mrb[3].mxu0 }
 0x5d5   :  { %v516_v60 = vadd.f32 %v4509_v56, %v515_v59 }
 0x5d6   :  { %v525_v61 = vmul.f32 %v521_v58, %v521_v58 }
 0x5d7   :  { %v524_v62 = vmul.f32 %v516_v60, %v516_v60 }
 0x5d8   :  { %530 = vrot.lane.b32.xlu1 %v525_v61, %s4257_s13 }
 0x5d9   :  { %528 = vrot.lane.b32.xlu0 %v524_v62, %s4257_s13 }
 0x64a   :  { %v531_v63 = vpop.permute.xlu1 %530 }
 0x64b   :  { %v535_v1 = vsel %vm183_vm1, %v521_v58, %v531_v63  ;;  %v529_v2 = vpop.permute.xlu0 %528 }
 0x64c   :  { %v537_v3 = vsel %vm186_vm2, %v535_v1, 0.0  ;;  %v534_v4 = vsel %vm183_vm1, %v516_v60, %v529_v2 }
 0x64d   :  { %v536_v5 = vsel %vm186_vm2, %v534_v4, 0.0 }
 0x64e   :  { %v538_v6 = vadd.f32 %v537_v3, %v536_v5 }
 0x650   :  { %v539_v7 = vrot.slane %v538_v6, 4 }
 0x652   :  { %v540_v8 = vadd.f32 %v539_v7, %v538_v6 }
 0x654   :  { %v541_v9 = vrot.slane %v540_v8, 2 }
 0x656   :  { %v542_v10 = vadd.f32 %v541_v9, %v540_v8 }
 0x658   :  { %v543_v11 = vrot.slane %v542_v10, 1 }
 0x65a   :  { %v544_v12 = vadd.f32 %v543_v11, %v542_v10 }
 0x65c   :  { %v545_v13 = vmul.f32 0.0625, %v544_v12 }
 0x65e   :  { %v546_v14 = vmul.f32 %v545_v13, %v545_v13 }
 0x660   :  { %548 = vrot.lane.b32.xlu0 %v546_v14, %s4257_s13 }
 0x6d2   :  { %v549_v15 = vpop.permute.xlu0 %548 }
 0x6d3   :  { %v551_v16 = vsub.f32 %v545_v13, %v549_v15 }
 0x6d5   :  { %v552_v17 = vmax.f32 %v551_v16, 0.0 }
 0x6d7   :  { %v553_v18 = vadd.f32 1e-07, %v552_v17 }
 0x6d9   :  { %4182 = vrsqrt.f32 %v553_v18 }
 0x6e3   :  { %v4183_v19 = vpop.eup %4182 }
 0x6e4   :  { %v562_v20 = vrot.slane %v4183_v19, %v4411_v35 }
 0x6e6   :  { %v569_v21 = vrot.slane %v562_v20, %v4411_v35  ;;  %v757_v20 = vld [vmem:[#allocation3 + $0x30] sm:$0xff] }
 0x6e7   :  { %vm759_vm10 = vcmp.ge.u32.totalorder %v757_v20, 2147483648 }
 0x6e8   :  { %570 = vrot.lane.b32.xlu1 %v569_v21, %s4259_s28 }
 0x75a   :  { %v571_v22 = vpop.permute.xlu1 %570 }
 0x75b   :  { %v573_v23 = vmul.f32 %v571_v22, %v4439_v45 }
 0x75d   :  { %v574_v24 = vmul.f32 %v573_v23, %v545_v13  ;;  %v577_v25 = vmul.f32 2.0, %v573_v23 }
 0x75f   :  { %v575_v26 = vsub.f32 %v4447_v49, %v574_v24  ;;  %v582_v27 = vrot.slane %v577_v25, %v4441_v47  ;;  %v758_v24 = vld [vmem:[#allocation3 + $0x38] sm:$0xff] }
 0x760   :  { %vm760_vm11 = vcmp.ge.u32.totalorder %v758_v24, 2147483648 }
 0x761   :  { %v576_v28 = vmul.f32 2.0, %v575_v26  ;;  %v584_v31 = vmul.f32 %v582_v27, %v516_v60  ;;  %v585_v33 = vmul.f32 %v582_v27, %v521_v58 }
 0x763   :  { %v590_v34 = vrot.slane %v576_v28, %v4441_v47 }
 0x765   :  { %v592_v39 = vadd.f32 %v590_v34, %v584_v31  ;;  %v593_v40 = vadd.f32 %v590_v34, %v585_v33 }
 0x767   :  { %vm599_vm5 = vcmp.gt.f32.partialorder %v592_v39, 0.0  ;;  %vm600_vm6 = vcmp.gt.f32.partialorder %v593_v40, 0.0 }
 0x768   :  { %vm601_vm7 = vmand %vm597_vm3, %vm599_vm5 }
 0x769   :  { %v603_v42 = vsel %vm601_vm7, %v592_v39, 0.0  ;;  %vm602_vm8 = vmand %vm598_vm4, %vm600_vm6 }
 0x76a   :  { %3879 = vmatprep.mubr.msk.f32.mxu0 %vm183_vm1, %v603_v42  ;;  %v604_v43 = vsel %vm602_vm8, %v593_v40, 0.0 }
 0x76b   :  { %3880 = vmatmul.mubr.msk.f32.vlgmr.msra.gmra.mrb[4].mxu0 %vm183_vm1, %v604_v43 }
 0x76c   :  { %4078 = vmatpush3.bf16.msra.mxu0 %v4476_v30 }
 0x76d   :  { %4080 = vmatprep.subr.bf16.mxu0 %v4419_v38 }
 0x83e   :  { %v3881_v44 = vpop.f32.mrb[4].mxu0 }
 0x83f   :  { %v683_v46 = vadd.f32 %v3881_v44, %v4458_v0  ;;  %v677_v48 = vpop.f32.mrb[5].mxu0 }
 0x840   :  { %v678_v50 = vadd.f32 %v4458_v0, %v677_v48 }
 0x841   :  { %v687_v51 = vmul.f32 %v683_v46, %v683_v46 }
 0x842   :  { %v686_v52 = vmul.f32 %v678_v50, %v678_v50 }
 0x843   :  { %692 = vrot.lane.b32.xlu1 %v687_v51, %s4260_s1 }
 0x844   :  { %690 = vrot.lane.b32.xlu0 %v686_v52, %s4260_s1 }
 0x8b5   :  { %v693_v53 = vpop.permute.xlu1 %692 }
 0x8b6   :  { %v697_v54 = vsel %vm360_vm9, %v683_v46, %v693_v53  ;;  %v691_v55 = vpop.permute.xlu0 %690 }
 0x8b7   :  { %v699_v57 = vsel %vm183_vm1, %v697_v54, 0.0  ;;  %v696_v58 = vsel %vm360_vm9, %v678_v50, %v691_v55 }
 0x8b8   :  { %v698_v59 = vsel %vm183_vm1, %v696_v58, 0.0 }
 0x8b9   :  { %v700_v60 = vadd.f32 %v699_v57, %v698_v59 }
 0x8bb   :  { %v701_v61 = vrot.slane %v700_v60, 4 }
 0x8bd   :  { %v702_v62 = vadd.f32 %v701_v61, %v700_v60 }
 0x8bf   :  { %v703_v63 = vrot.slane %v702_v62, 2 }
 0x8c1   :  { %v704_v1 = vadd.f32 %v703_v63, %v702_v62 }
 0x8c3   :  { %v705_v2 = vrot.slane %v704_v1, 1 }
 0x8c5   :  { %v706_v3 = vadd.f32 %v705_v2, %v704_v1 }
 0x8c7   :  { %v707_v4 = vmul.f32 0.0625, %v706_v3 }
 0x8c9   :  { %v708_v5 = vmul.f32 %v707_v4, %v707_v4 }
 0x8cb   :  { %710 = vrot.lane.b32.xlu0 %v708_v5, %s4260_s1 }
 0x93d   :  { %v711_v6 = vpop.permute.xlu0 %710 }
 0x93e   :  { %v713_v7 = vsub.f32 %v707_v4, %v711_v6 }
 0x940   :  { %v714_v8 = vmax.f32 %v713_v7, 0.0 }
 0x942   :  { %v715_v9 = vadd.f32 1e-07, %v714_v8 }
 0x944   :  { %4184 = vrsqrt.f32 %v715_v9 }
 0x94e   :  { %v4185_v10 = vpop.eup %4184 }
 0x94f   :  { %v724_v11 = vrot.slane %v4185_v10, %v4411_v35 }
 0x951   :  { %v731_v12 = vrot.slane %v724_v11, %v4411_v35  ;;  %v919_v11 = vld [vmem:[#allocation3 + $0x40] sm:$0xff] }
 0x952   :  { %vm921_vm3 = vcmp.ge.u32.totalorder %v919_v11, 2147483648 }
 0x953   :  { %732 = vrot.lane.b32.xlu1 %v731_v12, %s4261_s27 }
 0x9c5   :  { %v733_v13 = vpop.permute.xlu1 %732 }
 0x9c6   :  { %v735_v14 = vmul.f32 %v733_v13, %v4489_v32 }
 0x9c8   :  { %v736_v15 = vmul.f32 %v735_v14, %v707_v4  ;;  %v739_v16 = vmul.f32 2.0, %v735_v14 }
 0x9ca   :  { %v737_v17 = vsub.f32 %v4495_v36, %v736_v15  ;;  %v744_v18 = vrot.slane %v739_v16, %v4441_v47  ;;  %v920_v15 = vld [vmem:[#allocation3 + $0x48] sm:$0xff] }
 0x9cb   :  { %vm922_vm4 = vcmp.ge.u32.totalorder %v920_v15, 2147483648 }
 0x9cc   :  { %v738_v19 = vmul.f32 2.0, %v737_v17  ;;  %v746_v21 = vmul.f32 %v744_v18, %v678_v50  ;;  %v747_v22 = vmul.f32 %v744_v18, %v683_v46 }
 0x9ce   :  { %v752_v23 = vrot.slane %v738_v19, %v4441_v47 }
 0x9d0   :  { %v754_v25 = vadd.f32 %v752_v23, %v746_v21  ;;  %v755_v26 = vadd.f32 %v752_v23, %v747_v22 }
 0x9d2   :  { %vm761_vm12 = vcmp.gt.f32.partialorder %v754_v25, 0.0  ;;  %vm762_vm13 = vcmp.gt.f32.partialorder %v755_v26, 0.0 }
 0x9d3   :  { %vm763_vm14 = vmand %vm759_vm10, %vm761_vm12 }
 0x9d4   :  { %v765_v27 = vsel %vm763_vm14, %v754_v25, 0.0  ;;  %vm764_vm15 = vmand %vm760_vm11, %vm762_vm13 }
 0x9d5   :  { %3886 = vmatprep.mubr.msk.f32.mxu1 %vm360_vm9, %v765_v27  ;;  %v766_v28 = vsel %vm764_vm15, %v755_v26, 0.0 }
 0x9d6   :  { %3887 = vmatmul.mubr.msk.f32.vlgmr.msra.gmra.mrb[2].mxu1 %vm360_vm9, %v766_v28 }
 0x9d7   :  { %4070 = vmatpush3.bf16.msra.mxu1 %v4419_v38 }
 0x9d8   :  { %4072 = vmatprep.subr.bf16.mxu1 %v4427_v41 }
 0x9db   :  { %4074 = vmatpush3.bf16.msra.mxu1 %v4427_v41 }
 0x9dc   :  { %4088 = vmatprep.subr.bf16.mxu1 %v4476_v30 }
 0xaa9   :  { %v3888_v29 = vpop.f32.mrb[2].mxu1 }
 0xaaa   :  { %v845_v31 = vadd.f32 %v3888_v29, %v4509_v56  ;;  %v839_v33 = vpop.f32.mrb[3].mxu1 }
 0xaab   :  { %v840_v34 = vadd.f32 %v4509_v56, %v839_v33 }
 0xaac   :  { %v849_v37 = vmul.f32 %v845_v31, %v845_v31 }
 0xaad   :  { %v848_v39 = vmul.f32 %v840_v34, %v840_v34 }
 0xaae   :  { %854 = vrot.lane.b32.xlu1 %v849_v37, %s4257_s13 }
 0xaaf   :  { %852 = vrot.lane.b32.xlu0 %v848_v39, %s4257_s13 }
 0xb20   :  { %v855_v40 = vpop.permute.xlu1 %854 }
 0xb21   :  { %v859_v42 = vsel %vm183_vm1, %v845_v31, %v855_v40  ;;  %v853_v43 = vpop.permute.xlu0 %852 }
 0xb22   :  { %v861_v44 = vsel %vm186_vm2, %v859_v42, 0.0  ;;  %v858_v46 = vsel %vm183_vm1, %v840_v34, %v853_v43 }
 0xb23   :  { %v860_v48 = vsel %vm186_vm2, %v858_v46, 0.0 }
 0xb24   :  { %v862_v50 = vadd.f32 %v861_v44, %v860_v48 }
 0xb26   :  { %v863_v51 = vrot.slane %v862_v50, 4 }
 0xb28   :  { %v864_v52 = vadd.f32 %v863_v51, %v862_v50 }
 0xb2a   :  { %v865_v53 = vrot.slane %v864_v52, 2 }
 0xb2c   :  { %v866_v54 = vadd.f32 %v865_v53, %v864_v52 }
 0xb2e   :  { %v867_v55 = vrot.slane %v866_v54, 1 }
 0xb30   :  { %v868_v57 = vadd.f32 %v867_v55, %v866_v54 }
 0xb32   :  { %v869_v58 = vmul.f32 0.0625, %v868_v57 }
 0xb34   :  { %v870_v59 = vmul.f32 %v869_v58, %v869_v58 }
 0xb36   :  { %872 = vrot.lane.b32.xlu0 %v870_v59, %s4257_s13 }
 0xba8   :  { %v873_v60 = vpop.permute.xlu0 %872 }
 0xba9   :  { %v875_v61 = vsub.f32 %v869_v58, %v873_v60 }
 0xbab   :  { %v876_v62 = vmax.f32 %v875_v61, 0.0 }
 0xbad   :  { %v877_v63 = vadd.f32 1e-07, %v876_v62 }
 0xbaf   :  { %4186 = vrsqrt.f32 %v877_v63 }
 0xbb9   :  { %v4187_v1 = vpop.eup %4186 }
 0xbba   :  { %v886_v2 = vrot.slane %v4187_v1, %v4411_v35 }
 0xbbc   :  { %v893_v3 = vrot.slane %v886_v2, %v4411_v35  ;;  %v1081_v2 = vld [vmem:[#allocation3 + $0x50] sm:$0xff] }
 0xbbd   :  { %vm1083_vm10 = vcmp.ge.u32.totalorder %v1081_v2, 2147483648 }
 0xbbe   :  { %894 = vrot.lane.b32.xlu1 %v893_v3, %s4259_s28 }
 0xc30   :  { %v895_v4 = vpop.permute.xlu1 %894 }
 0xc31   :  { %v897_v5 = vmul.f32 %v895_v4, %v4439_v45 }
 0xc33   :  { %v898_v6 = vmul.f32 %v897_v5, %v869_v58  ;;  %v901_v7 = vmul.f32 2.0, %v897_v5 }
 0xc35   :  { %v899_v8 = vsub.f32 %v4447_v49, %v898_v6  ;;  %v906_v9 = vrot.slane %v901_v7, %v4441_v47  ;;  %v1082_v6 = vld [vmem:[#allocation3 + $0x58] sm:$0xff] }
 0xc36   :  { %vm1084_vm11 = vcmp.ge.u32.totalorder %v1082_v6, 2147483648 }
 0xc37   :  { %v900_v10 = vmul.f32 2.0, %v899_v8  ;;  %v908_v12 = vmul.f32 %v906_v9, %v840_v34  ;;  %v909_v13 = vmul.f32 %v906_v9, %v845_v31 }
 0xc39   :  { %v914_v14 = vrot.slane %v900_v10, %v4441_v47 }
 0xc3b   :  { %v916_v16 = vadd.f32 %v914_v14, %v908_v12  ;;  %v917_v17 = vadd.f32 %v914_v14, %v909_v13 }
 0xc3d   :  { %vm923_vm5 = vcmp.gt.f32.partialorder %v916_v16, 0.0  ;;  %vm924_vm6 = vcmp.gt.f32.partialorder %v917_v17, 0.0 }
 0xc3e   :  { %vm925_vm7 = vmand %vm921_vm3, %vm923_vm5 }
 0xc3f   :  { %v927_v18 = vsel %vm925_vm7, %v916_v16, 0.0  ;;  %vm926_vm8 = vmand %vm922_vm4, %vm924_vm6 }
 0xc40   :  { %3897 = vmatprep.mubr.msk.f32.mxu1 %vm183_vm1, %v927_v18  ;;  %v928_v19 = vsel %vm926_vm8, %v917_v17, 0.0 }
 0xc41   :  { %3898 = vmatmul.mubr.msk.f32.vlgmr.msra.gmra.mrb[4].mxu1 %vm183_vm1, %v928_v19 }
 0xc42   :  { %4090 = vmatpush3.bf16.msra.mxu1 %v4476_v30 }
 0xd14   :  { %v3899_v20 = vpop.f32.mrb[4].mxu1 }
 0xd15   :  { %v1007_v21 = vadd.f32 %v3899_v20, %v4458_v0  ;;  %v1001_v22 = vpop.f32.mrb[5].mxu1 }
 0xd16   :  { %v1002_v23 = vadd.f32 %v4458_v0, %v1001_v22 }
 0xd17   :  { %v1011_v24 = vmul.f32 %v1007_v21, %v1007_v21 }
 0xd18   :  { %v1010_v25 = vmul.f32 %v1002_v23, %v1002_v23 }
 0xd19   :  { %1016 = vrot.lane.b32.xlu1 %v1011_v24, %s4260_s1 }
 0xd1a   :  { %1014 = vrot.lane.b32.xlu0 %v1010_v25, %s4260_s1 }
 0xd8b   :  { %v1017_v26 = vpop.permute.xlu1 %1016 }
 0xd8c   :  { %v1021_v27 = vsel %vm360_vm9, %v1007_v21, %v1017_v26  ;;  %v1015_v28 = vpop.permute.xlu0 %1014 }
 0xd8d   :  { %v1023_v29 = vsel %vm183_vm1, %v1021_v27, 0.0  ;;  %v1020_v31 = vsel %vm360_vm9, %v1002_v23, %v1015_v28 }
 0xd8e   :  { %v1022_v33 = vsel %vm183_vm1, %v1020_v31, 0.0 }
 0xd8f   :  { %v1024_v34 = vadd.f32 %v1023_v29, %v1022_v33 }
 0xd91   :  { %v1025_v37 = vrot.slane %v1024_v34, 4 }
 0xd93   :  { %v1026_v39 = vadd.f32 %v1025_v37, %v1024_v34 }
 0xd95   :  { %v1027_v40 = vrot.slane %v1026_v39, 2 }
 0xd97   :  { %v1028_v42 = vadd.f32 %v1027_v40, %v1026_v39 }
 0xd99   :  { %v1029_v43 = vrot.slane %v1028_v42, 1 }
 0xd9b   :  { %v1030_v44 = vadd.f32 %v1029_v43, %v1028_v42 }
 0xd9d   :  { %v1031_v46 = vmul.f32 0.0625, %v1030_v44 }
 0xd9f   :  { %v1032_v48 = vmul.f32 %v1031_v46, %v1031_v46 }
 0xda1   :  { %1034 = vrot.lane.b32.xlu0 %v1032_v48, %s4260_s1 }
 0xe13   :  { %v1035_v50 = vpop.permute.xlu0 %1034 }
 0xe14   :  { %v1037_v51 = vsub.f32 %v1031_v46, %v1035_v50 }
 0xe16   :  { %v1038_v52 = vmax.f32 %v1037_v51, 0.0 }
 0xe18   :  { %v1039_v53 = vadd.f32 1e-07, %v1038_v52 }
 0xe1a   :  { %4188 = vrsqrt.f32 %v1039_v53 }
 0xe24   :  { %v4189_v54 = vpop.eup %4188 }
 0xe25   :  { %v1048_v55 = vrot.slane %v4189_v54, %v4411_v35 }
 0xe27   :  { %v1055_v57 = vrot.slane %v1048_v55, %v4411_v35  ;;  %v1243_v55 = vld [vmem:[#allocation3 + $0x60] sm:$0xff] }
 0xe28   :  { %vm1245_vm3 = vcmp.ge.u32.totalorder %v1243_v55, 2147483648 }
 0xe29   :  { %1056 = vrot.lane.b32.xlu1 %v1055_v57, %s4261_s27 }
 0xe9b   :  { %v1057_v58 = vpop.permute.xlu1 %1056 }
 0xe9c   :  { %v1059_v59 = vmul.f32 %v1057_v58, %v4489_v32 }
 0xe9e   :  { %v1060_v60 = vmul.f32 %v1059_v59, %v1031_v46  ;;  %v1063_v61 = vmul.f32 2.0, %v1059_v59 }
 0xea0   :  { %v1061_v62 = vsub.f32 %v4495_v36, %v1060_v60  ;;  %v1068_v63 = vrot.slane %v1063_v61, %v4441_v47  ;;  %v1244_v60 = vld [vmem:[#allocation3 + $0x68] sm:$0xff] }
 0xea1   :  { %vm1246_vm4 = vcmp.ge.u32.totalorder %v1244_v60, 2147483648 }
 0xea2   :  { %v1062_v1 = vmul.f32 2.0, %v1061_v62  ;;  %v1070_v3 = vmul.f32 %v1068_v63, %v1002_v23  ;;  %v1071_v4 = vmul.f32 %v1068_v63, %v1007_v21 }
 0xea4   :  { %v1076_v5 = vrot.slane %v1062_v1, %v4441_v47 }
 0xea6   :  { %v1078_v7 = vadd.f32 %v1076_v5, %v1070_v3  ;;  %v1079_v8 = vadd.f32 %v1076_v5, %v1071_v4 }
 0xea8   :  { %vm1085_vm12 = vcmp.gt.f32.partialorder %v1078_v7, 0.0  ;;  %vm1086_vm13 = vcmp.gt.f32.partialorder %v1079_v8, 0.0 }
 0xea9   :  { %vm1087_vm14 = vmand %vm1083_vm10, %vm1085_vm12 }
 0xeaa   :  { %v1089_v9 = vsel %vm1087_vm14, %v1078_v7, 0.0  ;;  %vm1088_vm15 = vmand %vm1084_vm11, %vm1086_vm13 }
 0xeab   :  { %3904 = vmatprep.mubr.msk.f32.mxu0 %vm360_vm9, %v1089_v9  ;;  %v1090_v10 = vsel %vm1088_vm15, %v1079_v8, 0.0 }
 0xeac   :  { %3905 = vmatmul.mubr.msk.f32.vlgmr.msra.gmra.mrb[6].mxu0 %vm360_vm9, %v1090_v10 }
 0xead   :  { %4082 = vmatpush3.bf16.msra.mxu0 %v4419_v38 }
 0xeae   :  { %4084 = vmatprep.subr.bf16.mxu0 %v4427_v41 }
 0xeb1   :  { %4086 = vmatpush3.bf16.msra.mxu0 %v4427_v41 }
 0xf7f   :  { %v3906_v11 = vpop.f32.mrb[6].mxu0 }
 0xf80   :  { %v1169_v12 = vadd.f32 %v3906_v11, %v4509_v56  ;;  %v1163_v13 = vpop.f32.mrb[7].mxu0 }
 0xf81   :  { %v1164_v14 = vadd.f32 %v4509_v56, %v1163_v13 }
 0xf82   :  { %v1173_v15 = vmul.f32 %v1169_v12, %v1169_v12 }
 0xf83   :  { %v1172_v16 = vmul.f32 %v1164_v14, %v1164_v14 }
 0xf84   :  { %1178 = vrot.lane.b32.xlu1 %v1173_v15, %s4257_s13 }
 0xf85   :  { %1176 = vrot.lane.b32.xlu0 %v1172_v16, %s4257_s13 }
 0xff6   :  { %v1179_v17 = vpop.permute.xlu1 %1178 }
 0xff7   :  { %v1183_v18 = vsel %vm183_vm1, %v1169_v12, %v1179_v17  ;;  %v1177_v19 = vpop.permute.xlu0 %1176 }
 0xff8   :  { %v1185_v20 = vsel %vm186_vm2, %v1183_v18, 0.0  ;;  %v1182_v21 = vsel %vm183_vm1, %v1164_v14, %v1177_v19 }
 0xff9   :  { %v1184_v22 = vsel %vm186_vm2, %v1182_v21, 0.0 }
 0xffa   :  { %v1186_v23 = vadd.f32 %v1185_v20, %v1184_v22 }
 0xffc   :  { %v1187_v24 = vrot.slane %v1186_v23, 4 }
 0xffe   :  { %v1188_v25 = vadd.f32 %v1187_v24, %v1186_v23 }
0x1000   :  { %v1189_v26 = vrot.slane %v1188_v25, 2 }
0x1002   :  { %v1190_v27 = vadd.f32 %v1189_v26, %v1188_v25 }
0x1004   :  { %v1191_v28 = vrot.slane %v1190_v27, 1 }
0x1006   :  { %v1192_v29 = vadd.f32 %v1191_v28, %v1190_v27 }
0x1008   :  { %v1193_v31 = vmul.f32 0.0625, %v1192_v29 }
0x100a   :  { %v1194_v33 = vmul.f32 %v1193_v31, %v1193_v31 }
0x100c   :  { %1196 = vrot.lane.b32.xlu0 %v1194_v33, %s4257_s13 }
0x107e   :  { %v1197_v34 = vpop.permute.xlu0 %1196 }
0x107f   :  { %v1199_v37 = vsub.f32 %v1193_v31, %v1197_v34 }
0x1081   :  { %v1200_v39 = vmax.f32 %v1199_v37, 0.0 }
0x1083   :  { %v1201_v40 = vadd.f32 1e-07, %v1200_v39 }
0x1085   :  { %4190 = vrsqrt.f32 %v1201_v40 }
0x108f   :  { %v4191_v42 = vpop.eup %4190 }
0x1090   :  { %v1210_v43 = vrot.slane %v4191_v42, %v4411_v35  ;;  %v1405_v42 = vld [vmem:[#allocation3 + $0x70] sm:$0xff] }
0x1091   :  { %vm1407_vm10 = vcmp.ge.u32.totalorder %v1405_v42, 2147483648  ;;  %v3706_v42 = vld [vmem:[%s4989_s9] ss:$0 sm:$0xff] }
0x1092   :  { %v1217_v44 = vrot.slane %v1210_v43, %v4411_v35 }
0x1094   :  { %1218 = vrot.lane.b32.xlu1 %v1217_v44, %s4259_s28 }
0x1106   :  { %v1219_v46 = vpop.permute.xlu1 %1218 }
0x1107   :  { %v1221_v48 = vmul.f32 %v1219_v46, %v4439_v45 }
0x1109   :  { %v1222_v50 = vmul.f32 %v1221_v48, %v1193_v31  ;;  %v1225_v51 = vmul.f32 2.0, %v1221_v48  ;;  %v1406_v48 = vld [vmem:[#allocation3 + $0x78] sm:$0xff] }
0x110a   :  { %vm1408_vm11 = vcmp.ge.u32.totalorder %v1406_v48, 2147483648 }
0x110b   :  { %v1223_v52 = vsub.f32 %v4447_v49, %v1222_v50  ;;  %v1230_v53 = vrot.slane %v1225_v51, %v4441_v47 }
0x110d   :  { %v1224_v54 = vmul.f32 2.0, %v1223_v52  ;;  %v1232_v57 = vmul.f32 %v1230_v53, %v1164_v14  ;;  %v1233_v58 = vmul.f32 %v1230_v53, %v1169_v12 }
0x110f   :  { %v1238_v59 = vrot.slane %v1224_v54, %v4441_v47 }
0x1111   :  { %v1240_v61 = vadd.f32 %v1238_v59, %v1232_v57  ;;  %v1241_v62 = vadd.f32 %v1238_v59, %v1233_v58 }
0x1113   :  { %vm1247_vm5 = vcmp.gt.f32.partialorder %v1240_v61, 0.0  ;;  %vm1248_vm6 = vcmp.gt.f32.partialorder %v1241_v62, 0.0 }
0x1114   :  { %vm1249_vm7 = vmand %vm1245_vm3, %vm1247_vm5 }
0x1115   :  { %v1251_v63 = vsel %vm1249_vm7, %v1240_v61, 0.0  ;;  %vm1250_vm8 = vmand %vm1246_vm4, %vm1248_vm6 }
0x1116   :  { %3915 = vmatprep.mubr.msk.f32.mxu0 %vm183_vm1, %v1251_v63  ;;  %v1252_v1 = vsel %vm1250_vm8, %v1241_v62, 0.0 }
0x1117   :  { %3916 = vmatmul.mubr.msk.f32.vlgmr.msra.gmra.mrb[8].mxu0 %vm183_vm1, %v1252_v1 }
0x11ea   :  { %v3917_v2 = vpop.f32.mrb[8].mxu0 }
0x11eb   :  { %v1331_v3 = vadd.f32 %v3917_v2, %v4458_v0  ;;  %v1325_v4 = vpop.f32.mrb[9].mxu0 }
0x11ec   :  { %v1326_v5 = vadd.f32 %v4458_v0, %v1325_v4 }
0x11ed   :  { %v1335_v6 = vmul.f32 %v1331_v3, %v1331_v3 }
0x11ee   :  { %v1334_v7 = vmul.f32 %v1326_v5, %v1326_v5 }
0x11ef   :  { %1340 = vrot.lane.b32.xlu1 %v1335_v6, %s4260_s1 }
0x11f0   :  { %1338 = vrot.lane.b32.xlu0 %v1334_v7, %s4260_s1 }
0x1261   :  { %v1341_v8 = vpop.permute.xlu1 %1340 }
0x1262   :  { %v1345_v9 = vsel %vm360_vm9, %v1331_v3, %v1341_v8  ;;  %v1339_v10 = vpop.permute.xlu0 %1338 }
0x1263   :  { %v1347_v11 = vsel %vm183_vm1, %v1345_v9, 0.0  ;;  %v1344_v12 = vsel %vm360_vm9, %v1326_v5, %v1339_v10 }
0x1264   :  { %v1346_v13 = vsel %vm183_vm1, %v1344_v12, 0.0 }
0x1265   :  { %v1348_v14 = vadd.f32 %v1347_v11, %v1346_v13 }
0x1267   :  { %v1349_v15 = vrot.slane %v1348_v14, 4 }
0x1269   :  { %v1350_v16 = vadd.f32 %v1349_v15, %v1348_v14  ;;  %v1577_v14 = vld [vmem:[%s4988_s8] sm:$0xff]  ;;  %v1578_v15 = vld [vmem:[%s4988_s8 + $0x8] sm:$0xff] }
0x126b   :  { %v1351_v0 = vrot.slane %v1350_v16, 2 }
0x126d   :  { %v1352_v17 = vadd.f32 %v1351_v0, %v1350_v16  ;;  %v4644_v16 = vpack.c.bf16 %v1578_v15, %v1577_v14  ;;  %v1700_v14 = vld [vmem:[%s4998_s18] sm:$0x1] }
0x126f   :  { %v1353_v18 = vrot.slane %v1352_v17, 1  ;;  %4092 = vmatprep.subr.bf16.mxu1 %v4644_v16 }
0x1271   :  { %v1354_v19 = vadd.f32 %v1353_v18, %v1352_v17  ;;  %v1579_v17 = vld [vmem:[%s4988_s8 + $0x10] sm:$0xff]  ;;  %v1580_v18 = vld [vmem:[%s4988_s8 + $0x18] sm:$0xff] }
0x1273   :  { %v1355_v20 = vmul.f32 0.0625, %v1354_v19 }
0x1275   :  { %v1356_v21 = vmul.f32 %v1355_v20, %v1355_v20 }
0x1277   :  { %1358 = vrot.lane.b32.xlu0 %v1356_v21, %s4260_s1 }
0x12e9   :  { %v1359_v22 = vpop.permute.xlu0 %1358 }
0x12ea   :  { %v1361_v23 = vsub.f32 %v1355_v20, %v1359_v22 }
0x12ec   :  { %v1362_v24 = vmax.f32 %v1361_v23, 0.0 }
0x12ee   :  { %v1363_v25 = vadd.f32 1e-07, %v1362_v24 }
0x12f0   :  { %4192 = vrsqrt.f32 %v1363_v25 }
0x12fa   :  { %v4193_v26 = vpop.eup %4192 }
0x12fb   :  { %v1372_v27 = vrot.slane %v4193_v26, %v4411_v35 }
0x12fd   :  { %v1379_v28 = vrot.slane %v1372_v27, %v4411_v35 }
0x12ff   :  { %1380 = vrot.lane.b32.xlu1 %v1379_v28, %s4261_s27 }
0x1371   :  { %v1381_v29 = vpop.permute.xlu1 %1380 }
0x1372   :  { %v1383_v31 = vmul.f32 %v1381_v29, %v4489_v32  ;;  %v1567_v29 = vld [vmem:[#allocation3 + $0x80] sm:$0xff] }
0x1373   :  { %vm1569_vm3 = vcmp.ge.u32.totalorder %v1567_v29, 2147483648 }
0x1374   :  { %v1384_v33 = vmul.f32 %v1383_v31, %v1355_v20  ;;  %v1387_v34 = vmul.f32 2.0, %v1383_v31  ;;  %v4654_v20 = vpack.c.bf16 %v1580_v18, %v1579_v17  ;;  %v1722_v17 = vld [vmem:[%s4999_s19] sm:$0x1] }
0x1376   :  { %v1385_v37 = vsub.f32 %v4495_v36, %v1384_v33  ;;  %v1392_v39 = vrot.slane %v1387_v34, %v4441_v47 }
0x1378   :  { %v1386_v40 = vmul.f32 2.0, %v1385_v37  ;;  %v1394_v43 = vmul.f32 %v1392_v39, %v1326_v5  ;;  %v1395_v44 = vmul.f32 %v1392_v39, %v1331_v3  ;;  %v1568_v37 = vld [vmem:[#allocation3 + $0x88] sm:$0xff] }
0x1379   :  { %vm1570_vm4 = vcmp.ge.u32.totalorder %v1568_v37, 2147483648  ;;  %v3709_v37 = vld [vmem:[%s4991_s11] ss:$0 sm:$0xff] }
0x137a   :  { %v1400_v46 = vrot.slane %v1386_v40, %v4441_v47 }
0x137c   :  { %v1402_v50 = vadd.f32 %v1400_v46, %v1394_v43  ;;  %v1403_v51 = vadd.f32 %v1400_v46, %v1395_v44 }
0x137e   :  { %vm1409_vm12 = vcmp.gt.f32.partialorder %v1402_v50, 0.0  ;;  %vm1410_vm13 = vcmp.gt.f32.partialorder %v1403_v51, 0.0 }
0x137f   :  { %vm1411_vm14 = vmand %vm1407_vm10, %vm1409_vm12  ;;  %vm1679_vm10 = vcmask 97280   ;;  %vm1769_vm12 = vcmask 1043456  }
0x1380   :  { %v1413_v32 = vsel %vm1411_vm14, %v1402_v50, 0.0  ;;  %vm1412_vm15 = vmand %vm1408_vm11, %vm1410_vm13  ;;  %vm1682_vm11 = vcmask 195584   ;;  %vm4263_vm13 = vmmov 1  }
0x1381   :  { %3922 = vmatprep.mubr.msk.f32.mxu1 %vm360_vm9, %v1413_v32  ;;  %v1414_v36 = vsel %vm1412_vm15, %v1403_v51, 0.0  ;;  %vm4691_vm14 = vmpackc.low %vm1769_vm12, %vm4263_vm13 }
0x1382   :  { %3923 = vmatmul.mubr.msk.f32.vlgmr.msra.gmra.mrb[6].mxu1 %vm360_vm9, %v1414_v36 }
0x1383   :  { %4094 = vmatpush3.bf16.msra.mxu1 %v4644_v16 }
0x1384   :  { %4096 = vmatprep.subr.bf16.mxu1 %v4654_v20 }
0x1387   :  { %4098 = vmatpush3.bf16.msra.mxu1 %v4654_v20 }
0x1388   :  { %4106 = vmatprep.subr.bf16.mxu1 %v4419_v38 }
0x1455   :  { %v3924_v52 = vpop.f32.mrb[6].mxu1 }
0x1456   :  { %v1493_v53 = vadd.f32 %v3924_v52, %v4509_v56  ;;  %v1487_v54 = vpop.f32.mrb[7].mxu1 }
0x1457   :  { %v1488_v55 = vadd.f32 %v4509_v56, %v1487_v54 }
0x1458   :  { %v1497_v57 = vmul.f32 %v1493_v53, %v1493_v53 }
0x1459   :  { %v1496_v58 = vmul.f32 %v1488_v55, %v1488_v55 }
0x145a   :  { %1502 = vrot.lane.b32.xlu1 %v1497_v57, %s4257_s13 }
0x145b   :  { %1500 = vrot.lane.b32.xlu0 %v1496_v58, %s4257_s13 }
0x14cc   :  { %v1503_v59 = vpop.permute.xlu1 %1502 }
0x14cd   :  { %v1507_v60 = vsel %vm183_vm1, %v1493_v53, %v1503_v59  ;;  %v1501_v61 = vpop.permute.xlu0 %1500 }
0x14ce   :  { %v1509_v62 = vsel %vm186_vm2, %v1507_v60, 0.0  ;;  %v1506_v63 = vsel %vm183_vm1, %v1488_v55, %v1501_v61 }
0x14cf   :  { %v1508_v1 = vsel %vm186_vm2, %v1506_v63, 0.0 }
0x14d0   :  { %v1510_v2 = vadd.f32 %v1509_v62, %v1508_v1 }
0x14d2   :  { %v1511_v3 = vrot.slane %v1510_v2, 4 }
0x14d4   :  { %v1512_v4 = vadd.f32 %v1511_v3, %v1510_v2 }
0x14d6   :  { %v1513_v56 = vrot.slane %v1512_v4, 2 }
0x14d8   :  { %v1514_v5 = vadd.f32 %v1513_v56, %v1512_v4 }
0x14da   :  { %v1515_v6 = vrot.slane %v1514_v5, 1 }
0x14dc   :  { %v1516_v7 = vadd.f32 %v1515_v6, %v1514_v5 }
0x14de   :  { %v1517_v8 = vmul.f32 0.0625, %v1516_v7  ;;  %v1754_v7 = vld [vmem:[%s4990_s10] sm:$0xff] }
0x14e0   :  { %v1518_v9 = vmul.f32 %v1517_v8, %v1517_v8 }
0x14e2   :  { %1520 = vrot.lane.b32.xlu0 %v1518_v9, %s4257_s13 }
0x1554   :  { %v1521_v10 = vpop.permute.xlu0 %1520 }
0x1555   :  { %v1523_v11 = vsub.f32 %v1517_v8, %v1521_v10 }
0x1557   :  { %v1524_v12 = vmax.f32 %v1523_v11, 0.0 }
0x1559   :  { %v1525_v13 = vadd.f32 1e-07, %v1524_v12 }
0x155b   :  { %4194 = vrsqrt.f32 %v1525_v13  ;;  %v4218_v13 = vld [vmem:[%s5012_s2] sm:$0xff] }
0x1565   :  { %v4195_v0 = vpop.eup %4194 }
0x1566   :  { %v1534_v19 = vrot.slane %v4195_v0, %v4411_v35 }
0x1568   :  { %v1541_v21 = vrot.slane %v1534_v19, %v4411_v35 }
0x156a   :  { %1542 = vrot.lane.b32.xlu1 %v1541_v21, %s4259_s28 }
0x15dc   :  { %v1543_v22 = vpop.permute.xlu1 %1542 }
0x15dd   :  { %v1545_v23 = vmul.f32 %v1543_v22, %v4439_v45 }
0x15df   :  { %v1546_v24 = vmul.f32 %v1545_v23, %v1517_v8  ;;  %v1549_v25 = vmul.f32 2.0, %v1545_v23  ;;  %v1755_v8 = vld [vmem:[%s4990_s10 + $0x8] sm:$0xf]  ;;  %s4264_s10 = smov 116  }
0x15e0   :  { %v4689_v10 = vpack.c.bf16 %v1755_v8, %v1754_v7 }
0x15e1   :  { %v1547_v26 = vsub.f32 %v4447_v49, %v1546_v24  ;;  %v1554_v27 = vrot.slane %v1549_v25, %v4441_v47  ;;  %v1744_v24 = vld [vmem:[#allocation3 + $0x90] sm:$0xff] }
0x15e2   :  { %4101 = vmatprep.subr.msk.bf16.mxu0 %vm4691_vm14, %v4689_v10  ;;  %vm1746_vm15 = vcmp.ge.u32.totalorder %v1744_v24, 1288490188 }
0x15e3   :  { %v1548_v28 = vmul.f32 2.0, %v1547_v26  ;;  %v1556_v31 = vmul.f32 %v1554_v27, %v1488_v55  ;;  %v1557_v33 = vmul.f32 %v1554_v27, %v1493_v53  ;;  %4104 = vmatpush3.bf16.msk.msra.mxu0 %vm4691_vm14, %v4689_v10 }
0x15e4   :  { %3943 = vmatprep.subr.mxu0 %v4218_v13 }
0x15e5   :  { %v1562_v34 = vrot.slane %v1548_v28, %v4441_v47  ;;  %v1745_v28 = vld [vmem:[#allocation3 + $0x98] sm:$0xff] }
0x15e7   :  { %v1564_v39 = vadd.f32 %v1562_v34, %v1556_v31  ;;  %v1565_v40 = vadd.f32 %v1562_v34, %v1557_v33 }
0x15e9   :  { %vm1571_vm5 = vcmp.gt.f32.partialorder %v1564_v39, 0.0  ;;  %vm1572_vm6 = vcmp.gt.f32.partialorder %v1565_v40, 0.0 }
0x15ea   :  { %vm1573_vm7 = vmand %vm1569_vm3, %vm1571_vm5  ;;  %vm1747_vm3 = vcmp.ge.u32.totalorder %v1745_v28, 1288490188 }
0x15eb   :  { %v1575_v45 = vsel %vm1573_vm7, %v1564_v39, 0.0  ;;  %vm1574_vm8 = vmand %vm1570_vm4, %vm1572_vm6 }
0x15ec   :  { %3933 = vmatprep.mubr.msk.f32.mxu1 %vm183_vm1, %v1575_v45  ;;  %v1576_v49 = vsel %vm1574_vm8, %v1565_v40, 0.0  ;;  %v1852_v40 = vld [vmem:[#allocation3 + $0xa8] sm:$0xff] }
0x15ed   :  { %3934 = vmatmul.mubr.msk.f32.vlgmr.msra.gmra.mrb[8].mxu1 %vm183_vm1, %v1576_v49  ;;  %vm1854_vm8 = vcmp.ge.u32.totalorder %v1852_v40, 1288490188 }
0x15ee   :  { %4108 = vmatpush3.bf16.msra.mxu1 %v4419_v38 }
0x15ef   :  { %4110 = vmatprep.subr.bf16.mxu1 %v4427_v41 }
0x15f2   :  { %4112 = vmatpush3.bf16.msra.mxu1 %v4427_v41 }
0x15f3   :  { %4126 = vmatprep.subr.bf16.mxu1 %v4476_v30 }
0x16c0   :  { %v3935_v43 = vpop.f32.mrb[8].mxu1 }
0x16c1   :  { %v1666_v44 = vadd.f32 %v3935_v43, %v3706_v42  ;;  %v1660_v46 = vpop.f32.mrb[9].mxu1 }
0x16c2   :  { %v1661_v48 = vadd.f32 %v3706_v42, %v1660_v46  ;;  %v1851_v42 = vld [vmem:[#allocation3 + $0xa0] sm:$0xff] }
0x16c3   :  { %v1670_v50 = vmul.f32 %v1666_v44, %v1666_v44  ;;  %vm1853_vm12 = vcmp.ge.u32.totalorder %v1851_v42, 1288490188 }
0x16c4   :  { %v1669_v51 = vmul.f32 %v1661_v48, %v1661_v48 }
0x16c5   :  { %1675 = vrot.lane.b32.xlu1 %v1670_v50, %s4262_s30 }
0x16c6   :  { %1673 = vrot.lane.b32.xlu0 %v1669_v51, %s4262_s30 }
0x1737   :  { %v1676_v32 = vpop.permute.xlu1 %1675 }
0x1738   :  { %v1681_v36 = vsel %vm1679_vm10, %v1666_v44, %v1676_v32  ;;  %v1674_v52 = vpop.permute.xlu0 %1673  ;;  %v4219_v32 = vld [vmem:[%s5014_s29] ss:$0 sm:$0xff] }
0x1739   :  { %v1684_v53 = vsel %vm1682_vm11, %v1681_v36, 0.0  ;;  %v1680_v54 = vsel %vm1679_vm10, %v1661_v48, %v1674_v52 }
0x173a   :  { %v1683_v55 = vsel %vm1682_vm11, %v1680_v54, 0.0 }
0x173b   :  { %v1685_v57 = vadd.f32 %v1684_v53, %v1683_v55 }
0x173d   :  { %v1686_v58 = vrot.slane %v1685_v57, 4 }
0x173f   :  { %v1687_v59 = vadd.f32 %v1686_v58, %v1685_v57 }
0x1741   :  { %v1688_v60 = vrot.slane %v1687_v59, 2 }
0x1743   :  { %v1689_v61 = vadd.f32 %v1688_v60, %v1687_v59 }
0x1745   :  { %v1690_v62 = vrot.slane %v1689_v61, 1 }
0x1747   :  { %v1691_v63 = vadd.f32 %v1690_v62, %v1689_v61 }
0x1749   :  { %v1692_v1 = vmul.f32 0.0625, %v1691_v63 }
0x174b   :  { %v1693_v2 = vmul.f32 %v1692_v1, %v1692_v1 }
0x174d   :  { %1695 = vrot.lane.b32.xlu0 %v1693_v2, %s4262_s30 }
0x17bf   :  { %v1696_v3 = vpop.permute.xlu0 %1695 }
0x17c0   :  { %v1698_v4 = vsub.f32 %v1692_v1, %v1696_v3 }
0x17c2   :  { %v1699_v56 = vmax.f32 %v1698_v4, 0.0 }
0x17c4   :  { %v1701_v5 = vadd.f32 1e-07, %v1699_v56 }
0x17c6   :  { %4196 = vrsqrt.f32 %v1701_v5 }
0x17d0   :  { %v4197_v6 = vpop.eup %4196 }
0x17d1   :  { %v1710_v9 = vrot.slane %v4197_v6, %v4411_v35 }
0x17d3   :  { %v1717_v12 = vrot.slane %v1710_v9, %v4411_v35 }
0x17d5   :  { %1718 = vrot.lane.b32.xlu1 %v1717_v12, %s4264_s10 }
0x1847   :  { %v1719_v15 = vpop.permute.xlu1 %1718 }
0x1848   :  { %v1721_v0 = vmul.f32 %v1719_v15, %v1700_v14 }
0x184a   :  { %v1723_v18 = vmul.f32 %v1721_v0, %v1692_v1  ;;  %v1726_v19 = vmul.f32 1.4285715, %v1721_v0 }
0x184c   :  { %v1724_v21 = vsub.f32 %v1722_v17, %v1723_v18  ;;  %v1731_v22 = vrot.slane %v1726_v19, %v4441_v47  ;;  %v4740_v18 = vld [vmem:[%s4996_s16] sm:$0x1] }
0x184e   :  { %v1725_v23 = vmul.f32 1.4285715, %v1724_v21  ;;  %v1733_v25 = vmul.f32 %v1731_v22, %v1661_v48  ;;  %v1734_v26 = vmul.f32 %v1731_v22, %v1666_v44 }
0x1850   :  { %v1739_v27 = vrot.slane %v1725_v23, %v4441_v47  ;;  %v4746_v23 = vld [vmem:[%s4997_s17] sm:$0x1] }
0x1852   :  { %v1741_v29 = vadd.f32 %v1739_v27, %v1733_v25  ;;  %v1742_v31 = vadd.f32 %v1739_v27, %v1734_v26  ;;  %v2013_v27 = vld [vmem:[#allocation3 + $0xb0] sm:$0xff] }
0x1854   :  { %vm1748_vm4 = vcmp.gt.f32.partialorder %v1741_v29, 0.0  ;;  %vm1749_vm5 = vcmp.gt.f32.partialorder %v1742_v31, 0.0 }
0x1855   :  { %vm1750_vm6 = vmand %vm1746_vm15, %vm1748_vm4 }
0x1856   :  { %v1752_v33 = vsel %vm1750_vm6, %v1741_v29, 0.0  ;;  %vm1751_vm7 = vmand %vm1747_vm3, %vm1749_vm5  ;;  %vm2015_vm5 = vcmp.ge.u32.totalorder %v2013_v27, 1288490188 }
0x1857   :  { %3940 = vmatprep.mubr.msk.f32.mxu0 %vm1679_vm10, %v1752_v33  ;;  %v1753_v34 = vsel %vm1751_vm7, %v1742_v31, 0.0  ;;  %v2014_v33 = vld [vmem:[#allocation3 + $0xb8] sm:$0xff] }
0x1858   :  { %3941 = vmatmul.mubr.msk.f32.vlgmr.msra.gmra.mrb[10].mxu0 %vm1679_vm10, %v1753_v34  ;;  %vm2016_vm6 = vcmp.ge.u32.totalorder %v2014_v33, 1288490188  ;;  %v4795_v33 = vld [vmem:[%s4987_s7] ss:$0 sm:$0xff] }
0x1859   :  { %3944 = vmatpush3.msra.mxu0 %v4218_v13 }
0x185a   :  { %4114 = vmatprep.subr.bf16.mxu0 %v4476_v30 }
0x192b   :  { %v3942_v39 = vpop.f32.mrb[10].mxu0 }
0x192c   :  { %v1845_v45 = vadd.f32 %v3942_v39, %v3709_v37  ;;  %v1839_v49 = vpop.f32.mrb[11].mxu0 }
0x192d   :  { %v1840_v43 = vadd.f32 %v3709_v37, %v1839_v49  ;;  %v4758_v49 = vld [vmem:[%s4985_s5] ss:$0 sm:$0xff] }
0x192e   :  { %v1849_v44 = vmul.f32 1.4285715, %v1845_v45 }
0x192f   :  { %v1848_v46 = vmul.f32 1.4285715, %v1840_v43 }
0x1930   :  { %vm1856_vm13 = vcmp.gt.f32.partialorder %v1849_v44, 0.0 }
0x1931   :  { %vm1858_vm15 = vmand %vm1854_vm8, %vm1856_vm13  ;;  %vm1855_vm3 = vcmp.gt.f32.partialorder %v1848_v46, 0.0 }
0x1932   :  { %vm1857_vm4 = vmand %vm1853_vm12, %vm1855_vm3  ;;  %v1860_v50 = vsel %vm1858_vm15, %v1849_v44, 0.0 }
0x1933   :  { %v1859_v48 = vsel %vm1857_vm4, %v1848_v46, 0.0 }
0x1934   :  { %3945 = vmatprep.mubr.msk.f32.mxu0 %vm91_vm0, %v1859_v48 }
0x1935   :  { %3946 = vmatmul.mubr.msk.f32.vlgmr.msra.gmra.mrb[12].mxu0 %vm91_vm0, %v1860_v50 }
0x1936   :  { %4116 = vmatpush3.bf16.msra.mxu0 %v4476_v30 }
0x1937   :  { %4118 = vmatprep.subr.bf16.mxu0 %v4419_v38 }
0x1a08   :  { %v3947_v51 = vpop.f32.mrb[12].mxu0 }
0x1a09   :  { %v1939_v36 = vadd.f32 %v4219_v32, %v3947_v51  ;;  %v1933_v52 = vpop.f32.mrb[13].mxu0 }
0x1a0a   :  { %v1934_v53 = vadd.f32 %v4219_v32, %v1933_v52 }
0x1a0b   :  { %v1943_v54 = vmul.f32 %v1939_v36, %v1939_v36 }
0x1a0c   :  { %v1942_v55 = vmul.f32 %v1934_v53, %v1934_v53 }
0x1a0d   :  { %1948 = vrot.lane.b32.xlu1 %v1943_v54, %s4257_s13 }
0x1a0e   :  { %1946 = vrot.lane.b32.xlu0 %v1942_v55, %s4257_s13 }
0x1a7f   :  { %v1949_v57 = vpop.permute.xlu1 %1948 }
0x1a80   :  { %v1953_v58 = vsel %vm183_vm1, %v1939_v36, %v1949_v57  ;;  %v1947_v59 = vpop.permute.xlu0 %1946 }
0x1a81   :  { %v1955_v60 = vsel %vm186_vm2, %v1953_v58, 0.0  ;;  %v1952_v61 = vsel %vm183_vm1, %v1934_v53, %v1947_v59 }
0x1a82   :  { %v1954_v62 = vsel %vm186_vm2, %v1952_v61, 0.0 }
0x1a83   :  { %v1956_v63 = vadd.f32 %v1955_v60, %v1954_v62 }
0x1a85   :  { %v1957_v1 = vrot.slane %v1956_v63, 4 }
0x1a87   :  { %v1958_v2 = vadd.f32 %v1957_v1, %v1956_v63 }
0x1a89   :  { %v1959_v3 = vrot.slane %v1958_v2, 2 }
0x1a8b   :  { %v1960_v4 = vadd.f32 %v1959_v3, %v1958_v2 }
0x1a8d   :  { %v1961_v56 = vrot.slane %v1960_v4, 1 }
0x1a8f   :  { %v1962_v5 = vadd.f32 %v1961_v56, %v1960_v4 }
0x1a91   :  { %v1963_v6 = vmul.f32 0.0625, %v1962_v5 }
0x1a93   :  { %v1964_v7 = vmul.f32 %v1963_v6, %v1963_v6 }
0x1a95   :  { %1966 = vrot.lane.b32.xlu0 %v1964_v7, %s4257_s13 }
0x1b07   :  { %v1967_v8 = vpop.permute.xlu0 %1966 }
0x1b08   :  { %v1969_v9 = vsub.f32 %v1963_v6, %v1967_v8  ;;  %v4775_v8 = vld [vmem:[%s4994_s14] sm:$0x1] }
0x1b0a   :  { %v1970_v12 = vmax.f32 %v1969_v9, 0.0 }
0x1b0c   :  { %v1971_v13 = vadd.f32 1e-07, %v1970_v12 }
0x1b0e   :  { %4198 = vrsqrt.f32 %v1971_v13 }
0x1b18   :  { %v4199_v14 = vpop.eup %4198 }
0x1b19   :  { %v1980_v15 = vrot.slane %v4199_v14, %v4411_v35  ;;  %v4781_v14 = vld [vmem:[%s4995_s15] sm:$0x1] }
0x1b1b   :  { %v1987_v0 = vrot.slane %v1980_v15, %v4411_v35 }
0x1b1d   :  { %1988 = vrot.lane.b32.xlu1 %v1987_v0, %s4259_s28 }
0x1b8f   :  { %v1989_v17 = vpop.permute.xlu1 %1988 }
0x1b90   :  { %v1991_v19 = vmul.f32 %v4740_v18, %v1989_v17 }
0x1b92   :  { %v1992_v21 = vmul.f32 %v1991_v19, %v1963_v6  ;;  %v1995_v22 = vmul.f32 1.4285715, %v1991_v19  ;;  %v2175_v19 = vld [vmem:[#allocation3 + $0xc0] sm:$0xff] }
0x1b93   :  { %vm2177_vm15 = vcmp.ge.u32.totalorder %v2175_v19, 2147483648 }
0x1b94   :  { %v1993_v24 = vsub.f32 %v4746_v23, %v1992_v21  ;;  %v2000_v25 = vrot.slane %v1995_v22, %v4441_v47 }
0x1b96   :  { %v1994_v26 = vmul.f32 1.4285715, %v1993_v24  ;;  %v2002_v28 = vmul.f32 %v2000_v25, %v1934_v53  ;;  %v2003_v29 = vmul.f32 %v2000_v25, %v1939_v36  ;;  %v2176_v25 = vld [vmem:[#allocation3 + $0xc8] sm:$0xff] }
0x1b97   :  { %vm2178_vm3 = vcmp.ge.u32.totalorder %v2176_v25, 2147483648 }
0x1b98   :  { %v2008_v31 = vrot.slane %v1994_v26, %v4441_v47 }
0x1b9a   :  { %v2010_v34 = vadd.f32 %v2008_v31, %v2002_v28  ;;  %v2011_v37 = vadd.f32 %v2008_v31, %v2003_v29 }
0x1b9c   :  { %vm2017_vm7 = vcmp.gt.f32.partialorder %v2010_v34, 0.0  ;;  %vm2018_vm8 = vcmp.gt.f32.partialorder %v2011_v37, 0.0 }
0x1b9d   :  { %vm2019_vm12 = vmand %vm2015_vm5, %vm2017_vm7 }
0x1b9e   :  { %v2021_v39 = vsel %vm2019_vm12, %v2010_v34, 0.0  ;;  %vm2020_vm13 = vmand %vm2016_vm6, %vm2018_vm8 }
0x1b9f   :  { %3956 = vmatprep.mubr.msk.f32.mxu1 %vm183_vm1, %v2021_v39  ;;  %v2022_v40 = vsel %vm2020_vm13, %v2011_v37, 0.0 }
0x1ba0   :  { %3957 = vmatmul.mubr.msk.f32.vlgmr.msra.gmra.mrb[10].mxu1 %vm183_vm1, %v2022_v40 }
0x1ba1   :  { %4128 = vmatpush3.bf16.msra.mxu1 %v4476_v30 }
0x1ba2   :  { %4130 = vmatprep.subr.bf16.mxu1 %v4419_v38 }
0x1c73   :  { %v3958_v45 = vpop.f32.mrb[10].mxu1 }
0x1c74   :  { %v2101_v42 = vadd.f32 %v4758_v49, %v3958_v45  ;;  %v2095_v43 = vpop.f32.mrb[11].mxu1 }
0x1c75   :  { %v2096_v44 = vadd.f32 %v4758_v49, %v2095_v43 }
0x1c76   :  { %v2105_v46 = vmul.f32 %v2101_v42, %v2101_v42 }
0x1c77   :  { %v2104_v48 = vmul.f32 %v2096_v44, %v2096_v44 }
0x1c78   :  { %2110 = vrot.lane.b32.xlu1 %v2105_v46, %s4260_s1 }
0x1c79   :  { %2108 = vrot.lane.b32.xlu0 %v2104_v48, %s4260_s1 }
0x1cea   :  { %v2111_v50 = vpop.permute.xlu1 %2110 }
0x1ceb   :  { %v2115_v51 = vsel %vm360_vm9, %v2101_v42, %v2111_v50  ;;  %v2109_v32 = vpop.permute.xlu0 %2108 }
0x1cec   :  { %v2117_v36 = vsel %vm183_vm1, %v2115_v51, 0.0  ;;  %v2114_v52 = vsel %vm360_vm9, %v2096_v44, %v2109_v32 }
0x1ced   :  { %v2116_v53 = vsel %vm183_vm1, %v2114_v52, 0.0 }
0x1cee   :  { %v2118_v54 = vadd.f32 %v2117_v36, %v2116_v53 }
0x1cf0   :  { %v2119_v55 = vrot.slane %v2118_v54, 4 }
0x1cf2   :  { %v2120_v57 = vadd.f32 %v2119_v55, %v2118_v54 }
0x1cf4   :  { %v2121_v58 = vrot.slane %v2120_v57, 2 }
0x1cf6   :  { %v2122_v59 = vadd.f32 %v2121_v58, %v2120_v57 }
0x1cf8   :  { %v2123_v60 = vrot.slane %v2122_v59, 1 }
0x1cfa   :  { %v2124_v61 = vadd.f32 %v2123_v60, %v2122_v59 }
0x1cfc   :  { %v2125_v62 = vmul.f32 0.0625, %v2124_v61 }
0x1cfe   :  { %v2126_v63 = vmul.f32 %v2125_v62, %v2125_v62 }
0x1d00   :  { %2128 = vrot.lane.b32.xlu0 %v2126_v63, %s4260_s1 }
0x1d72   :  { %v2129_v1 = vpop.permute.xlu0 %2128 }
0x1d73   :  { %v2131_v2 = vsub.f32 %v2125_v62, %v2129_v1 }
0x1d75   :  { %v2132_v3 = vmax.f32 %v2131_v2, 0.0 }
0x1d77   :  { %v2133_v4 = vadd.f32 1e-07, %v2132_v3 }
0x1d79   :  { %4200 = vrsqrt.f32 %v2133_v4 }
0x1d83   :  { %v4201_v56 = vpop.eup %4200 }
0x1d84   :  { %v2142_v5 = vrot.slane %v4201_v56, %v4411_v35 }
0x1d86   :  { %v2149_v6 = vrot.slane %v2142_v5, %v4411_v35 }
0x1d88   :  { %2150 = vrot.lane.b32.xlu1 %v2149_v6, %s4261_s27 }
0x1dfa   :  { %v2151_v7 = vpop.permute.xlu1 %2150 }
0x1dfb   :  { %v2153_v9 = vmul.f32 %v4775_v8, %v2151_v7 }
0x1dfd   :  { %v2154_v12 = vmul.f32 %v2153_v9, %v2125_v62  ;;  %v2157_v13 = vmul.f32 2.0, %v2153_v9 }
0x1dff   :  { %v2155_v15 = vsub.f32 %v4781_v14, %v2154_v12  ;;  %v2162_v0 = vrot.slane %v2157_v13, %v4441_v47  ;;  %v2337_v12 = vld [vmem:[#allocation3 + $0xd0] sm:$0xff] }
0x1e00   :  { %vm2339_vm8 = vcmp.ge.u32.totalorder %v2337_v12, 2147483648 }
0x1e01   :  { %v2156_v17 = vmul.f32 2.0, %v2155_v15  ;;  %v2164_v21 = vmul.f32 %v2162_v0, %v2096_v44  ;;  %v2165_v22 = vmul.f32 %v2162_v0, %v2101_v42 }
0x1e03   :  { %v2170_v24 = vrot.slane %v2156_v17, %v4441_v47  ;;  %v2338_v17 = vld [vmem:[#allocation3 + $0xd8] sm:$0xff] }
0x1e04   :  { %vm2340_vm12 = vcmp.ge.u32.totalorder %v2338_v17, 2147483648 }
0x1e05   :  { %v2172_v26 = vadd.f32 %v2170_v24, %v2164_v21  ;;  %v2173_v27 = vadd.f32 %v2170_v24, %v2165_v22 }
0x1e07   :  { %vm2179_vm4 = vcmp.gt.f32.partialorder %v2172_v26, 0.0  ;;  %vm2180_vm5 = vcmp.gt.f32.partialorder %v2173_v27, 0.0 }
0x1e08   :  { %vm2181_vm6 = vmand %vm2177_vm15, %vm2179_vm4 }
0x1e09   :  { %v2183_v28 = vsel %vm2181_vm6, %v2172_v26, 0.0  ;;  %vm2182_vm7 = vmand %vm2178_vm3, %vm2180_vm5 }
0x1e0a   :  { %3963 = vmatprep.mubr.msk.f32.mxu0 %vm360_vm9, %v2183_v28  ;;  %v2184_v29 = vsel %vm2182_vm7, %v2173_v27, 0.0 }
0x1e0b   :  { %3964 = vmatmul.mubr.msk.f32.vlgmr.msra.gmra.mrb[14].mxu0 %vm360_vm9, %v2184_v29 }
0x1e0c   :  { %4120 = vmatpush3.bf16.msra.mxu0 %v4419_v38 }
0x1e0d   :  { %4122 = vmatprep.subr.bf16.mxu0 %v4427_v41 }
0x1e10   :  { %4124 = vmatpush3.bf16.msra.mxu0 %v4427_v41 }
0x1e11   :  { %4138 = vmatprep.subr.bf16.mxu0 %v4476_v30 }
0x1ede   :  { %v3965_v31 = vpop.f32.mrb[14].mxu0 }
0x1edf   :  { %v2263_v34 = vadd.f32 %v4795_v33, %v3965_v31  ;;  %v2257_v37 = vpop.f32.mrb[15].mxu0 }
0x1ee0   :  { %v2258_v39 = vadd.f32 %v4795_v33, %v2257_v37 }
0x1ee1   :  { %v2267_v40 = vmul.f32 %v2263_v34, %v2263_v34 }
0x1ee2   :  { %v2266_v45 = vmul.f32 %v2258_v39, %v2258_v39 }
0x1ee3   :  { %2272 = vrot.lane.b32.xlu1 %v2267_v40, %s4257_s13 }
0x1ee4   :  { %2270 = vrot.lane.b32.xlu0 %v2266_v45, %s4257_s13 }
0x1f55   :  { %v2273_v42 = vpop.permute.xlu1 %2272 }
0x1f56   :  { %v2277_v43 = vsel %vm183_vm1, %v2263_v34, %v2273_v42  ;;  %v2271_v44 = vpop.permute.xlu0 %2270 }
0x1f57   :  { %v2279_v46 = vsel %vm186_vm2, %v2277_v43, 0.0  ;;  %v2276_v48 = vsel %vm183_vm1, %v2258_v39, %v2271_v44 }
0x1f58   :  { %v2278_v50 = vsel %vm186_vm2, %v2276_v48, 0.0 }
0x1f59   :  { %v2280_v51 = vadd.f32 %v2279_v46, %v2278_v50 }
0x1f5b   :  { %v2281_v32 = vrot.slane %v2280_v51, 4 }
0x1f5d   :  { %v2282_v36 = vadd.f32 %v2281_v32, %v2280_v51 }
0x1f5f   :  { %v2283_v52 = vrot.slane %v2282_v36, 2 }
0x1f61   :  { %v2284_v53 = vadd.f32 %v2283_v52, %v2282_v36 }
0x1f63   :  { %v2285_v54 = vrot.slane %v2284_v53, 1 }
0x1f65   :  { %v2286_v55 = vadd.f32 %v2285_v54, %v2284_v53 }
0x1f67   :  { %v2287_v57 = vmul.f32 0.0625, %v2286_v55 }
0x1f69   :  { %v2288_v58 = vmul.f32 %v2287_v57, %v2287_v57 }
0x1f6b   :  { %2290 = vrot.lane.b32.xlu0 %v2288_v58, %s4257_s13 }
0x1fdd   :  { %v2291_v59 = vpop.permute.xlu0 %2290 }
0x1fde   :  { %v2293_v60 = vsub.f32 %v2287_v57, %v2291_v59 }
0x1fe0   :  { %v2294_v61 = vmax.f32 %v2293_v60, 0.0 }
0x1fe2   :  { %v2295_v62 = vadd.f32 1e-07, %v2294_v61 }
0x1fe4   :  { %4202 = vrsqrt.f32 %v2295_v62 }
0x1fee   :  { %v4203_v63 = vpop.eup %4202 }
0x1fef   :  { %v2304_v1 = vrot.slane %v4203_v63, %v4411_v35 }
0x1ff1   :  { %v2311_v2 = vrot.slane %v2304_v1, %v4411_v35 }
0x1ff3   :  { %2312 = vrot.lane.b32.xlu1 %v2311_v2, %s4259_s28 }
0x2065   :  { %v2313_v3 = vpop.permute.xlu1 %2312 }
0x2066   :  { %v2315_v4 = vmul.f32 %v4740_v18, %v2313_v3 }
0x2068   :  { %v2316_v56 = vmul.f32 %v2315_v4, %v2287_v57  ;;  %v2319_v5 = vmul.f32 2.0, %v2315_v4 }
0x206a   :  { %v2317_v6 = vsub.f32 %v4746_v23, %v2316_v56  ;;  %v2324_v7 = vrot.slane %v2319_v5, %v4441_v47  ;;  %v2499_v56 = vld [vmem:[#allocation3 + $0xe0] sm:$0xff] }
0x206b   :  { %vm2501_vm5 = vcmp.ge.u32.totalorder %v2499_v56, 2147483648 }
0x206c   :  { %v2318_v9 = vmul.f32 2.0, %v2317_v6  ;;  %v2326_v13 = vmul.f32 %v2324_v7, %v2258_v39  ;;  %v2327_v15 = vmul.f32 %v2324_v7, %v2263_v34 }
0x206e   :  { %v2332_v0 = vrot.slane %v2318_v9, %v4441_v47  ;;  %v2500_v9 = vld [vmem:[#allocation3 + $0xe8] sm:$0xff] }
0x206f   :  { %vm2502_vm6 = vcmp.ge.u32.totalorder %v2500_v9, 2147483648 }
0x2070   :  { %v2334_v19 = vadd.f32 %v2332_v0, %v2326_v13  ;;  %v2335_v21 = vadd.f32 %v2332_v0, %v2327_v15 }
0x2072   :  { %vm2341_vm13 = vcmp.gt.f32.partialorder %v2334_v19, 0.0  ;;  %vm2342_vm15 = vcmp.gt.f32.partialorder %v2335_v21, 0.0 }
0x2073   :  { %vm2343_vm3 = vmand %vm2339_vm8, %vm2341_vm13 }
0x2074   :  { %v2345_v22 = vsel %vm2343_vm3, %v2334_v19, 0.0  ;;  %vm2344_vm4 = vmand %vm2340_vm12, %vm2342_vm15 }
0x2075   :  { %3974 = vmatprep.mubr.msk.f32.mxu0 %vm183_vm1, %v2345_v22  ;;  %v2346_v24 = vsel %vm2344_vm4, %v2335_v21, 0.0 }
0x2076   :  { %3975 = vmatmul.mubr.msk.f32.vlgmr.msra.gmra.mrb[16].mxu0 %vm183_vm1, %v2346_v24 }
0x2077   :  { %4140 = vmatpush3.bf16.msra.mxu0 %v4476_v30 }
0x2078   :  { %4142 = vmatprep.subr.bf16.mxu0 %v4419_v38 }
0x2149   :  { %v3976_v25 = vpop.f32.mrb[16].mxu0 }
0x214a   :  { %v2425_v26 = vadd.f32 %v4758_v49, %v3976_v25  ;;  %v2419_v27 = vpop.f32.mrb[17].mxu0 }
0x214b   :  { %v2420_v28 = vadd.f32 %v4758_v49, %v2419_v27 }
0x214c   :  { %v2429_v29 = vmul.f32 %v2425_v26, %v2425_v26 }
0x214d   :  { %v2428_v31 = vmul.f32 %v2420_v28, %v2420_v28 }
0x214e   :  { %2434 = vrot.lane.b32.xlu1 %v2429_v29, %s4260_s1 }
0x214f   :  { %2432 = vrot.lane.b32.xlu0 %v2428_v31, %s4260_s1 }
0x21c0   :  { %v2435_v34 = vpop.permute.xlu1 %2434 }
0x21c1   :  { %v2439_v37 = vsel %vm360_vm9, %v2425_v26, %v2435_v34  ;;  %v2433_v39 = vpop.permute.xlu0 %2432 }
0x21c2   :  { %v2441_v40 = vsel %vm183_vm1, %v2439_v37, 0.0  ;;  %v2438_v45 = vsel %vm360_vm9, %v2420_v28, %v2433_v39 }
0x21c3   :  { %v2440_v42 = vsel %vm183_vm1, %v2438_v45, 0.0 }
0x21c4   :  { %v2442_v43 = vadd.f32 %v2441_v40, %v2440_v42 }
0x21c6   :  { %v2443_v44 = vrot.slane %v2442_v43, 4 }
0x21c8   :  { %v2444_v46 = vadd.f32 %v2443_v44, %v2442_v43 }
0x21ca   :  { %v2445_v48 = vrot.slane %v2444_v46, 2 }
0x21cc   :  { %v2446_v50 = vadd.f32 %v2445_v48, %v2444_v46 }
0x21ce   :  { %v2447_v51 = vrot.slane %v2446_v50, 1 }
0x21d0   :  { %v2448_v32 = vadd.f32 %v2447_v51, %v2446_v50 }
0x21d2   :  { %v2449_v36 = vmul.f32 0.0625, %v2448_v32 }
0x21d4   :  { %v2450_v52 = vmul.f32 %v2449_v36, %v2449_v36 }
0x21d6   :  { %2452 = vrot.lane.b32.xlu0 %v2450_v52, %s4260_s1 }
0x2248   :  { %v2453_v53 = vpop.permute.xlu0 %2452 }
0x2249   :  { %v2455_v54 = vsub.f32 %v2449_v36, %v2453_v53 }
0x224b   :  { %v2456_v55 = vmax.f32 %v2455_v54, 0.0 }
0x224d   :  { %v2457_v57 = vadd.f32 1e-07, %v2456_v55 }
0x224f   :  { %4204 = vrsqrt.f32 %v2457_v57 }
0x2259   :  { %v4205_v58 = vpop.eup %4204 }
0x225a   :  { %v2466_v59 = vrot.slane %v4205_v58, %v4411_v35 }
0x225c   :  { %v2473_v60 = vrot.slane %v2466_v59, %v4411_v35 }
0x225e   :  { %2474 = vrot.lane.b32.xlu1 %v2473_v60, %s4261_s27 }
0x22d0   :  { %v2475_v61 = vpop.permute.xlu1 %2474 }
0x22d1   :  { %v2477_v62 = vmul.f32 %v4775_v8, %v2475_v61 }
0x22d3   :  { %v2478_v63 = vmul.f32 %v2477_v62, %v2449_v36  ;;  %v2481_v1 = vmul.f32 2.0, %v2477_v62 }
0x22d5   :  { %v2479_v2 = vsub.f32 %v4781_v14, %v2478_v63  ;;  %v2486_v3 = vrot.slane %v2481_v1, %v4441_v47  ;;  %v2661_v63 = vld [vmem:[#allocation3 + $0xf0] sm:$0xff] }
0x22d6   :  { %vm2663_vm15 = vcmp.ge.u32.totalorder %v2661_v63, 2147483648 }
0x22d7   :  { %v2480_v4 = vmul.f32 2.0, %v2479_v2  ;;  %v2488_v5 = vmul.f32 %v2486_v3, %v2420_v28  ;;  %v2489_v6 = vmul.f32 %v2486_v3, %v2425_v26 }
0x22d9   :  { %v2494_v7 = vrot.slane %v2480_v4, %v4441_v47  ;;  %v2662_v4 = vld [vmem:[#allocation3 + $0xf8] sm:$0xff] }
0x22da   :  { %vm2664_vm3 = vcmp.ge.u32.totalorder %v2662_v4, 2147483648 }
0x22db   :  { %v2496_v12 = vadd.f32 %v2494_v7, %v2488_v5  ;;  %v2497_v13 = vadd.f32 %v2494_v7, %v2489_v6 }
0x22dd   :  { %vm2503_vm7 = vcmp.gt.f32.partialorder %v2496_v12, 0.0  ;;  %vm2504_vm8 = vcmp.gt.f32.partialorder %v2497_v13, 0.0 }
0x22de   :  { %vm2505_vm12 = vmand %vm2501_vm5, %vm2503_vm7 }
0x22df   :  { %v2507_v15 = vsel %vm2505_vm12, %v2496_v12, 0.0  ;;  %vm2506_vm13 = vmand %vm2502_vm6, %vm2504_vm8 }
0x22e0   :  { %3981 = vmatprep.mubr.msk.f32.mxu1 %vm360_vm9, %v2507_v15  ;;  %v2508_v0 = vsel %vm2506_vm13, %v2497_v13, 0.0 }
0x22e1   :  { %3982 = vmatmul.mubr.msk.f32.vlgmr.msra.gmra.mrb[12].mxu1 %vm360_vm9, %v2508_v0 }
0x22e2   :  { %4132 = vmatpush3.bf16.msra.mxu1 %v4419_v38 }
0x22e3   :  { %4134 = vmatprep.subr.bf16.mxu1 %v4427_v41 }
0x22e6   :  { %4136 = vmatpush3.bf16.msra.mxu1 %v4427_v41 }
0x22e7   :  { %4150 = vmatprep.subr.bf16.mxu1 %v4476_v30 }
0x23b4   :  { %v3983_v17 = vpop.f32.mrb[12].mxu1 }
0x23b5   :  { %v2587_v19 = vadd.f32 %v4795_v33, %v3983_v17  ;;  %v2581_v21 = vpop.f32.mrb[13].mxu1 }
0x23b6   :  { %v2582_v22 = vadd.f32 %v4795_v33, %v2581_v21 }
0x23b7   :  { %v2591_v24 = vmul.f32 %v2587_v19, %v2587_v19 }
0x23b8   :  { %v2590_v25 = vmul.f32 %v2582_v22, %v2582_v22 }
0x23b9   :  { %2596 = vrot.lane.b32.xlu1 %v2591_v24, %s4257_s13 }
0x23ba   :  { %2594 = vrot.lane.b32.xlu0 %v2590_v25, %s4257_s13 }
0x242b   :  { %v2597_v26 = vpop.permute.xlu1 %2596 }
0x242c   :  { %v2601_v27 = vsel %vm183_vm1, %v2587_v19, %v2597_v26  ;;  %v2595_v28 = vpop.permute.xlu0 %2594 }
0x242d   :  { %v2603_v29 = vsel %vm186_vm2, %v2601_v27, 0.0  ;;  %v2600_v31 = vsel %vm183_vm1, %v2582_v22, %v2595_v28 }
0x242e   :  { %v2602_v34 = vsel %vm186_vm2, %v2600_v31, 0.0 }
0x242f   :  { %v2604_v37 = vadd.f32 %v2603_v29, %v2602_v34 }
0x2431   :  { %v2605_v39 = vrot.slane %v2604_v37, 4 }
0x2433   :  { %v2606_v40 = vadd.f32 %v2605_v39, %v2604_v37 }
0x2435   :  { %v2607_v45 = vrot.slane %v2606_v40, 2 }
0x2437   :  { %v2608_v42 = vadd.f32 %v2607_v45, %v2606_v40 }
0x2439   :  { %v2609_v43 = vrot.slane %v2608_v42, 1 }
0x243b   :  { %v2610_v44 = vadd.f32 %v2609_v43, %v2608_v42 }
0x243d   :  { %v2611_v46 = vmul.f32 0.0625, %v2610_v44 }
0x243f   :  { %v2612_v48 = vmul.f32 %v2611_v46, %v2611_v46 }
0x2441   :  { %2614 = vrot.lane.b32.xlu0 %v2612_v48, %s4257_s13 }
0x24b3   :  { %v2615_v50 = vpop.permute.xlu0 %2614 }
0x24b4   :  { %v2617_v51 = vsub.f32 %v2611_v46, %v2615_v50 }
0x24b6   :  { %v2618_v32 = vmax.f32 %v2617_v51, 0.0 }
0x24b8   :  { %v2619_v36 = vadd.f32 1e-07, %v2618_v32 }
0x24ba   :  { %4206 = vrsqrt.f32 %v2619_v36 }
0x24c4   :  { %v4207_v52 = vpop.eup %4206 }
0x24c5   :  { %v2628_v53 = vrot.slane %v4207_v52, %v4411_v35 }
0x24c7   :  { %v2635_v54 = vrot.slane %v2628_v53, %v4411_v35 }
0x24c9   :  { %2636 = vrot.lane.b32.xlu1 %v2635_v54, %s4259_s28 }
0x253b   :  { %v2637_v55 = vpop.permute.xlu1 %2636 }
0x253c   :  { %v2639_v57 = vmul.f32 %v4740_v18, %v2637_v55 }
0x253e   :  { %v2640_v58 = vmul.f32 %v2639_v57, %v2611_v46  ;;  %v2643_v59 = vmul.f32 2.0, %v2639_v57  ;;  %v2823_v57 = vld [vmem:[#allocation3 + $0x100] sm:$0xff] }
0x253f   :  { %vm2825_vm8 = vcmp.ge.u32.totalorder %v2823_v57, 2147483648 }
0x2540   :  { %v2641_v60 = vsub.f32 %v4746_v23, %v2640_v58  ;;  %v2648_v61 = vrot.slane %v2643_v59, %v4441_v47 }
0x2542   :  { %v2642_v62 = vmul.f32 2.0, %v2641_v60  ;;  %v2650_v1 = vmul.f32 %v2648_v61, %v2582_v22  ;;  %v2651_v2 = vmul.f32 %v2648_v61, %v2587_v19  ;;  %v2824_v61 = vld [vmem:[#allocation3 + $0x108] sm:$0xff] }
0x2543   :  { %vm2826_vm12 = vcmp.ge.u32.totalorder %v2824_v61, 2147483648 }
0x2544   :  { %v2656_v3 = vrot.slane %v2642_v62, %v4441_v47 }
0x2546   :  { %v2658_v56 = vadd.f32 %v2656_v3, %v2650_v1  ;;  %v2659_v5 = vadd.f32 %v2656_v3, %v2651_v2 }
0x2548   :  { %vm2665_vm4 = vcmp.gt.f32.partialorder %v2658_v56, 0.0  ;;  %vm2666_vm5 = vcmp.gt.f32.partialorder %v2659_v5, 0.0 }
0x2549   :  { %vm2667_vm6 = vmand %vm2663_vm15, %vm2665_vm4 }
0x254a   :  { %v2669_v6 = vsel %vm2667_vm6, %v2658_v56, 0.0  ;;  %vm2668_vm7 = vmand %vm2664_vm3, %vm2666_vm5 }
0x254b   :  { %3992 = vmatprep.mubr.msk.f32.mxu1 %vm183_vm1, %v2669_v6  ;;  %v2670_v7 = vsel %vm2668_vm7, %v2659_v5, 0.0 }
0x254c   :  { %3993 = vmatmul.mubr.msk.f32.vlgmr.msra.gmra.mrb[14].mxu1 %vm183_vm1, %v2670_v7 }
0x254d   :  { %4152 = vmatpush3.bf16.msra.mxu1 %v4476_v30 }
0x254e   :  { %4154 = vmatprep.subr.bf16.mxu1 %v4644_v16 }
0x261f   :  { %v3994_v9 = vpop.f32.mrb[14].mxu1 }
0x2620   :  { %v2749_v12 = vadd.f32 %v4758_v49, %v3994_v9  ;;  %v2743_v13 = vpop.f32.mrb[15].mxu1 }
0x2621   :  { %v2744_v15 = vadd.f32 %v4758_v49, %v2743_v13 }
0x2622   :  { %v2753_v0 = vmul.f32 %v2749_v12, %v2749_v12 }
0x2623   :  { %v2752_v17 = vmul.f32 %v2744_v15, %v2744_v15 }
0x2624   :  { %2758 = vrot.lane.b32.xlu1 %v2753_v0, %s4260_s1 }
0x2625   :  { %2756 = vrot.lane.b32.xlu0 %v2752_v17, %s4260_s1 }
0x2696   :  { %v2759_v19 = vpop.permute.xlu1 %2758 }
0x2697   :  { %v2763_v21 = vsel %vm360_vm9, %v2749_v12, %v2759_v19  ;;  %v2757_v22 = vpop.permute.xlu0 %2756 }
0x2698   :  { %v2765_v30 = vsel %vm183_vm1, %v2763_v21, 0.0  ;;  %v2762_v24 = vsel %vm360_vm9, %v2744_v15, %v2757_v22 }
0x2699   :  { %v2764_v25 = vsel %vm183_vm1, %v2762_v24, 0.0 }
0x269a   :  { %v2766_v26 = vadd.f32 %v2765_v30, %v2764_v25 }
0x269c   :  { %v2767_v27 = vrot.slane %v2766_v26, 4 }
0x269e   :  { %v2768_v28 = vadd.f32 %v2767_v27, %v2766_v26 }
0x26a0   :  { %v2769_v29 = vrot.slane %v2768_v28, 2 }
0x26a2   :  { %v2770_v31 = vadd.f32 %v2769_v29, %v2768_v28 }
0x26a4   :  { %v2771_v34 = vrot.slane %v2770_v31, 1 }
0x26a6   :  { %v2772_v37 = vadd.f32 %v2771_v34, %v2770_v31 }
0x26a8   :  { %v2773_v39 = vmul.f32 0.0625, %v2772_v37 }
0x26aa   :  { %v2774_v40 = vmul.f32 %v2773_v39, %v2773_v39 }
0x26ac   :  { %2776 = vrot.lane.b32.xlu0 %v2774_v40, %s4260_s1 }
0x271e   :  { %v2777_v45 = vpop.permute.xlu0 %2776 }
0x271f   :  { %v2779_v42 = vsub.f32 %v2773_v39, %v2777_v45 }
0x2721   :  { %v2780_v43 = vmax.f32 %v2779_v42, 0.0 }
0x2723   :  { %v2781_v44 = vadd.f32 1e-07, %v2780_v43 }
0x2725   :  { %4208 = vrsqrt.f32 %v2781_v44 }
0x272f   :  { %v4209_v46 = vpop.eup %4208 }
0x2730   :  { %v2790_v48 = vrot.slane %v4209_v46, %v4411_v35 }
0x2732   :  { %v2797_v50 = vrot.slane %v2790_v48, %v4411_v35 }
0x2734   :  { %2798 = vrot.lane.b32.xlu1 %v2797_v50, %s4261_s27  ;;  %v2985_v50 = vld [vmem:[#allocation3 + $0x110] sm:$0xff] }
0x2735   :  { %vm2987_vm5 = vcmp.ge.u32.totalorder %v2985_v50, 2147483648 }
0x27a6   :  { %v2799_v51 = vpop.permute.xlu1 %2798 }
0x27a7   :  { %v2801_v32 = vmul.f32 %v4775_v8, %v2799_v51 }
0x27a9   :  { %v2802_v36 = vmul.f32 %v2801_v32, %v2773_v39  ;;  %v2805_v52 = vmul.f32 2.0, %v2801_v32 }
0x27ab   :  { %v2803_v53 = vsub.f32 %v4781_v14, %v2802_v36  ;;  %v2810_v54 = vrot.slane %v2805_v52, %v4441_v47  ;;  %v2986_v52 = vld [vmem:[#allocation3 + $0x118] sm:$0xff] }
0x27ac   :  { %vm2988_vm6 = vcmp.ge.u32.totalorder %v2986_v52, 2147483648 }
0x27ad   :  { %v2804_v55 = vmul.f32 2.0, %v2803_v53  ;;  %v2812_v58 = vmul.f32 %v2810_v54, %v2744_v15  ;;  %v2813_v59 = vmul.f32 %v2810_v54, %v2749_v12 }
0x27af   :  { %v2818_v60 = vrot.slane %v2804_v55, %v4441_v47 }
0x27b1   :  { %v2820_v62 = vadd.f32 %v2818_v60, %v2812_v58  ;;  %v2821_v63 = vadd.f32 %v2818_v60, %v2813_v59 }
0x27b3   :  { %vm2827_vm13 = vcmp.gt.f32.partialorder %v2820_v62, 0.0  ;;  %vm2828_vm15 = vcmp.gt.f32.partialorder %v2821_v63, 0.0 }
0x27b4   :  { %vm2829_vm3 = vmand %vm2825_vm8, %vm2827_vm13 }
0x27b5   :  { %v2831_v1 = vsel %vm2829_vm3, %v2820_v62, 0.0  ;;  %vm2830_vm4 = vmand %vm2826_vm12, %vm2828_vm15 }
0x27b6   :  { %3999 = vmatprep.mubr.msk.f32.mxu0 %vm360_vm9, %v2831_v1  ;;  %v2832_v2 = vsel %vm2830_vm4, %v2821_v63, 0.0 }
0x27b7   :  { %4000 = vmatmul.mubr.msk.f32.vlgmr.msra.gmra.mrb[18].mxu0 %vm360_vm9, %v2832_v2 }
0x27b8   :  { %4144 = vmatpush3.bf16.msra.mxu0 %v4419_v38 }
0x27b9   :  { %4146 = vmatprep.subr.bf16.mxu0 %v4427_v41 }
0x27bc   :  { %4148 = vmatpush3.bf16.msra.mxu0 %v4427_v41 }
0x27bd   :  { %4163 = vmatprep.subr.msk.bf16.mxu0 %vm4691_vm14, %v4689_v10 }
0x288a   :  { %v4001_v3 = vpop.f32.mrb[18].mxu0 }
0x288b   :  { %v2911_v4 = vadd.f32 %v4795_v33, %v4001_v3  ;;  %v2905_v56 = vpop.f32.mrb[19].mxu0 }
0x288c   :  { %v2906_v5 = vadd.f32 %v4795_v33, %v2905_v56 }
0x288d   :  { %v2915_v6 = vmul.f32 %v2911_v4, %v2911_v4 }
0x288e   :  { %v2914_v7 = vmul.f32 %v2906_v5, %v2906_v5 }
0x288f   :  { %2920 = vrot.lane.b32.xlu1 %v2915_v6, %s4257_s13 }
0x2890   :  { %2918 = vrot.lane.b32.xlu0 %v2914_v7, %s4257_s13 }
0x2901   :  { %v2921_v38 = vpop.permute.xlu1 %2920 }
0x2902   :  { %v2925_v9 = vsel %vm183_vm1, %v2911_v4, %v2921_v38  ;;  %v2919_v41 = vpop.permute.xlu0 %2918 }
0x2903   :  { %v2927_v12 = vsel %vm186_vm2, %v2925_v9, 0.0  ;;  %v2924_v13 = vsel %vm183_vm1, %v2906_v5, %v2919_v41 }
0x2904   :  { %v2926_v15 = vsel %vm186_vm2, %v2924_v13, 0.0 }
0x2905   :  { %v2928_v0 = vadd.f32 %v2927_v12, %v2926_v15 }
0x2907   :  { %v2929_v17 = vrot.slane %v2928_v0, 4 }
0x2909   :  { %v2930_v19 = vadd.f32 %v2929_v17, %v2928_v0 }
0x290b   :  { %v2931_v21 = vrot.slane %v2930_v19, 2 }
0x290d   :  { %v2932_v22 = vadd.f32 %v2931_v21, %v2930_v19 }
0x290f   :  { %v2933_v30 = vrot.slane %v2932_v22, 1 }
0x2911   :  { %v2934_v24 = vadd.f32 %v2933_v30, %v2932_v22 }
0x2913   :  { %v2935_v25 = vmul.f32 0.0625, %v2934_v24 }
0x2915   :  { %v2936_v26 = vmul.f32 %v2935_v25, %v2935_v25 }
0x2917   :  { %2938 = vrot.lane.b32.xlu0 %v2936_v26, %s4257_s13 }
0x2989   :  { %v2939_v27 = vpop.permute.xlu0 %2938 }
0x298a   :  { %v2941_v28 = vsub.f32 %v2935_v25, %v2939_v27 }
0x298c   :  { %v2942_v29 = vmax.f32 %v2941_v28, 0.0 }
0x298e   :  { %v2943_v31 = vadd.f32 1e-07, %v2942_v29 }
0x2990   :  { %4210 = vrsqrt.f32 %v2943_v31  ;;  %v3147_v31 = vld [vmem:[#allocation3 + $0x120] sm:$0xff] }
0x299a   :  { %v4211_v34 = vpop.eup %4210 }
0x299b   :  { %v2952_v37 = vrot.slane %v4211_v34, %v4411_v35 }
0x299d   :  { %v2959_v39 = vrot.slane %v2952_v37, %v4411_v35 }
0x299f   :  { %2960 = vrot.lane.b32.xlu1 %v2959_v39, %s4259_s28 }
0x2a11   :  { %v2961_v40 = vpop.permute.xlu1 %2960 }
0x2a12   :  { %v2963_v45 = vmul.f32 %v4740_v18, %v2961_v40  ;;  %v3148_v40 = vld [vmem:[#allocation3 + $0x128] sm:$0xff] }
0x2a13   :  { %vm3150_vm15 = vcmp.ge.u32.totalorder %v3148_v40, 2147483648 }
0x2a14   :  { %v2964_v42 = vmul.f32 %v2963_v45, %v2935_v25  ;;  %v2967_v43 = vmul.f32 2.0, %v2963_v45 }
0x2a16   :  { %v2965_v44 = vsub.f32 %v4746_v23, %v2964_v42  ;;  %v2972_v46 = vrot.slane %v2967_v43, %v4441_v47 }
0x2a18   :  { %v2966_v48 = vmul.f32 2.0, %v2965_v44  ;;  %v2974_v51 = vmul.f32 %v2972_v46, %v2906_v5  ;;  %v2975_v32 = vmul.f32 %v2972_v46, %v2911_v4 }
0x2a1a   :  { %v2980_v36 = vrot.slane %v2966_v48, %v4441_v47 }
0x2a1c   :  { %v2982_v53 = vadd.f32 %v2980_v36, %v2974_v51  ;;  %v2983_v54 = vadd.f32 %v2980_v36, %v2975_v32 }
0x2a1e   :  { %vm2989_vm7 = vcmp.gt.f32.partialorder %v2982_v53, 0.0  ;;  %vm2990_vm8 = vcmp.gt.f32.partialorder %v2983_v54, 0.0 }
0x2a1f   :  { %vm2991_vm12 = vmand %vm2987_vm5, %vm2989_vm7 }
0x2a20   :  { %v2993_v55 = vsel %vm2991_vm12, %v2982_v53, 0.0  ;;  %vm2992_vm13 = vmand %vm2988_vm6, %vm2990_vm8 }
0x2a21   :  { %4010 = vmatprep.mubr.msk.f32.mxu0 %vm183_vm1, %v2993_v55  ;;  %v2994_v57 = vsel %vm2992_vm13, %v2983_v54, 0.0 }
0x2a22   :  { %4011 = vmatmul.mubr.msk.f32.vlgmr.msra.gmra.mrb[20].mxu0 %vm183_vm1, %v2994_v57 }
0x2a23   :  { %4166 = vmatpush3.bf16.msk.msra.mxu0 %vm4691_vm14, %v4689_v10  ;;  %vm3149_vm14 = vcmp.ge.u32.totalorder %v3147_v31, 2147483648 }
0x2af5   :  { %v4012_v58 = vpop.f32.mrb[20].mxu0 }
0x2af6   :  { %v3073_v59 = vadd.f32 %v4758_v49, %v4012_v58  ;;  %v3067_v60 = vpop.f32.mrb[21].mxu0 }
0x2af7   :  { %v3068_v61 = vadd.f32 %v4758_v49, %v3067_v60 }
0x2af8   :  { %v3077_v62 = vmul.f32 %v3073_v59, %v3073_v59 }
0x2af9   :  { %v3076_v63 = vmul.f32 %v3068_v61, %v3068_v61 }
0x2afa   :  { %3082 = vrot.lane.b32.xlu1 %v3077_v62, %s4260_s1 }
0x2afb   :  { %3080 = vrot.lane.b32.xlu0 %v3076_v63, %s4260_s1 }
0x2b6c   :  { %v3083_v1 = vpop.permute.xlu1 %3082 }
0x2b6d   :  { %v3087_v2 = vsel %vm360_vm9, %v3073_v59, %v3083_v1  ;;  %v3081_v3 = vpop.permute.xlu0 %3080 }
0x2b6e   :  { %v3089_v4 = vsel %vm183_vm1, %v3087_v2, 0.0  ;;  %v3086_v10 = vsel %vm360_vm9, %v3068_v61, %v3081_v3 }
0x2b6f   :  { %v3088_v11 = vsel %vm183_vm1, %v3086_v10, 0.0 }
0x2b70   :  { %v3090_v56 = vadd.f32 %v3089_v4, %v3088_v11 }
0x2b72   :  { %v3091_v5 = vrot.slane %v3090_v56, 4 }
0x2b74   :  { %v3092_v6 = vadd.f32 %v3091_v5, %v3090_v56 }
0x2b76   :  { %v3093_v49 = vrot.slane %v3092_v6, 2 }
0x2b78   :  { %v3094_v7 = vadd.f32 %v3093_v49, %v3092_v6 }
0x2b7a   :  { %v3095_v38 = vrot.slane %v3094_v7, 1 }
0x2b7c   :  { %v3096_v9 = vadd.f32 %v3095_v38, %v3094_v7 }
0x2b7e   :  { %v3097_v41 = vmul.f32 0.0625, %v3096_v9 }
0x2b80   :  { %v3098_v12 = vmul.f32 %v3097_v41, %v3097_v41 }
0x2b82   :  { %3100 = vrot.lane.b32.xlu0 %v3098_v12, %s4260_s1 }
0x2bf4   :  { %v3101_v13 = vpop.permute.xlu0 %3100 }
0x2bf5   :  { %v3103_v15 = vsub.f32 %v3097_v41, %v3101_v13 }
0x2bf7   :  { %v3104_v0 = vmax.f32 %v3103_v15, 0.0 }
0x2bf9   :  { %v3105_v17 = vadd.f32 1e-07, %v3104_v0  ;;  %v3310_v0 = vld [vmem:[#allocation3 + $0x138] sm:$0xff] }
0x2bfb   :  { %4212 = vrsqrt.f32 %v3105_v17 }
0x2c05   :  { %v4213_v19 = vpop.eup %4212 }
0x2c06   :  { %v3114_v21 = vrot.slane %v4213_v19, %v4411_v35 }
0x2c08   :  { %v3121_v22 = vrot.slane %v3114_v21, %v4411_v35 }
0x2c0a   :  { %3122 = vrot.lane.b32.xlu1 %v3121_v22, %s4261_s27  ;;  %v4226_v22 = vld [vmem:[%s4989_s9] ss:$0 sm:$0xff] }
0x2c7c   :  { %v3123_v30 = vpop.permute.xlu1 %3122 }
0x2c7d   :  { %v3125_v24 = vmul.f32 %v4775_v8, %v3123_v30 }
0x2c7f   :  { %v3126_v25 = vmul.f32 %v3125_v24, %v3097_v41  ;;  %v3129_v26 = vmul.f32 2.0, %v3125_v24  ;;  %v3309_v41 = vld [vmem:[#allocation3 + $0x130] sm:$0xff] }
0x2c81   :  { %v3127_v27 = vsub.f32 %v4781_v14, %v3126_v25  ;;  %v3134_v28 = vrot.slane %v3129_v26, %v4441_v47 }
0x2c83   :  { %v3128_v29 = vmul.f32 2.0, %v3127_v27  ;;  %v3136_v34 = vmul.f32 %v3134_v28, %v3068_v61  ;;  %v3137_v37 = vmul.f32 %v3134_v28, %v3073_v59 }
0x2c85   :  { %v3142_v39 = vrot.slane %v3128_v29, %v4441_v47 }
0x2c87   :  { %v3144_v45 = vadd.f32 %v3142_v39, %v3136_v34  ;;  %v3145_v42 = vadd.f32 %v3142_v39, %v3137_v37 }
0x2c89   :  { %vm3151_vm3 = vcmp.gt.f32.partialorder %v3144_v45, 0.0  ;;  %vm3152_vm4 = vcmp.gt.f32.partialorder %v3145_v42, 0.0 }
0x2c8a   :  { %vm3153_vm5 = vmand %vm3149_vm14, %vm3151_vm3 }
0x2c8b   :  { %v3155_v8 = vsel %vm3153_vm5, %v3144_v45, 0.0  ;;  %vm3154_vm6 = vmand %vm3150_vm15, %vm3152_vm4 }
0x2c8c   :  { %4017 = vmatprep.mubr.msk.f32.mxu1 %vm360_vm9, %v3155_v8  ;;  %v3156_v14 = vsel %vm3154_vm6, %v3145_v42, 0.0 }
0x2c8d   :  { %4018 = vmatmul.mubr.msk.f32.vlgmr.msra.gmra.mrb[16].mxu1 %vm360_vm9, %v3156_v14  ;;  %vm3312_vm9 = vcmp.ge.u32.totalorder %v3310_v0, 2147483648  ;;  %v3736_v0 = vld [vmem:[#allocation2] ss:$0 sm:$0xff] }
0x2c8e   :  { %4156 = vmatpush3.bf16.msra.mxu1 %v4644_v16 }
0x2c8f   :  { %4158 = vmatprep.subr.bf16.mxu1 %v4654_v20 }
0x2c92   :  { %4160 = vmatpush3.bf16.msra.mxu1 %v4654_v20 }
0x2d60   :  { %v4019_v43 = vpop.f32.mrb[16].mxu1 }
0x2d61   :  { %v3235_v44 = vadd.f32 %v4795_v33, %v4019_v43  ;;  %v3229_v46 = vpop.f32.mrb[17].mxu1 }
0x2d62   :  { %v3230_v48 = vadd.f32 %v4795_v33, %v3229_v46 }
0x2d63   :  { %v3239_v50 = vmul.f32 %v3235_v44, %v3235_v44 }
0x2d64   :  { %v3238_v51 = vmul.f32 %v3230_v48, %v3230_v48 }
0x2d65   :  { %3244 = vrot.lane.b32.xlu1 %v3239_v50, %s4257_s13 }
0x2d66   :  { %3242 = vrot.lane.b32.xlu0 %v3238_v51, %s4257_s13 }
0x2dd7   :  { %v3245_v32 = vpop.permute.xlu1 %3244 }
0x2dd8   :  { %v3249_v36 = vsel %vm183_vm1, %v3235_v44, %v3245_v32  ;;  %v3243_v16 = vpop.permute.xlu0 %3242 }
0x2dd9   :  { %v3251_v52 = vsel %vm186_vm2, %v3249_v36, 0.0  ;;  %v3248_v20 = vsel %vm183_vm1, %v3230_v48, %v3243_v16 }
0x2dda   :  { %v3250_v53 = vsel %vm186_vm2, %v3248_v20, 0.0  ;;  %vm3311_vm2 = vcmp.ge.u32.totalorder %v3309_v41, 2147483648 }
0x2ddb   :  { %v3252_v54 = vadd.f32 %v3251_v52, %v3250_v53 }
0x2ddd   :  { %v3253_v55 = vrot.slane %v3252_v54, 4 }
0x2ddf   :  { %v3254_v57 = vadd.f32 %v3253_v55, %v3252_v54  ;;  %v4227_v54 = vld [vmem:[%s4998_s18] sm:$0x1] }
0x2de1   :  { %v3255_v33 = vrot.slane %v3254_v57, 2 }
0x2de3   :  { %v3256_v58 = vadd.f32 %v3255_v33, %v3254_v57 }
0x2de5   :  { %v3257_v59 = vrot.slane %v3256_v58, 1 }
0x2de7   :  { %v3258_v60 = vadd.f32 %v3257_v59, %v3256_v58  ;;  %v4228_v58 = vld [vmem:[%s4999_s19] sm:$0x1] }
0x2de9   :  { %v3259_v61 = vmul.f32 0.0625, %v3258_v60 }
0x2deb   :  { %v3260_v62 = vmul.f32 %v3259_v61, %v3259_v61 }
0x2ded   :  { %3262 = vrot.lane.b32.xlu0 %v3260_v62, %s4257_s13  ;;  %v3471_v62 = vld [vmem:[#allocation3 + $0x140] sm:$0xff] }
0x2e5f   :  { %v3263_v63 = vpop.permute.xlu0 %3262 }
0x2e60   :  { %v3265_v1 = vsub.f32 %v3259_v61, %v3263_v63 }
0x2e62   :  { %v3266_v2 = vmax.f32 %v3265_v1, 0.0 }
0x2e64   :  { %v3267_v3 = vadd.f32 1e-07, %v3266_v2  ;;  %v3472_v2 = vld [vmem:[#allocation3 + $0x148] sm:$0xff] }
0x2e66   :  { %4214 = vrsqrt.f32 %v3267_v3 }
0x2e70   :  { %v4215_v4 = vpop.eup %4214 }
0x2e71   :  { %v3276_v10 = vrot.slane %v4215_v4, %v4411_v35 }
0x2e73   :  { %v3283_v11 = vrot.slane %v3276_v10, %v4411_v35 }
0x2e75   :  { %3284 = vrot.lane.b32.xlu1 %v3283_v11, %s4259_s28 }
0x2ee7   :  { %v3285_v56 = vpop.permute.xlu1 %3284 }
0x2ee8   :  { %v3287_v5 = vmul.f32 %v4740_v18, %v3285_v56  ;;  %v3575_v56 = vld [vmem:[%s4992_s12] sm:$0xff] }
0x2ee9   :  { %4038 = vmatprep.subr.mxu0 %v3575_v56 }
0x2eea   :  { %v3288_v6 = vmul.f32 %v3287_v5, %v3259_v61  ;;  %v3291_v49 = vmul.f32 2.0, %v3287_v5  ;;  %v3566_v5 = vld [vmem:[#allocation3 + $0x158] sm:$0xff] }
0x2eeb   :  { %vm3568_vm5 = vcmp.ge.u32.totalorder %v3566_v5, 1288490188 }
0x2eec   :  { %v3289_v7 = vsub.f32 %v4746_v23, %v3288_v6  ;;  %v3296_v38 = vrot.slane %v3291_v49, %v4441_v47  ;;  %v4229_v6 = vld [vmem:[%s4991_s11] ss:$0 sm:$0xff] }
0x2eee   :  { %v3290_v9 = vmul.f32 2.0, %v3289_v7  ;;  %v3298_v12 = vmul.f32 %v3296_v38, %v3230_v48  ;;  %v3299_v13 = vmul.f32 %v3296_v38, %v3235_v44  ;;  %v3565_v38 = vld [vmem:[#allocation3 + $0x150] sm:$0xff] }
0x2ef0   :  { %v3304_v15 = vrot.slane %v3290_v9, %v4441_v47 }
0x2ef2   :  { %v3306_v17 = vadd.f32 %v3304_v15, %v3298_v12  ;;  %v3307_v19 = vadd.f32 %v3304_v15, %v3299_v13 }
0x2ef4   :  { %vm3313_vm7 = vcmp.gt.f32.partialorder %v3306_v17, 0.0  ;;  %vm3314_vm8 = vcmp.gt.f32.partialorder %v3307_v19, 0.0 }
0x2ef5   :  { %vm3315_vm12 = vmand %vm3311_vm2, %vm3313_vm7 }
0x2ef6   :  { %v3317_v18 = vsel %vm3315_vm12, %v3306_v17, 0.0  ;;  %vm3316_vm13 = vmand %vm3312_vm9, %vm3314_vm8 }
0x2ef7   :  { %4028 = vmatprep.mubr.msk.f32.mxu1 %vm183_vm1, %v3317_v18  ;;  %v3318_v23 = vsel %vm3316_vm13, %v3307_v19, 0.0  ;;  %v3668_v19 = vld [vmem:[#allocation3 + $0x168] sm:$0xff] }
0x2ef8   :  { %4029 = vmatmul.mubr.msk.f32.vlgmr.msra.gmra.mrb[18].mxu1 %vm183_vm1, %v3318_v23  ;;  %vm3473_vm1 = vcmp.ge.u32.totalorder %v3471_v62, 1288490188  ;;  %vm3670_vm8 = vcmp.ge.u32.totalorder %v3668_v19, 858993459 }
0x2fcb   :  { %v4030_v21 = vpop.f32.mrb[18].mxu1 }
0x2fcc   :  { %v3397_v30 = vadd.f32 %v4226_v22, %v4030_v21  ;;  %v3391_v24 = vpop.f32.mrb[19].mxu1  ;;  %v3667_v21 = vld [vmem:[#allocation3 + $0x160] sm:$0xff] }
0x2fcd   :  { %v3392_v25 = vadd.f32 %v4226_v22, %v3391_v24  ;;  %vm3669_vm12 = vcmp.ge.u32.totalorder %v3667_v21, 858993459 }
0x2fce   :  { %v3401_v26 = vmul.f32 %v3397_v30, %v3397_v30 }
0x2fcf   :  { %v3400_v27 = vmul.f32 %v3392_v25, %v3392_v25 }
0x2fd0   :  { %3406 = vrot.lane.b32.xlu1 %v3401_v26, %s4262_s30 }
0x2fd1   :  { %3404 = vrot.lane.b32.xlu0 %v3400_v27, %s4262_s30 }
0x3042   :  { %v3407_v28 = vpop.permute.xlu1 %3406 }
0x3043   :  { %v3411_v29 = vsel %vm1679_vm10, %v3397_v30, %v3407_v28  ;;  %v3405_v31 = vpop.permute.xlu0 %3404 }
0x3044   :  { %v3413_v34 = vsel %vm1682_vm11, %v3411_v29, 0.0  ;;  %v3410_v37 = vsel %vm1679_vm10, %v3392_v25, %v3405_v31 }
0x3045   :  { %v3412_v39 = vsel %vm1682_vm11, %v3410_v37, 0.0  ;;  %vm3474_vm11 = vcmp.ge.u32.totalorder %v3472_v2, 1288490188 }
0x3046   :  { %v3414_v40 = vadd.f32 %v3413_v34, %v3412_v39 }
0x3048   :  { %v3415_v45 = vrot.slane %v3414_v40, 4 }
0x304a   :  { %v3416_v42 = vadd.f32 %v3415_v45, %v3414_v40 }
0x304c   :  { %v3417_v8 = vrot.slane %v3416_v42, 2 }
0x304e   :  { %v3418_v14 = vadd.f32 %v3417_v8, %v3416_v42 }
0x3050   :  { %v3419_v43 = vrot.slane %v3418_v14, 1 }
0x3052   :  { %v3420_v44 = vadd.f32 %v3419_v43, %v3418_v14 }
0x3054   :  { %v3421_v46 = vmul.f32 0.0625, %v3420_v44 }
0x3056   :  { %v3422_v48 = vmul.f32 %v3421_v46, %v3421_v46 }
0x3058   :  { %3424 = vrot.lane.b32.xlu0 %v3422_v48, %s4262_s30 }
0x30ca   :  { %v3425_v50 = vpop.permute.xlu0 %3424 }
0x30cb   :  { %v3427_v51 = vsub.f32 %v3421_v46, %v3425_v50 }
0x30cd   :  { %v3428_v32 = vmax.f32 %v3427_v51, 0.0 }
0x30cf   :  { %v3429_v36 = vadd.f32 1e-07, %v3428_v32 }
0x30d1   :  { %4216 = vrsqrt.f32 %v3429_v36 }
0x30db   :  { %v4217_v16 = vpop.eup %4216 }
0x30dc   :  { %v3438_v52 = vrot.slane %v4217_v16, %v4411_v35 }
0x30de   :  { %v3445_v20 = vrot.slane %v3438_v52, %v4411_v35 }
0x30e0   :  { %3446 = vrot.lane.b32.xlu1 %v3445_v20, %s4264_s10 }
0x3152   :  { %v3447_v53 = vpop.permute.xlu1 %3446 }
0x3153   :  { %v3449_v55 = vmul.f32 %v4227_v54, %v3447_v53 }
0x3155   :  { %v3450_v57 = vmul.f32 %v3449_v55, %v3421_v46  ;;  %v3453_v33 = vmul.f32 1.4285715, %v3449_v55 }
0x3157   :  { %v3451_v59 = vsub.f32 %v4228_v58, %v3450_v57  ;;  %v3458_v60 = vrot.slane %v3453_v33, %v4441_v47 }
0x3159   :  { %v3452_v61 = vmul.f32 1.4285715, %v3451_v59  ;;  %v3460_v35 = vmul.f32 %v3458_v60, %v3392_v25  ;;  %v3461_v63 = vmul.f32 %v3458_v60, %v3397_v30 }
0x315b   :  { %v3466_v1 = vrot.slane %v3452_v61, %v4441_v47 }
0x315d   :  { %v3468_v3 = vadd.f32 %v3466_v1, %v3460_v35  ;;  %v3469_v4 = vadd.f32 %v3466_v1, %v3461_v63 }
0x315f   :  { %vm3475_vm14 = vcmp.gt.f32.partialorder %v3468_v3, 0.0  ;;  %vm3476_vm15 = vcmp.gt.f32.partialorder %v3469_v4, 0.0 }
0x3160   :  { %vm3477_vm3 = vmand %vm3473_vm1, %vm3475_vm14  ;;  %vm3677_vm1 = vcmask 7168  }
0x3161   :  { %v3479_v10 = vsel %vm3477_vm3, %v3468_v3, 0.0  ;;  %vm3478_vm4 = vmand %vm3474_vm11, %vm3476_vm15 }
0x3162   :  { %4035 = vmatprep.mubr.msk.f32.mxu0 %vm1679_vm10, %v3479_v10  ;;  %v3480_v11 = vsel %vm3478_vm4, %v3469_v4, 0.0 }
0x3163   :  { %4036 = vmatmul.mubr.msk.f32.vlgmr.msra.gmra.mrb[22].mxu0 %vm1679_vm10, %v3480_v11  ;;  %vm3567_vm10 = vcmp.ge.u32.totalorder %v3565_v38, 1288490188 }
0x3164   :  { %4039 = vmatpush3.msra.mxu0 %v3575_v56 }
0x3236   :  { %v4037_v47 = vpop.f32.mrb[22].mxu0 }
0x3237   :  { %v3559_v49 = vadd.f32 %v4229_v6, %v4037_v47  ;;  %v3553_v7 = vpop.f32.mrb[23].mxu0 }
0x3238   :  { %v3554_v9 = vadd.f32 %v4229_v6, %v3553_v7 }
0x3239   :  { %v3563_v41 = vmul.f32 1.4285715, %v3559_v49 }
0x323a   :  { %v3562_v12 = vmul.f32 1.4285715, %v3554_v9 }
0x323b   :  { %vm3570_vm6 = vcmp.gt.f32.partialorder %v3563_v41, 0.0 }
0x323c   :  { %vm3572_vm2 = vmand %vm3568_vm5, %vm3570_vm6  ;;  %vm3569_vm9 = vcmp.gt.f32.partialorder %v3562_v12, 0.0 }
0x323d   :  { %vm3571_vm7 = vmand %vm3567_vm10, %vm3569_vm9  ;;  %v3574_v15 = vsel %vm3572_vm2, %v3563_v41, 0.0 }
0x323e   :  { %v3573_v13 = vsel %vm3571_vm7, %v3562_v12, 0.0 }
0x323f   :  { %4040 = vmatprep.mubr.msk.f32.mxu0 %vm91_vm0, %v3573_v13 }
0x3240   :  { %4041 = vmatmul.mubr.msk.f32.vlgmr.msra.gmra.mrb[24].mxu0 %vm91_vm0, %v3574_v15 }
0x3313   :  { %v4042_v17 = vpop.f32.mrb[24].mxu0 }
0x3314   :  { %v3661_v18 = vadd.f32 %v4042_v17, %v3736_v0  ;;  %v3655_v23 = vpop.f32.mrb[25].mxu0 }
0x3315   :  { %v3656_v22 = vadd.f32 %v3736_v0, %v3655_v23 }
0x3316   :  { %v3665_v30 = vmul.f32 1.25, %v3661_v18 }
0x3317   :  { %v3664_v24 = vmul.f32 1.25, %v3656_v22 }
0x3318   :  { %vm3672_vm13 = vcmp.gt.f32.partialorder %v3665_v30, 0.0 }
0x3319   :  { %vm3674_vm11 = vmand %vm3670_vm8, %vm3672_vm13  ;;  %vm3671_vm14 = vcmp.gt.f32.partialorder %v3664_v24, 0.0 }
0x331a   :  { %v3676_v25 = vsel %vm3674_vm11, %v3665_v30, 0.0  ;;  %vm3673_vm15 = vmand %vm3669_vm12, %vm3671_vm14 }
0x331b   :  { %3679 = vst.msk [vmem:[%s5000_s20 + $0x8] sm:$0xff] %vm3677_vm1, %v3676_v25  ;;  %v3675_v26 = vsel %vm3673_vm15, %v3664_v24, 0.0 }
0x331c   :  { %3678 = vst.msk [vmem:[%s5000_s20] sm:$0xff] %vm3677_vm1, %v3675_v26 }
0x331d   :  { %3684 = vsyncpa [#allocation4], 1 }

</bundles_post_ra>
